<compile_context>
chip_gen: v6e
topology: v6e:2x2x1
jax: 0.10.0
libtpu: 0.0.40
codegen_flags: <defaults>
</compile_context>

<pallas_src>
import math
import functools

import jax
import jax.numpy as jnp
from jax.experimental import pallas as pl
from jax.experimental.pallas import tpu as pltpu


# ----------------------------------------------------------------------------
# tiling helpers
# ----------------------------------------------------------------------------

def _round_up(x, m):
    return ((x + m - 1) // m) * m


def _pick_m_tile(M, max_tile=512):
    """Return (tile, padded_M). Small M -> full-dim tile (padded only to 8)."""
    if M <= max_tile:
        Mp = _round_up(M, 8)
        return Mp, Mp
    for t in (max_tile, 512, 256, 128):
        if t <= max_tile and M % t == 0:
            return t, M
    return 256, _round_up(M, 256)


def _pick_k_tile(K):
    """Return (tile, padded_K). K is already 128-aligned by construction."""
    if K <= 4096:
        return K, K
    for t in (4096, 3456, 2048, 1728, 1536, 1024, 896, 768, 640, 512, 384, 256, 128):
        if K % t == 0:
            return t, K
    return 512, _round_up(K, 512)


def _pick_n_tile(N):
    if N <= 512:
        return N, N
    for t in (512, 256, 128):
        if N % t == 0:
            return t, N
    return 256, _round_up(N, 256)


def _kvol_padded(kvol, cin):
    """Pad the tap count so kvol * cin is a multiple of 128 (lane-aligned K)."""
    mult = 128 // math.gcd(cin, 128)
    return _round_up(kvol, mult)


# ----------------------------------------------------------------------------
# Pallas kernels
# ----------------------------------------------------------------------------

def _make_gemm_kernel(relu, has_res, multi_k):
    """out = act((A @ B) * scale + bias [+ residual]); bf16 operands, f32 accum."""

    def kernel(*refs):
        a_ref, b_ref, scale_ref, bias_ref = refs[0], refs[1], refs[2], refs[3]
        pos = 4
        res_ref = None
        if has_res:
            res_ref = refs[pos]
            pos += 1
        o_ref = refs[pos]
        pos += 1
        acc_ref = refs[pos] if multi_k else None

        part = jnp.dot(a_ref[...], b_ref[...], preferred_element_type=jnp.float32)

        def epilogue(acc):
            out = acc * scale_ref[...] + bias_ref[...]
            if has_res:
                out = out + res_ref[...].astype(jnp.float32)
            if relu:
                out = jnp.maximum(out, 0.0)
            o_ref[...] = out.astype(o_ref.dtype)

        if multi_k:
            k = pl.program_id(2)

            @pl.when(k == 0)
            def _():
                acc_ref[...] = jnp.zeros_like(acc_ref)

            acc_ref[...] += part

            @pl.when(k == pl.num_programs(2) - 1)
            def _():
                epilogue(acc_ref[...])
        else:
            epilogue(part)

    return kernel


def fused_gemm(a, b, scale, bias, *, relu, residual=None, out_dtype=jnp.bfloat16):
    """y = act((a @ b) * scale + bias [+ residual]).  a:(M,K)  b:(K,N)  scale,bias:(N,)."""
    M, K = a.shape
    Kb, N = b.shape
    assert K == Kb, (K, Kb)

    tm, Mp = _pick_m_tile(M)
    tk, Kp = _pick_k_tile(K)
    tn, Np = _pick_n_tile(N)

    a = a.astype(jnp.bfloat16)
    if (Mp, Kp) != (M, K):
        a = jnp.pad(a, ((0, Mp - M), (0, Kp - K)))
    b = b.astype(jnp.bfloat16)
    if (Kp, Np) != (K, N):
        b = jnp.pad(b, ((0, Kp - K), (0, Np - N)))
    scale_p = jnp.pad(scale.astype(jnp.float32), (0, Np - N)).reshape(1, Np)
    bias_p = jnp.pad(bias.astype(jnp.float32), (0, Np - N)).reshape(1, Np)

    operands = [a, b, scale_p, bias_p]
    in_specs = [
        pl.BlockSpec((tm, tk), lambda i, j, k: (i, k)),
        pl.BlockSpec((tk, tn), lambda i, j, k: (k, j)),
        pl.BlockSpec((1, tn), lambda i, j, k: (0, j)),
        pl.BlockSpec((1, tn), lambda i, j, k: (0, j)),
    ]
    has_res = residual is not None
    if has_res:
        r = residual.astype(jnp.bfloat16)
        if (Mp, Np) != (M, N):
            r = jnp.pad(r, ((0, Mp - M), (0, Np - N)))
        operands.append(r)
        in_specs.append(pl.BlockSpec((tm, tn), lambda i, j, k: (i, j)))

    nk = Kp // tk
    multi_k = nk > 1
    scratch = [pltpu.VMEM((tm, tn), jnp.float32)] if multi_k else []

    out = pl.pallas_call(
        _make_gemm_kernel(relu, has_res, multi_k),
        out_shape=jax.ShapeDtypeStruct((Mp, Np), out_dtype),
        grid_spec=pltpu.PrefetchScalarGridSpec(
            num_scalar_prefetch=0,
            grid=(Mp // tm, Np // tn, nk),
            in_specs=in_specs,
            out_specs=pl.BlockSpec((tm, tn), lambda i, j, k: (i, j)),
            scratch_shapes=scratch,
        ),
        compiler_params=pltpu.CompilerParams(
            dimension_semantics=("parallel", "parallel", "arbitrary")),
    )(*operands)

    if (Mp, Np) != (M, N):
        out = out[:M, :N]
    return out


def _pool_max_kernel(x_ref, o_ref):
    kvol = x_ref.shape[1]
    acc = x_ref[:, 0, :]
    for t in range(1, kvol):
        acc = jnp.maximum(acc, x_ref[:, t, :])
    o_ref[...] = acc.astype(o_ref.dtype)


def _pool_mean_kernel(x_ref, o_ref, *, inv):
    kvol = x_ref.shape[1]
    acc = x_ref[:, 0, :].astype(jnp.float32)
    for t in range(1, kvol):
        acc = acc + x_ref[:, t, :].astype(jnp.float32)
    o_ref[...] = (acc * inv).astype(o_ref.dtype)


def window_pool(patches, op):
    """Reduce the pooling-window axis.  patches:(M, Kvol, C) -> (M, C)."""
    M, Kvol, C = patches.shape
    tm, Mp = _pick_m_tile(M, max_tile=256)
    if Mp != M:
        patches = jnp.pad(patches, ((0, Mp - M), (0, 0), (0, 0)))
    if op == "max":
        kern = _pool_max_kernel
    else:
        kern = functools.partial(_pool_mean_kernel, inv=1.0 / Kvol)
    out = pl.pallas_call(
        kern,
        out_shape=jax.ShapeDtypeStruct((Mp, C), patches.dtype),
        grid=(Mp // tm,),
        in_specs=[pl.BlockSpec((tm, Kvol, C), lambda i: (i, 0, 0))],
        out_specs=pl.BlockSpec((tm, C), lambda i: (i, 0)),
        compiler_params=pltpu.CompilerParams(dimension_semantics=("parallel",)),
    )(patches)
    return out[:M] if Mp != M else out


# ----------------------------------------------------------------------------
# Glue: window extraction, conv / pool wrappers (plain JAX data movement only)
# ----------------------------------------------------------------------------

def extract_patches(x, ksize, stride, padding, pad_value=0.0, kvol_pad=None):
    """x:(N,D,H,W,C) -> patches:(N,Do,Ho,Wo,Kvol_pad,C) via shifted strided slices."""
    kd, kh, kw = ksize
    sd, sh, sw = stride
    pd, ph, pw = padding
    xp = jnp.pad(x, ((0, 0), (pd, pd), (ph, ph), (pw, pw), (0, 0)),
                 constant_values=pad_value)
    _, Dp, Hp, Wp, _ = xp.shape
    Do = (Dp - kd) // sd + 1
    Ho = (Hp - kh) // sh + 1
    Wo = (Wp - kw) // sw + 1
    slabs = []
    for a in range(kd):
        for b in range(kh):
            for c in range(kw):
                s = xp[:, a:a + (Do - 1) * sd + 1:sd,
                          b:b + (Ho - 1) * sh + 1:sh,
                          c:c + (Wo - 1) * sw + 1:sw, :]
                slabs.append(s)
    if kvol_pad is not None:
        for _ in range(kvol_pad - len(slabs)):
            slabs.append(jnp.zeros_like(slabs[0]))
    patches = jnp.stack(slabs, axis=-2)   # (N, Do, Ho, Wo, Kvol_pad, C)
    return patches, (Do, Ho, Wo)


def conv3d_bn_act(x, cp, stride, padding, relu, residual=None):
    """x:(N,D,H,W,Cin_phys) bf16 -> (N,Do,Ho,Wo,Cout_phys) bf16, fused BN(+res)+act."""
    kd, kh, kw = cp["ksize"]
    assert x.shape[-1] == cp["cin_phys"]
    patches, (Do, Ho, Wo) = extract_patches(x, (kd, kh, kw), stride, padding,
                                            kvol_pad=cp["kvol_pad"])
    Nb = x.shape[0]
    A = patches.reshape(Nb * Do * Ho * Wo, cp["kvol_pad"] * cp["cin_phys"])
    res2d = None
    if residual is not None:
        res2d = residual.reshape(Nb * Do * Ho * Wo, cp["cout_phys"])
    y = fused_gemm(A, cp["B"], cp["scale"], cp["bias"], relu=relu, residual=res2d)
    return y.reshape(Nb, Do, Ho, Wo, cp["cout_phys"])


def max_pool3d(x, ksize, stride, padding):
    # TODO(synk): assumes no pooling window lies entirely inside padding (true here).
    patches, (Do, Ho, Wo) = extract_patches(x, ksize, stride, padding,
                                            pad_value=-jnp.inf)
    Nb, C = x.shape[0], x.shape[-1]
    Kvol = ksize[0] * ksize[1] * ksize[2]
    out = window_pool(patches.reshape(Nb * Do * Ho * Wo, Kvol, C), "max")
    return out.reshape(Nb, Do, Ho, Wo, C)


def avg_pool3d(x, ksize):
    patches, (Do, Ho, Wo) = extract_patches(x, ksize, (1, 1, 1), (0, 0, 0))
    Nb, C = x.shape[0], x.shape[-1]
    Kvol = ksize[0] * ksize[1] * ksize[2]
    out = window_pool(patches.reshape(Nb * Do * Ho * Wo, Kvol, C), "mean")
    return out.reshape(Nb, Do, Ho, Wo, C)


# ----------------------------------------------------------------------------
# Parameters (deterministic init mirroring the module) + one-time prepacking
# ----------------------------------------------------------------------------

def init_conv(key, cout, cin, ksize):
    kd, kh, kw = ksize
    n = kd * kh * cout            # mirrors the module's init rule (kw intentionally omitted)
    std = math.sqrt(2.0 / n)
    return std * jax.random.normal(key, (cout, cin, kd, kh, kw), jnp.float32)


def init_bn(c):
    return dict(gamma=jnp.ones(c, jnp.float32), beta=jnp.zeros(c, jnp.float32),
                mean=jnp.zeros(c, jnp.float32), var=jnp.ones(c, jnp.float32),
                eps=1e-5)


def make_resnet_params(key, layers, num_classes):
    keys = iter(jax.random.split(key, 128))
    params = {"conv1": init_conv(next(keys), 64, 3, (7, 7, 7)),
              "bn1": init_bn(64)}
    inplanes = 64
    layer_params = []
    for planes, nblocks, stride in zip([64, 128, 256, 512], layers, [1, 2, 2, 2]):
        blocks = []
        for bi in range(nblocks):
            s = stride if bi == 0 else 1
            blk = {
                "conv1": init_conv(next(keys), planes, inplanes, (3, 3, 3)),
                "bn1": init_bn(planes),
                "conv2": init_conv(next(keys), planes, planes, (3, 3, 3)),
                "bn2": init_bn(planes),
                "stride": s,
            }
            if s != 1 or inplanes != planes:           # shortcut_type 'B'
                blk["down_conv"] = init_conv(next(keys), planes, inplanes, (1, 1, 1))
                blk["down_bn"] = init_bn(planes)
            blocks.append(blk)
            inplanes = planes
        layer_params.append(blocks)
    params["layers"] = layer_params
    fan_in = 512                                       # BasicBlock.expansion == 1
    bound = 1.0 / math.sqrt(fan_in)
    kw_, kb_ = jax.random.split(next(keys))
    params["fc_w"] = jax.random.uniform(kw_, (num_classes, fan_in), jnp.float32,
                                        -bound, bound)
    params["fc_b"] = jax.random.uniform(kb_, (num_classes,), jnp.float32,
                                        -bound, bound)
    return params


def fold_bn(bn):
    scale = bn["gamma"] / jnp.sqrt(bn["var"] + bn["eps"])
    bias = bn["beta"] - bn["mean"] * scale
    return scale, bias


def _prep_conv(w, bn, cin_phys, cout_phys):
    """Prepack a conv+bn: B:(kvol_pad*cin_phys, cout_phys) bf16, folded scale/bias."""
    cout, cin, kd, kh, kw = w.shape
    kvol = kd * kh * kw
    kvol_pad = _kvol_padded(kvol, cin_phys)
    wt = jnp.transpose(w, (2, 3, 4, 1, 0))                      # (kd,kh,kw,cin,cout)
    wt = jnp.pad(wt, ((0, 0), (0, 0), (0, 0),
                      (0, cin_phys - cin), (0, cout_phys - cout)))
    B = wt.reshape(kvol * cin_phys, cout_phys)
    if kvol_pad > kvol:
        B = jnp.pad(B, ((0, (kvol_pad - kvol) * cin_phys), (0, 0)))
    scale, bias = fold_bn(bn)
    scale = jnp.pad(scale, (0, cout_phys - cout))
    bias = jnp.pad(bias, (0, cout_phys - cout))
    return dict(B=B.astype(jnp.bfloat16),
                scale=scale.astype(jnp.float32), bias=bias.astype(jnp.float32),
                ksize=(kd, kh, kw), kvol_pad=kvol_pad,
                cin_phys=cin_phys, cout_phys=cout_phys)


def prepare_inference_params(params):
    ip = {"conv1": _prep_conv(params["conv1"], params["bn1"],
                              cin_phys=3, cout_phys=128)}
    cur = 128
    layer_ip = []
    for blocks in params["layers"]:
        blocks_ip = []
        for blk in blocks:
            planes = blk["conv1"].shape[0]
            cout_phys = max(planes, 128)
            d = {"stride": blk["stride"],
                 "conv1": _prep_conv(blk["conv1"], blk["bn1"], cur, cout_phys),
                 "conv2": _prep_conv(blk["conv2"], blk["bn2"], cout_phys, cout_phys)}
            if "down_conv" in blk:
                d["down"] = _prep_conv(blk["down_conv"], blk["down_bn"], cur, cout_phys)
            blocks_ip.append(d)
            cur = cout_phys
        layer_ip.append(blocks_ip)
    ip["layers"] = layer_ip
    ip["fc_w"] = params["fc_w"].T.astype(jnp.bfloat16)          # (512, num_classes)
    ip["fc_b"] = params["fc_b"].astype(jnp.float32)
    return ip


# ----------------------------------------------------------------------------
# Forward pass (semantics of ResNet.forward with BasicBlock)
# ----------------------------------------------------------------------------

def basic_block_forward(x, blk):
    s = blk["stride"]
    out = conv3d_bn_act(x, blk["conv1"], (s, s, s), (1, 1, 1), relu=True)
    if "down" in blk:
        residual = conv3d_bn_act(x, blk["down"], (s, s, s), (0, 0, 0), relu=False)
    else:
        residual = x
    # conv2 + bn2 + residual add + relu fused into a single GEMM epilogue.
    return conv3d_bn_act(out, blk["conv2"], (1, 1, 1), (1, 1, 1),
                         relu=True, residual=residual)


def resnet_forward(x_ncdhw, iparams, sample_size, sample_duration, last_fc=True):
    # layout: PyTorch NCDHW input -> NDHWC internally; activations carried in bf16.
    x = jnp.transpose(x_ncdhw, (0, 2, 3, 4, 1)).astype(jnp.bfloat16)
    x = conv3d_bn_act(x, iparams["conv1"], (1, 2, 2), (3, 3, 3), relu=True)
    x = max_pool3d(x, (3, 3, 3), (2, 2, 2), (1, 1, 1))
    for blocks in iparams["layers"]:
        for blk in blocks:
            x = basic_block_forward(x, blk)
    last_duration = int(math.ceil(sample_duration / 16))
    last_size = int(math.ceil(sample_size / 32))
    x = avg_pool3d(x, (last_duration, last_size, last_size))
    Nb = x.shape[0]
    # torch's .view flattens channel-first; match it (spatial dims are 1x1x1 here).
    x = jnp.transpose(x, (0, 4, 1, 2, 3)).reshape(Nb, -1)
    if last_fc:
        num_classes = iparams["fc_w"].shape[1]
        x = fused_gemm(x, iparams["fc_w"],
                       jnp.ones(num_classes, jnp.float32), iparams["fc_b"],
                       relu=False, out_dtype=jnp.float32)
    return x


# ----------------------------------------------------------------------------
# Demo
# ----------------------------------------------------------------------------

if __name__ == "__main__":
    key = jax.random.PRNGKey(0)
    kp, kx = jax.random.split(key)

    # ResNet(BasicBlock, [1,1,1,1], sample_size=32, sample_duration=8, num_classes=16)
    sample_size = 32
    sample_duration = 8
    num_classes = 16
    params = make_resnet_params(kp, layers=[1, 1, 1, 1], num_classes=num_classes)
    iparams = prepare_inference_params(params)

    # PyTorch-style input: (N, C=3, D, H, W)
    x = jax.random.normal(kx, (2, 3, sample_duration, sample_size, sample_size),
                          jnp.float32)

    out = resnet_forward(x, iparams, sample_size, sample_duration, last_fc=True)
    out = jax.block_until_ready(out)
    assert out.shape == (2, num_classes), out.shape
    assert bool(jnp.all(jnp.isfinite(out)))
    print("KERNEL_OK")
</pallas_src>

<mosaic_0001>
module attributes {stable_mosaic.version = 11 : i64} {
  func.func @kernel(%arg0: i32, %arg1: i32, %arg2: i32, %arg3: memref<512x1152xbf16, #tpu.memory_space<vmem>>, %arg4: memref<1152x128xbf16, #tpu.memory_space<vmem>>, %arg5: memref<1x128xf32, #tpu.memory_space<vmem>>, %arg6: memref<1x128xf32, #tpu.memory_space<vmem>>, %arg7: memref<512x128xbf16, #tpu.memory_space<vmem>>) attributes {dimension_semantics = [#tpu.dimension_semantics<parallel>, #tpu.dimension_semantics<parallel>, #tpu.dimension_semantics<arbitrary>], iteration_bounds = array<i64: 8, 1, 1>, scalar_prefetch = 0 : i64, scratch_operands = 0 : i64, tpu.core_type = #tpu.core_type<tc>, window_params = [{transform_indices = @transform_0, window_bounds = array<i64: 512, 1152>}, {transform_indices = @transform_1, window_bounds = array<i64: 1152, 128>}, {transform_indices = @transform_2, window_bounds = array<i64: 1, 128>}, {transform_indices = @transform_3, window_bounds = array<i64: 1, 128>}, {transform_indices = @transform_4, window_bounds = array<i64: 512, 128>}]} {
    %c0 = arith.constant 0 : index
    %c0_0 = arith.constant 0 : index
    %0 = vector.load %arg3[%c0, %c0_0] : memref<512x1152xbf16, #tpu.memory_space<vmem>>, vector<512x1152xbf16>
    %c0_1 = arith.constant 0 : index
    %c0_2 = arith.constant 0 : index
    %1 = vector.load %arg4[%c0_1, %c0_2] : memref<1152x128xbf16, #tpu.memory_space<vmem>>, vector<1152x128xbf16>
    %cst = arith.constant dense<0.000000e+00> : vector<512x128xf32>
    %2 = tpu.matmul %0, %1, %cst {dimension_numbers = #tpu.dot_dimension_numbers<[1], [0], [0], [1], [0, 0, 1, 1], [], []>} : vector<512x1152xbf16>, vector<1152x128xbf16>, vector<512x128xf32> -> vector<512x128xf32>
    %c0_3 = arith.constant 0 : index
    %c0_4 = arith.constant 0 : index
    %3 = vector.load %arg5[%c0_3, %c0_4] : memref<1x128xf32, #tpu.memory_space<vmem>>, vector<1x128xf32>
    %4 = vector.broadcast %3 : vector<1x128xf32> to vector<512x128xf32>
    %5 = arith.mulf %2, %4 : vector<512x128xf32>
    %c0_5 = arith.constant 0 : index
    %c0_6 = arith.constant 0 : index
    %6 = vector.load %arg6[%c0_5, %c0_6] : memref<1x128xf32, #tpu.memory_space<vmem>>, vector<1x128xf32>
    %7 = vector.broadcast %6 : vector<1x128xf32> to vector<512x128xf32>
    %8 = arith.addf %5, %7 : vector<512x128xf32>
    %cst_7 = arith.constant 0.000000e+00 : f32
    %9 = vector.broadcast %cst_7 : f32 to vector<512x128xf32>
    %10 = arith.maximumf %8, %9 : vector<512x128xf32>
    %11 = arith.truncf %10 : vector<512x128xf32> to vector<512x128xbf16>
    %c0_8 = arith.constant 0 : index
    %c0_9 = arith.constant 0 : index
    %12 = vector.load %arg7[%c0_8, %c0_9] : memref<512x128xbf16, #tpu.memory_space<vmem>>, vector<512x128xbf16>
    tpu.vector_store %arg7[%c0_8, %c0_9], %11 {strides = array<i32>} : memref<512x128xbf16, #tpu.memory_space<vmem>>, vector<512x128xbf16>,
    return
  }
  func.func @transform_0(%arg0: i32, %arg1: i32, %arg2: i32) -> (i32, i32) {
    %c0_i32 = arith.constant 0 : i32
    return %arg0, %arg2 : i32, i32
  }
  func.func @transform_1(%arg0: i32, %arg1: i32, %arg2: i32) -> (i32, i32) {
    %c0_i32 = arith.constant 0 : i32
    return %arg2, %arg1 : i32, i32
  }
  func.func @transform_2(%arg0: i32, %arg1: i32, %arg2: i32) -> (i32, i32) {
    %c0_i32 = arith.constant 0 : i32
    %c0_i32_0 = arith.constant 0 : i32
    return %c0_i32, %arg1 : i32, i32
  }
  func.func @transform_3(%arg0: i32, %arg1: i32, %arg2: i32) -> (i32, i32) {
    %c0_i32 = arith.constant 0 : i32
    %c0_i32_0 = arith.constant 0 : i32
    return %c0_i32, %arg1 : i32, i32
  }
  func.func @transform_4(%arg0: i32, %arg1: i32, %arg2: i32) -> (i32, i32) {
    %c0_i32 = arith.constant 0 : i32
    return %arg0, %arg1 : i32, i32
  }
}

</mosaic_0001>

<bundles_post_ra>
// kernel: tpu_custom_call.1
= control target key start
LH: loop header
LB: loop body
LE: loop exit
PB: predicated region body
PF: predicated region fallthrough
CT: control target
= control target key end

     0   :  { %s7952_s0 = inlined_call_operand.hbm [shape: bf16[4096,1152], index: 0, kind: input, shape index: {}]   ;;  %s7953_s1 = inlined_call_operand.hbm [shape: bf16[1152,128], index: 1, kind: input, shape index: {}]   ;;  %s7954_s2 = inlined_call_operand.hbm [shape: f32[1,128], index: 2, kind: input, shape index: {}]   ;;  %s7955_s3 = inlined_call_operand.hbm [shape: f32[1,128], index: 3, kind: input, shape index: {}]   ;;  %s7956_s4 = inlined_call_operand.hbm [shape: bf16[4096,128], index: 4, kind: output, shape index: {}]  }
   0x1   :  { %7960 = sst [smem:[#allocation49_spill]] %s7953_s1 }
   0x2   :  { %7961 = sst [smem:[#allocation50_spill]] %s7954_s2 }
   0x3   :  { %9 = vsyncpa [#allocation3], 0 }
   0x4   :  { %11 = vsyncpa [#allocation3 + $0x1], 0 }
   0x5   :  { %12 = vsyncpa [#allocation6], 0 }
   0x6   :  { %13 = vsyncpa [#allocation9], 0 }
   0x7   :  { %14 = vsyncpa [#allocation4], 0 }
   0x8   :  { %16 = vsyncpa [#allocation4 + $0x1], 0  ;;  %s6470_s15 = smov 0   ;;  %s6472_s16 = smov 0  }
   0x9   :  { %s6474_s17 = smov 0   ;;  %s6476_s18 = smov 0  }
   0xa   :  { %s6478_s19 = smov 0   ;;  %s6480_s20 = smov 0  }
   0xb LB: > { %s4792_s21 = sadd.s32 4294967295, %s6431_s20   ;;  %s4793_s22 = sadd.s32 4294967294, %s6431_s20   ;;  %s6431_s20 = sphi %s6480_s20, %s22_s20   ;;  %s6427_s19 = sphi %s6478_s19, %s8077_s19   ;;  %s6423_s18 = sphi %s6476_s18, %s8076_s18   ;;  %s6419_s17 = sphi %s6474_s17, %s8075_s17   ;;  %s6415_s16 = sphi %s6472_s16, %s8074_s16   ;;  %s6411_s15 = sphi %s6470_s15, %s8073_s15  }
   0xc   : > { %p63_p0 = scmp.ne.s32.totalorder %s6415_s16, %s6411_s15  ;;  %p6504_p1 = scmp.eq.s32.totalorder %s4792_s21, 0 }
   0xd   : > { %p6508_p2 = scmp.eq.s32.totalorder %s4792_s21, 7  ;;  %p175_p3 = scmp.eq.s32.totalorder %s4793_s22, 7 }
   0xe   : > { %s7962_s23 = scalar_select %p6504_p1, 1, 0 }
   0xf   : > { %p6514_p4 = por %p6504_p1, %p63_p0  ;;  %p4794_p5 = scmp.ge.s32.totalorder %s6431_s20, 1 }
  0x10   : > { %p6519_p6 = por %p175_p3, %p63_p0  ;;  %p182_p7 = scmp.lt.s32.totalorder %s6431_s20, 9 }
  0x11   : > { %s7964_s25 = scalar_select %p6514_p4, 1, 0 }
  0x12   : > { %s7965_s26 = scalar_select %p6519_p6, 1, 0 }
  0x13   : > { %p6524_p8 = pnand %p4794_p5, %p182_p7  ;;  %s6433_s28 = smov [#allocation5]  }
  0x14   : > { %s198_s29 = sshll.u32 %s6433_s28, 4  ;;  %s6434_s5 = smov [#allocation7]   ;;  %s199_s29 = int_to_ptr.vmem [resolvable:$true] %s198_s29 }
  0x15   : > { %p5665_p9 = pneg %p6524_p8  ;;  %s214_s6 = sshll.u32 %s6434_s5, 4  ;;  %s215_s6 = int_to_ptr.vmem [resolvable:$true] %s214_s6 }
  0x16   : > { %s6435_s7 = smov [#allocation8]   ;;  %s6248_s9 = scalar_lea.vmem %s199_s29, 9216 }
  0x17   : > { %p6532_p10 = pnand %p5665_p9, %p6504_p1  ;;  %s227_s8 = sshll.u32 %s6435_s7, 4  ;;  %s228_s8 = int_to_ptr.vmem [resolvable:$true] %s227_s8 }
  0x18   : > { %p6249_p12 = scmp.ne.s32.totalorder %s199_s29, %s6248_s9  ;;  %p6256_p3 = scmp.lt.s32.totalorder %s199_s29, %s199_s29 }
  0x19   : > { %p6239_p11 = pneg %p6532_p10  ;;  %p6257_p5 = scmp.lt.s32.totalorder %s6248_s9, %s6248_s9 }
  0x1b   : > { %p6251_p13 = pnand %p6249_p12, %p6239_p11  ;;  %p6258_p7 = por %p6257_p5, %p6256_p3 }
  0x1d   : > { %p6252_p0 = pneg %p6251_p13 }
  0x1f   : > { %p6259_p9 = pnand %p6258_p7, %p6252_p0 }
  0x21   : > { %6262 = shalt.err (!%p6259_p9)
}
  0x22   : > { %s6436_s10 = smov 64   ;;  %s6437_s11 = smov 4  }
  0x23   : > { %s7968_s1 = sld [smem:[#allocation49_spill]]  ;;  %s6274_s14 = scalar_lea.vmem %s215_s6, 16 }
  0x24   : > { %p6275_p6 = scmp.ne.s32.totalorder %s215_s6, %s6274_s14  ;;  %s6281_s21 = scalar_lea.vmem %s215_s6, 32 }
  0x25   : > { %p6282_p1 = scmp.lt.s32.totalorder %s215_s6, %s215_s6  ;;  %p6283_p3 = scmp.lt.s32.totalorder %s6281_s21, %s6274_s14 }
  0x26   : > { %p6277_p12 = pnand %p6275_p6, %p6239_p11 }
  0x27   : > { %p6284_p0 = por %p6283_p3, %p6282_p1 }
  0x28   : > { %p6278_p13 = pneg %p6277_p12 }
  0x29   : > { %5668 = dma.hbm_to_vmem [thread:$0]  (!%p6532_p10), %s7968_s1, 9216, %s199_s29, [#allocation6], %s6436_s10, %s6436_s10, %s6437_s11  }
  0x2a   : > { %p6285_p5 = pnand %p6284_p0, %p6278_p13 }
  0x2c   : > { %6288 = shalt.err (!%p6285_p5)
}
  0x2d   : > { %s7969_s2 = sld [smem:[#allocation50_spill]]  ;;  %s6300_s29 = scalar_lea.vmem %s228_s8, 16 }
  0x2e   : > { %p6301_p7 = scmp.ne.s32.totalorder %s228_s8, %s6300_s29  ;;  %s6307_s5 = scalar_lea.vmem %s228_s8, 32 }
  0x2f   : > { %p6308_p12 = scmp.lt.s32.totalorder %s228_s8, %s228_s8  ;;  %p6309_p4 = scmp.lt.s32.totalorder %s6307_s5, %s6300_s29 }
  0x30   : > { %p6303_p6 = pnand %p6301_p7, %p6239_p11 }
  0x31   : > { %p6310_p1 = por %p6309_p4, %p6308_p12 }
  0x32   : > { %p6304_p9 = pneg %p6303_p6 }
  0x33   : > { %5671 = dma.hbm_to_vmem [thread:$0]  (!%p6532_p10), %s7969_s2, 16, %s215_s6, [#allocation6]  }
  0x34   : > { %p6311_p13 = pnand %p6310_p1, %p6304_p9 }
  0x36   : > { %6314 = shalt.err (!%p6311_p13)
}
  0x37   : > { %5674 = dma.hbm_to_vmem [thread:$0]  (!%p6532_p10), %s7955_s3, 16, %s228_s8, [#allocation9]  }
  0x38   : > { %s50_s6 = sadd.s32 1, %s6419_s17  ;;  %s41_s10 = sadd.s32 1, %s6427_s19 }
  0x39   : > { %p57_p4 = scmp.ne.s32.totalorder %s6419_s17, %s6415_s16  ;;  %p43_p11 = scmp.ge.s32.totalorder %s41_s10, 8 }
  0x3a   : > { %p58_p3 = scmp.eq.s32.totalorder %s6431_s20, 0  ;;  %p5686_p5 = scmp.lt.s32.totalorder %s6431_s20, 8 }
  0x3b   : > { %p6569_p0 = por %p6508_p2, %p57_p4  ;;  %s8079_s10 = smov (%p43_p11, %s41_s10), 0 }
  0x3c   : > { %p59_p7 = por %p58_p3, %p57_p4  ;;  %s238_s11 = sand.u32 1, %s6419_s17  }
  0x3d   : > { %s45_s12 = ssub.s32 %s6427_s19, %s8079_s10  ;;  %s5646_s8 = smul.u32 2304, %s238_s11 }
  0x3e   : > { %p48_p6 = scmp.eq.s32.totalorder %s45_s12, 0  ;;  %s5647_s13 = smul.u32 36864, %s6427_s19 }
  0x3f   : > { %p6580_p10 = pnand %p5686_p5, %p59_p7  ;;  %s242_s29 = scalar_lea.vmem [#allocation2], %s5646_s8 }
  0x40   : > { %s6585_s24 = scalar_select %p48_p6, %s6419_s17, %s50_s6  }
  0x41   : > { %s251_s28 = scalar_lea.hbm %s7952_s0, %s5647_s13  ;;  %s252_s5 = sshll.u32 %s242_s29, 4  ;;  %s253_s5 = int_to_ptr.vmem [resolvable:$true] %s252_s5 }
  0x42   : > { %s239_s7 = scalar_lea.sflag [#allocation3], %s238_s11  ;;  %p6317_p2 = pneg %p6580_p10 }
  0x43   : > { %s6328_s9 = scalar_lea.vmem %s253_s5, 36864  ;;  %s6438_s12 = smov [#allocation2]  }
  0x44   : > { %p6329_p9 = scmp.ne.s32.totalorder %s253_s5, %s6328_s9  ;;  %s6333_s1 = sshll.u32 %s6438_s12, 4  ;;  %s6334_s1 = int_to_ptr.vmem [resolvable:$false] %s6333_s1 }
  0x45   : > { %s6335_s2 = scalar_lea.vmem %s6334_s1, 73728  ;;  %p6336_p13 = scmp.lt.s32.totalorder %s253_s5, %s6334_s1 }
  0x46   : > { %p6331_p12 = pnand %p6329_p9, %p6317_p2  ;;  %p6337_p4 = scmp.lt.s32.totalorder %s6335_s2, %s6328_s9 }
  0x48   : > { %p6332_p1 = pneg %p6331_p12  ;;  %p6338_p11 = por %p6337_p4, %p6336_p13 }
  0x4a   : > { %p6339_p3 = pnand %p6338_p11, %p6332_p1 }
  0x4c   : > { %6342 = shalt.err (!%p6339_p3)
}
  0x4d   : > { %s6439_s6 = smov 576   ;;  %s6440_s8 = smov 36  }
  0x4e   : > { %5678 = dma.hbm_to_vmem [thread:$0]  (!%p6580_p10), %s251_s28, 36864, %s253_s5, %s239_s7, %s6439_s6, %s6439_s6, %s6440_s8  }
  0x4f   : > { %264 = sbr.rel (%p6524_p8) target bundleno = 950 (0x3b6), region = 36 }
  0x54   : > { %s6597_s11 = sand.u32 1, %s6415_s16   ;;  %p7972_p5 = scmp.ne.s32.totalorder %s7964_s25, 0 }
  0x55   : > { %s5648_s13 = smul.u32 2304, %s6597_s11  ;;  %s267_s1 = scalar_lea.sflag [#allocation3], %s6597_s11 }
  0x57   : > { %s6601_s2 = scalar_lea.vmem [#allocation2], %s5648_s13 }
  0x58   : > { %6394 = dma.done.wait (%p7972_p5), %s267_s1, 36864  }
  0x59   : > { %6396 = vsyncadd (%p7972_p5), %s267_s1, 4294930432  ;;  %p7973_p7 = scmp.ne.s32.totalorder %s7962_s23, 0 }
  0x5b   : > { %6398 = dma.done.wait (%p7973_p7), [#allocation6], 9232  }
  0x5c   : > { %6400 = vsyncadd (%p7973_p7), [#allocation6], 4294958064 }
  0x5d   : > { %6402 = dma.done.wait (%p7973_p7), [#allocation9], 16  }
  0x5e   : > { %6404 = vsyncadd (%p7973_p7), [#allocation9], 4294967280  ;;  %v6441_v0 = vmov 0   ;;  %v5749_v1 = vld [vmem:[#allocation5 + $0x38] sm:$0xff]   ;;  %v5750_v2 = vld [vmem:[#allocation5 + $0x30] sm:$0xff]   ;;  %s4806_s23 = sshll.u32 %s6597_s11, 8 }
  0x5f   : > { %2680 = vmatprep.subr.bf16.mxu0 %v6441_v0  ;;  %5614 = vmatprep.subr.bf16.mxu1 %v6441_v0  ;;  %v5751_v3 = vld [vmem:[#allocation5 + $0x28] sm:$0xff]   ;;  %v5752_v4 = vld [vmem:[#allocation5 + $0x20] sm:$0xff]   ;;  %v5753_v5 = vld [vmem:[#allocation5 + $0x18] sm:$0xff]   ;;  %s7626_s25 = scalar_lea.vmem [#allocation10], %s4806_s23  ;;  %s5302_s27 = sshll.u32 %s6423_s18, 12 }
  0x60   : > { %2681 = vmatpush1.bf16.msra.mxu0 %v5749_v1  ;;  %5630 = vmatpush1.bf16.msra.mxu1 %v5749_v1  ;;  %v5767_v6 = vld [vmem:[%s6601_s2 + $0x4] ss:$36 sps:$4 sm:$0xff]   ;;  %v5754_v7 = vld [vmem:[#allocation5 + $0x10] sm:$0xff]   ;;  %v5757_v11 = vld [vmem:[#allocation5 + $0x78] sm:$0xff]   ;;  %s4666_s14 = sshll.u32 %s7626_s25, 4  ;;  %s7901_s28 = scalar_lea.hbm %s7956_s4, %s5302_s27  ;;  %s7903_s14 = int_to_ptr.vmem [resolvable:$true] %s4666_s14 }
  0x61   : > { %2682 = vmatprep.subr.bf16.mxu0 %v6441_v0  ;;  %5615 = vmatprep.subr.bf16.mxu1 %v6441_v0  ;;  %v5770_v8 = vld [vmem:[%s6601_s2 + $0x6c4] ss:$36 sps:$4 sm:$0xff]   ;;  %v5758_v12 = vld [vmem:[#allocation5 + $0x70] sm:$0xff]   ;;  %v5761_v15 = vld [vmem:[#allocation5 + $0x58] sm:$0xff]   ;;  %s4652_s18 = scalar_lea.sflag [#allocation4], %s6597_s11  ;;  %s6343_s29 = scalar_lea.vmem %s7903_s14, 4096 }
  0x62   : > { %2712 = vmatprep.mubr.bf16.mxu0 %v5767_v6  ;;  %2904 = vmatprep.mubr.bf16.mxu1 %v5770_v8  ;;  %v5755_v9 = vld [vmem:[#allocation5 + $0x8] sm:$0xff]   ;;  %v5756_v10 = vld [vmem:[#allocation5] sm:$0xff]   ;;  %v5762_v16 = vld [vmem:[#allocation5 + $0x50] sm:$0xff]   ;;  %p6344_p8 = scmp.ne.s32.totalorder %s7903_s14, %s6343_s29  ;;  %s6442_s5 = smov [#allocation10]  }
  0x63   : > { %v5759_v13 = vld [vmem:[#allocation5 + $0x68] sm:$0xff]   ;;  %v5760_v14 = vld [vmem:[#allocation5 + $0x60] sm:$0xff]   ;;  %v5771_v21 = vld [vmem:[#allocation5 + $0xb8] sm:$0xff]   ;;  %s6347_s7 = sshll.u32 %s6442_s5, 4  ;;  %s6348_s7 = int_to_ptr.vmem [resolvable:$false] %s6347_s7 }
  0x64   : > { %2683 = vmatpush1.bf16.msra.mxu0 %v5750_v2  ;;  %5631 = vmatpush1.bf16.msra.mxu1 %v5750_v2  ;;  %v5763_v17 = vld [vmem:[#allocation5 + $0x48] sm:$0xff]   ;;  %v5764_v18 = vld [vmem:[#allocation5 + $0x40] sm:$0xff]   ;;  %v5772_v22 = vld [vmem:[#allocation5 + $0x138] sm:$0xff]   ;;  %p6345_p6 = pnand %p6344_p8, %p6569_p0  ;;  %s6349_s9 = scalar_lea.vmem %s6348_s7, 8192 }
  0x65   : > { %2684 = vmatprep.subr.bf16.mxu0 %v6441_v0  ;;  %5616 = vmatprep.subr.bf16.mxu1 %v6441_v0  ;;  %v5765_v19 = vld [vmem:[%s6601_s2] ss:$36 sps:$4 sm:$0xff]   ;;  %v5774_v23 = vld [vmem:[%s6601_s2 + $0x4c] ss:$36 sps:$4 sm:$0xff]   ;;  %v5783_v30 = vld [vmem:[%s6601_s2 + $0x94] ss:$36 sps:$4 sm:$0xff]   ;;  %p6350_p2 = scmp.lt.s32.totalorder %s7903_s14, %s6348_s7  ;;  %p6351_p9 = scmp.lt.s32.totalorder %s6349_s9, %s6343_s29 }
  0x66   : > { %v5768_v20 = vld [vmem:[%s6601_s2 + $0x6c0] ss:$36 sps:$4 sm:$0xff]   ;;  %v5776_v24 = vld [vmem:[%s6601_s2 + $0x70c] ss:$36 sps:$4 sm:$0xff]   ;;  %v5785_v31 = vld [vmem:[%s6601_s2 + $0x754] ss:$36 sps:$4 sm:$0xff]   ;;  %p6346_p10 = pneg %p6345_p6 }
  0x67   : > { %v5773_v25 = vld [vmem:[#allocation5 + $0xb0] sm:$0xff]   ;;  %v5778_v27 = vld [vmem:[%s6601_s2 + $0x48] ss:$36 sps:$4 sm:$0xff]   ;;  %v5781_v33 = vld [vmem:[#allocation5 + $0xa0] sm:$0xff]   ;;  %p6352_p12 = por %p6351_p9, %p6350_p2 }
  0x68   : > { %2685 = vmatpush1.bf16.msra.mxu0 %v5751_v3  ;;  %5632 = vmatpush1.bf16.msra.mxu1 %v5751_v3  ;;  %v5782_v26 = vld [vmem:[#allocation5 + $0x130] sm:$0xff]   ;;  %v5779_v28 = vld [vmem:[%s6601_s2 + $0x708] ss:$36 sps:$4 sm:$0xff]   ;;  %v5808_v36 = vld [vmem:[#allocation5 + $0x120] sm:$0xff]  }
  0x69   : > { %2686 = vmatprep.subr.bf16.mxu0 %v6441_v0  ;;  %5617 = vmatprep.subr.bf16.mxu1 %v6441_v0  ;;  %v5780_v29 = vld [vmem:[#allocation5 + $0xa8] sm:$0xff]   ;;  %v5787_v34 = vld [vmem:[%s6601_s2 + $0x90] ss:$36 sps:$4 sm:$0xff]   ;;  %v5789_v37 = vld [vmem:[#allocation5 + $0x98] sm:$0xff]   ;;  %p6353_p1 = pnand %p6352_p12, %p6346_p10 }
  0x6a   : > { %v5798_v32 = vld [vmem:[#allocation5 + $0x128] sm:$0xff]   ;;  %v5788_v35 = vld [vmem:[%s6601_s2 + $0x750] ss:$36 sps:$4 sm:$0xff]   ;;  %v5791_v38 = vld [vmem:[%s6601_s2 + $0xdc] ss:$36 sps:$4 sm:$0xff]  }
  0x6b   : > { %v5793_v39 = vld [vmem:[%s6601_s2 + $0x79c] ss:$36 sps:$4 sm:$0xff]   ;;  %v5790_v41 = vld [vmem:[#allocation5 + $0x90] sm:$0xff]   ;;  %v5797_v44 = vld [vmem:[#allocation5 + $0x88] sm:$0xff]  }
  0x6c   : > { %2687 = vmatpush1.bf16.msra.mxu0 %v5752_v4  ;;  %5633 = vmatpush1.bf16.msra.mxu1 %v5752_v4  ;;  %v5824_v40 = vld [vmem:[#allocation5 + $0x118] sm:$0xff]   ;;  %v5800_v45 = vld [vmem:[%s6601_s2 + $0x124] ss:$36 sps:$4 sm:$0xff]   ;;  %v5834_v47 = vld [vmem:[#allocation5 + $0x110] sm:$0xff]  }
  0x6d   : > { %2688 = vmatprep.subr.bf16.mxu0 %v6441_v0  ;;  %5618 = vmatprep.subr.bf16.mxu1 %v6441_v0  ;;  %v5795_v42 = vld [vmem:[%s6601_s2 + $0xd8] ss:$36 sps:$4 sm:$0xff]   ;;  %v5802_v46 = vld [vmem:[%s6601_s2 + $0x7e4] ss:$36 sps:$4 sm:$0xff]   ;;  %v5809_v53 = vld [vmem:[%s6601_s2 + $0x16c] ss:$36 sps:$4 sm:$0xff]  }
  0x6e   : > { %v5796_v43 = vld [vmem:[%s6601_s2 + $0x798] ss:$36 sps:$4 sm:$0xff]   ;;  %v5799_v48 = vld [vmem:[#allocation5 + $0x80] sm:$0xff]   ;;  %v5848_v51 = vld [vmem:[#allocation5 + $0x108] sm:$0xff]  }
  0x6f   : > { %v5804_v49 = vld [vmem:[%s6601_s2 + $0x120] ss:$36 sps:$4 sm:$0xff]   ;;  %v5806_v52 = vld [vmem:[#allocation5 + $0xf8] sm:$0xff]   ;;  %v5811_v54 = vld [vmem:[%s6601_s2 + $0x82c] ss:$36 sps:$4 sm:$0xff]  }
  0x70   : > { %2689 = vmatpush1.bf16.msra.mxu0 %v5753_v5  ;;  %5634 = vmatpush1.bf16.msra.mxu1 %v5753_v5  ;;  %v5805_v50 = vld [vmem:[%s6601_s2 + $0x7e0] ss:$36 sps:$4 sm:$0xff]   ;;  %v5807_v56 = vld [vmem:[#allocation5 + $0xf0] sm:$0xff]   ;;  %v5813_v57 = vld [vmem:[%s6601_s2 + $0x168] ss:$36 sps:$4 sm:$0xff]  }
  0x71   : > { %2690 = vmatprep.subr.bf16.mxu0 %v6441_v0  ;;  %5619 = vmatprep.subr.bf16.mxu1 %v6441_v0  ;;  %v5856_v55 = vld [vmem:[#allocation5 + $0x100] sm:$0xff]   ;;  %v5814_v58 = vld [vmem:[%s6601_s2 + $0x828] ss:$36 sps:$4 sm:$0xff]   ;;  %v5817_v60 = vld [vmem:[%s6601_s2 + $0x1b4] ss:$36 sps:$4 sm:$0xff]  }
  0x72   : > { %v5815_v59 = vld [vmem:[#allocation5 + $0xe8] sm:$0xff]   ;;  %v5819_v61 = vld [vmem:[%s6601_s2 + $0x874] ss:$36 sps:$4 sm:$0xff]   ;;  %v5816_v63 = vld [vmem:[#allocation5 + $0xe0] sm:$0xff]  }
  0x73   : > { %v5869_v62 = vld [vmem:[#allocation5 + $0x178] sm:$0xff]   ;;  %v5821_v1 = vld [vmem:[%s6601_s2 + $0x1b0] ss:$36 sps:$4 sm:$0xff]  }
  0x74   : > { %2691 = vmatpush1.bf16.msra.mxu0 %v5754_v7  ;;  %5635 = vmatpush1.bf16.msra.mxu1 %v5754_v7  ;;  %v5822_v2 = vld [vmem:[%s6601_s2 + $0x870] ss:$36 sps:$4 sm:$0xff]   ;;  %v5823_v4 = vld [vmem:[#allocation5 + $0xd8] sm:$0xff]   ;;  %v5891_v7 = vld [vmem:[#allocation5 + $0x168] sm:$0xff]  }
  0x75   : > { %2692 = vmatprep.subr.bf16.mxu0 %v6441_v0  ;;  %5620 = vmatprep.subr.bf16.mxu1 %v6441_v0  ;;  %v5877_v3 = vld [vmem:[#allocation5 + $0x170] sm:$0xff]   ;;  %v5826_v5 = vld [vmem:[%s6601_s2 + $0x1fc] ss:$36 sps:$4 sm:$0xff]  }
  0x76   : > { %v5828_v6 = vld [vmem:[%s6601_s2 + $0x8bc] ss:$36 sps:$4 sm:$0xff]   ;;  %v5825_v8 = vld [vmem:[#allocation5 + $0xd0] sm:$0xff]  }
  0x78   : > { %2693 = vmatpush1.bf16.msra.mxu0 %v5755_v9  ;;  %5636 = vmatpush1.bf16.msra.mxu1 %v5755_v9  ;;  %v5830_v9 = vld [vmem:[%s6601_s2 + $0x1f8] ss:$36 sps:$4 sm:$0xff]  }
  0x79   : > { %2694 = vmatprep.subr.bf16.mxu0 %v6441_v0  ;;  %5621 = vmatprep.subr.bf16.mxu1 %v6441_v0 }
  0x7c   : > { %2695 = vmatpush1.bf16.msra.mxu0 %v5756_v10  ;;  %5637 = vmatpush1.bf16.msra.mxu1 %v5756_v10  ;;  %v5831_v10 = vld [vmem:[%s6601_s2 + $0x8b8] ss:$36 sps:$4 sm:$0xff]  }
  0x7d   : > { %2696 = vmatprep.subr.bf16.mxu0 %v6441_v0  ;;  %5622 = vmatprep.subr.bf16.mxu1 %v6441_v0 }
  0x80   : > { %2697 = vmatpush2.bf16.msra.mxu0 %v5757_v11  ;;  %5638 = vmatpush2.bf16.msra.mxu1 %v5757_v11  ;;  %v5832_v11 = vld [vmem:[#allocation5 + $0xc8] sm:$0xff]  }
  0x81   : > { %2698 = vmatprep.subr.bf16.mxu0 %v6441_v0  ;;  %5623 = vmatprep.subr.bf16.mxu1 %v6441_v0 }
  0x84   : > { %2699 = vmatpush2.bf16.msra.mxu0 %v5758_v12  ;;  %5639 = vmatpush2.bf16.msra.mxu1 %v5758_v12  ;;  %v5835_v12 = vld [vmem:[%s6601_s2 + $0x244] ss:$36 sps:$4 sm:$0xff]  }
  0x85   : > { %2700 = vmatprep.subr.bf16.mxu0 %v6441_v0  ;;  %5624 = vmatprep.subr.bf16.mxu1 %v6441_v0 }
  0x88   : > { %2701 = vmatpush2.bf16.msra.mxu0 %v5759_v13  ;;  %5640 = vmatpush2.bf16.msra.mxu1 %v5759_v13  ;;  %v5839_v13 = vld [vmem:[%s6601_s2 + $0xc] ss:$36 sps:$4 sm:$0xff]  }
  0x89   : > { %2702 = vmatprep.subr.bf16.mxu0 %v6441_v0  ;;  %5625 = vmatprep.subr.bf16.mxu1 %v6441_v0 }
  0x8c   : > { %2703 = vmatpush2.bf16.msra.mxu0 %v5760_v14  ;;  %5641 = vmatpush2.bf16.msra.mxu1 %v5760_v14  ;;  %v5899_v14 = vld [vmem:[#allocation5 + $0x160] sm:$0xff]  }
  0x8d   : > { %2704 = vmatprep.subr.bf16.mxu0 %v6441_v0  ;;  %5626 = vmatprep.subr.bf16.mxu1 %v6441_v0 }
  0x90   : > { %2705 = vmatpush2.bf16.msra.mxu0 %v5761_v15  ;;  %5642 = vmatpush2.bf16.msra.mxu1 %v5761_v15  ;;  %v5833_v15 = vld [vmem:[#allocation5 + $0xc0] sm:$0xff]  }
  0x91   : > { %2706 = vmatprep.subr.bf16.mxu0 %v6441_v0  ;;  %5627 = vmatprep.subr.bf16.mxu1 %v6441_v0 }
  0x94   : > { %2707 = vmatpush2.bf16.msra.mxu0 %v5762_v16  ;;  %5643 = vmatpush2.bf16.msra.mxu1 %v5762_v16  ;;  %v5912_v16 = vld [vmem:[#allocation5 + $0x158] sm:$0xff]  }
  0x95   : > { %2708 = vmatprep.subr.bf16.mxu0 %v6441_v0  ;;  %5628 = vmatprep.subr.bf16.mxu1 %v6441_v0 }
  0x98   : > { %2709 = vmatpush2.bf16.msra.mxu0 %v5763_v17  ;;  %5644 = vmatpush2.bf16.msra.mxu1 %v5763_v17  ;;  %v5837_v17 = vld [vmem:[%s6601_s2 + $0x8] ss:$36 sps:$4 sm:$0xff]  }
  0x99   : > { %2710 = vmatprep.subr.bf16.mxu0 %v6441_v0  ;;  %5629 = vmatprep.subr.bf16.mxu1 %v6441_v0 }
  0x9c   : > { %2711 = vmatpush2.bf16.msra.mxu0 %v5764_v18  ;;  %5645 = vmatpush2.bf16.msra.mxu1 %v5764_v18  ;;  %v5840_v18 = vld [vmem:[%s6601_s2 + $0x240] ss:$36 sps:$4 sm:$0xff]  }
  0x9d   : > { %2969 = vmatprep.subr.bf16.mxu1 %v6441_v0  ;;  %3258 = vmatprep.subr.bf16.mxu0 %v6441_v0 }
  0x9f   : > { %2713 = vmatmul.mubr.bf16.vlgmr.msra.gmra.mxu0 %v5765_v19  ;;  %2905 = vmatmul.mubr.bf16.vlgmr.msra.gmra.mxu1 %v5768_v20  ;;  %v5841_v19 = vld [vmem:[#allocation5 + $0x1b8] sm:$0xff]   ;;  %v5842_v20 = vld [vmem:[%s6601_s2 + $0x28c] ss:$36 sps:$4 sm:$0xff]  }
  0xa0   : > { %2970 = vmatpush1.bf16.msra.mxu1 %v5771_v21  ;;  %3259 = vmatpush1.bf16.msra.mxu0 %v5772_v22  ;;  %v5844_v21 = vld [vmem:[%s6601_s2 + $0x54] ss:$36 sps:$4 sm:$0xff]  }
  0xa1   : > { %2971 = vmatprep.subr.bf16.mxu1 %v6441_v0  ;;  %2720 = vmatprep.mubr.bf16.mxu0 %v5774_v23  ;;  %v5855_v22 = vld [vmem:[#allocation5 + $0x1b0] sm:$0xff]  }
  0xa2   : > { %2912 = vmatprep.mubr.bf16.mxu1 %v5776_v24  ;;  %3260 = vmatprep.subr.bf16.mxu0 %v6441_v0  ;;  %v5920_v23 = vld [vmem:[#allocation5 + $0x150] sm:$0xff]   ;;  %v5846_v24 = vld [vmem:[%s6601_s2 + $0x288] ss:$36 sps:$4 sm:$0xff]  }
  0xa4   : > { %2972 = vmatpush1.bf16.msra.mxu1 %v5773_v25  ;;  %3261 = vmatpush1.bf16.msra.mxu0 %v5782_v26  ;;  %v5847_v25 = vld [vmem:[%s6601_s2 + $0x50] ss:$36 sps:$4 sm:$0xff]  }
  0xa5   : > { %2973 = vmatprep.subr.bf16.mxu1 %v6441_v0  ;;  %3262 = vmatprep.subr.bf16.mxu0 %v6441_v0  ;;  %v5849_v26 = vld [vmem:[%s6601_s2 + $0x2d4] ss:$36 sps:$4 sm:$0xff]  }
  0xa7   : > { %2721 = vmatmul.mubr.bf16.gmra.mxu0 %v5778_v27  ;;  %2913 = vmatmul.mubr.bf16.gmra.mxu1 %v5779_v28  ;;  %v5851_v27 = vld [vmem:[%s6601_s2 + $0x9c] ss:$36 sps:$4 sm:$0xff]   ;;  %v5870_v28 = vld [vmem:[#allocation5 + $0x1a8] sm:$0xff]  }
  0xa8   : > { %2974 = vmatpush1.bf16.msra.mxu1 %v5780_v29  ;;  %2728 = vmatprep.mubr.bf16.mxu0 %v5783_v30  ;;  %v5934_v29 = vld [vmem:[#allocation5 + $0x148] sm:$0xff]   ;;  %v5884_v30 = vld [vmem:[#allocation5 + $0x1a0] sm:$0xff]  }
  0xa9   : > { %2975 = vmatprep.subr.bf16.mxu1 %v6441_v0  ;;  %2920 = vmatprep.mubr.bf16.mxu1 %v5785_v31  ;;  %v5942_v31 = vld [vmem:[#allocation5 + $0x140] sm:$0xff]  }
  0xaa   : > { %3263 = vmatpush1.bf16.msra.mxu0 %v5798_v32  ;;  %v6723_v32 = vld [vmem:[#allocation5 + $0x238] sm:$0xff]  }
  0xab   : > { %3264 = vmatprep.subr.bf16.mxu0 %v6441_v0 }
  0xac   : > { %2976 = vmatpush1.bf16.msra.mxu1 %v5781_v33  ;;  %v5853_v33 = vld [vmem:[%s6601_s2 + $0x2d0] ss:$36 sps:$4 sm:$0xff]  }
  0xad   : > { %2977 = vmatprep.subr.bf16.mxu1 %v6441_v0 }
  0xae   : > { %3265 = vmatpush1.bf16.msra.mxu0 %v5808_v36  ;;  %v5859_v36 = vld [vmem:[%s6601_s2 + $0xe4] ss:$36 sps:$4 sm:$0xff]  }
  0xaf   : > { %2729 = vmatmul.mubr.bf16.gmra.mxu0 %v5787_v34  ;;  %2921 = vmatmul.mubr.bf16.gmra.mxu1 %v5788_v35  ;;  %v5854_v34 = vld [vmem:[%s6601_s2 + $0x98] ss:$36 sps:$4 sm:$0xff]  }
  0xb0   : > { %2978 = vmatpush1.bf16.msra.mxu1 %v5789_v37  ;;  %2736 = vmatprep.mubr.bf16.mxu0 %v5791_v38  ;;  %v5857_v35 = vld [vmem:[%s6601_s2 + $0x31c] ss:$36 sps:$4 sm:$0xff]   ;;  %v5913_v38 = vld [vmem:[#allocation5 + $0x190] sm:$0xff]  }
  0xb1   : > { %2979 = vmatprep.subr.bf16.mxu1 %v6441_v0  ;;  %2928 = vmatprep.mubr.bf16.mxu1 %v5793_v39  ;;  %v5898_v37 = vld [vmem:[#allocation5 + $0x198] sm:$0xff]  }
  0xb2   : > { %3266 = vmatprep.subr.bf16.mxu0 %v6441_v0  ;;  %v5861_v39 = vld [vmem:[%s6601_s2 + $0x318] ss:$36 sps:$4 sm:$0xff]  }
  0xb3   : > { %3267 = vmatpush1.bf16.msra.mxu0 %v5824_v40  ;;  %v5862_v40 = vld [vmem:[%s6601_s2 + $0xe0] ss:$36 sps:$4 sm:$0xff]  }
  0xb4   : > { %2980 = vmatpush1.bf16.msra.mxu1 %v5790_v41  ;;  %3268 = vmatprep.subr.bf16.mxu0 %v6441_v0  ;;  %v5863_v41 = vld [vmem:[%s6601_s2 + $0x364] ss:$36 sps:$4 sm:$0xff]  }
  0xb5   : > { %2981 = vmatprep.subr.bf16.mxu1 %v6441_v0 }
  0xb7   : > { %2737 = vmatmul.mubr.bf16.gmra.mxu0 %v5795_v42  ;;  %2929 = vmatmul.mubr.bf16.gmra.mxu1 %v5796_v43  ;;  %v5865_v42 = vld [vmem:[%s6601_s2 + $0x12c] ss:$36 sps:$4 sm:$0xff]  }
  0xb8   : > { %2982 = vmatpush1.bf16.msra.mxu1 %v5797_v44  ;;  %2744 = vmatprep.mubr.bf16.mxu0 %v5800_v45  ;;  %v5927_v43 = vld [vmem:[#allocation5 + $0x188] sm:$0xff]   ;;  %v5941_v44 = vld [vmem:[#allocation5 + $0x180] sm:$0xff]  }
  0xb9   : > { %2983 = vmatprep.subr.bf16.mxu1 %v6441_v0  ;;  %2936 = vmatprep.mubr.bf16.mxu1 %v5802_v46  ;;  %v5867_v45 = vld [vmem:[%s6601_s2 + $0x360] ss:$36 sps:$4 sm:$0xff]   ;;  %v5868_v46 = vld [vmem:[%s6601_s2 + $0x128] ss:$36 sps:$4 sm:$0xff]  }
  0xba   : > { %3269 = vmatpush1.bf16.msra.mxu0 %v5834_v47  ;;  %v5871_v47 = vld [vmem:[%s6601_s2 + $0x3ac] ss:$36 sps:$4 sm:$0xff]  }
  0xbb   : > { %3270 = vmatprep.subr.bf16.mxu0 %v6441_v0 }
  0xbc   : > { %2984 = vmatpush1.bf16.msra.mxu1 %v5799_v48  ;;  %v5873_v48 = vld [vmem:[%s6601_s2 + $0x174] ss:$36 sps:$4 sm:$0xff]  }
  0xbd   : > { %2985 = vmatprep.subr.bf16.mxu1 %v6441_v0 }
  0xbe   : > { %3271 = vmatpush1.bf16.msra.mxu0 %v5848_v51  ;;  %v5875_v51 = vld [vmem:[%s6601_s2 + $0x3a8] ss:$36 sps:$4 sm:$0xff]  }
  0xbf   : > { %2745 = vmatmul.mubr.bf16.gmra.mxu0 %v5804_v49  ;;  %2937 = vmatmul.mubr.bf16.gmra.mxu1 %v5805_v50  ;;  %v5956_v49 = vld [vmem:[#allocation5 + $0x1f8] sm:$0xff]   ;;  %v5969_v50 = vld [vmem:[#allocation5 + $0x1f0] sm:$0xff]  }
  0xc0   : > { %2986 = vmatpush2.bf16.msra.mxu1 %v5806_v52  ;;  %2752 = vmatprep.mubr.bf16.mxu0 %v5809_v53  ;;  %v5876_v52 = vld [vmem:[%s6601_s2 + $0x170] ss:$36 sps:$4 sm:$0xff]  }
  0xc1   : > { %2987 = vmatprep.subr.bf16.mxu1 %v6441_v0  ;;  %2944 = vmatprep.mubr.bf16.mxu1 %v5811_v54  ;;  %v5878_v53 = vld [vmem:[%s6601_s2 + $0x3f4] ss:$36 sps:$4 sm:$0xff]   ;;  %v5880_v54 = vld [vmem:[%s6601_s2 + $0x1bc] ss:$36 sps:$4 sm:$0xff]  }
  0xc2   : > { %3272 = vmatprep.subr.bf16.mxu0 %v6441_v0 }
  0xc3   : > { %3273 = vmatpush1.bf16.msra.mxu0 %v5856_v55  ;;  %v5983_v55 = vld [vmem:[#allocation5 + $0x1e8] sm:$0xff]  }
  0xc4   : > { %2988 = vmatpush2.bf16.msra.mxu1 %v5807_v56  ;;  %3274 = vmatprep.subr.bf16.mxu0 %v6441_v0  ;;  %v5882_v56 = vld [vmem:[%s6601_s2 + $0x3f0] ss:$36 sps:$4 sm:$0xff]  }
  0xc5   : > { %2989 = vmatprep.subr.bf16.mxu1 %v6441_v0 }
  0xc7   : > { %2753 = vmatmul.mubr.bf16.gmra.mxu0 %v5813_v57  ;;  %2945 = vmatmul.mubr.bf16.gmra.mxu1 %v5814_v58  ;;  %v5883_v57 = vld [vmem:[%s6601_s2 + $0x1b8] ss:$36 sps:$4 sm:$0xff]  }
  0xc8   : > { %2990 = vmatpush2.bf16.msra.mxu1 %v5815_v59  ;;  %2760 = vmatprep.mubr.bf16.mxu0 %v5817_v60  ;;  %v5885_v58 = vld [vmem:[%s6601_s2 + $0x43c] ss:$36 sps:$4 sm:$0xff]   ;;  %v5887_v59 = vld [vmem:[%s6601_s2 + $0x204] ss:$36 sps:$4 sm:$0xff]  }
  0xc9   : > { %2991 = vmatprep.subr.bf16.mxu1 %v6441_v0  ;;  %2952 = vmatprep.mubr.bf16.mxu1 %v5819_v61  ;;  %v5996_v60 = vld [vmem:[#allocation5 + $0x1e0] sm:$0xff]   ;;  %v5889_v61 = vld [vmem:[%s6601_s2 + $0x438] ss:$36 sps:$4 sm:$0xff]  }
  0xca   : > { %3275 = vmatpush2.bf16.msra.mxu0 %v5869_v62  ;;  %v5890_v62 = vld [vmem:[%s6601_s2 + $0x200] ss:$36 sps:$4 sm:$0xff]  }
  0xcb   : > { %3276 = vmatprep.subr.bf16.mxu0 %v6441_v0 }
  0xcc   : > { %2992 = vmatpush2.bf16.msra.mxu1 %v5816_v63  ;;  %v5892_v63 = vld [vmem:[%s6601_s2 + $0x484] ss:$36 sps:$4 sm:$0xff]  }
  0xcd   : > { %2993 = vmatprep.subr.bf16.mxu1 %v6441_v0 }
  0xce   : > { %3277 = vmatpush2.bf16.msra.mxu0 %v5877_v3  ;;  %v5897_v3 = vld [vmem:[%s6601_s2 + $0x248] ss:$36 sps:$4 sm:$0xff]  }
  0xcf   : > { %2761 = vmatmul.mubr.bf16.gmra.mxu0 %v5821_v1  ;;  %2953 = vmatmul.mubr.bf16.gmra.mxu1 %v5822_v2  ;;  %v5894_v1 = vld [vmem:[%s6601_s2 + $0x24c] ss:$36 sps:$4 sm:$0xff]   ;;  %v5896_v2 = vld [vmem:[%s6601_s2 + $0x480] ss:$36 sps:$4 sm:$0xff]  }
  0xd0   : > { %2994 = vmatpush2.bf16.msra.mxu1 %v5823_v4  ;;  %2768 = vmatprep.mubr.bf16.mxu0 %v5826_v5  ;;  %v5900_v4 = vld [vmem:[%s6601_s2 + $0x4cc] ss:$36 sps:$4 sm:$0xff]   ;;  %v5902_v5 = vld [vmem:[%s6601_s2 + $0x294] ss:$36 sps:$4 sm:$0xff]  }
  0xd1   : > { %2995 = vmatprep.subr.bf16.mxu1 %v6441_v0  ;;  %2960 = vmatprep.mubr.bf16.mxu1 %v5828_v6  ;;  %v6010_v6 = vld [vmem:[#allocation5 + $0x1d8] sm:$0xff]  }
  0xd2   : > { %3278 = vmatprep.subr.bf16.mxu0 %v6441_v0 }
  0xd3   : > { %3279 = vmatpush2.bf16.msra.mxu0 %v5891_v7  ;;  %v5904_v7 = vld [vmem:[%s6601_s2 + $0x4c8] ss:$36 sps:$4 sm:$0xff]  }
  0xd4   : > { %2996 = vmatpush2.bf16.msra.mxu1 %v5825_v8  ;;  %3280 = vmatprep.subr.bf16.mxu0 %v6441_v0  ;;  %v5905_v8 = vld [vmem:[%s6601_s2 + $0x290] ss:$36 sps:$4 sm:$0xff]  }
  0xd5   : > { %2997 = vmatprep.subr.bf16.mxu1 %v6441_v0 }
  0xd7   : > { %2769 = vmatmul.mubr.bf16.gmra.mxu0 %v5830_v9  ;;  %2961 = vmatmul.mubr.bf16.gmra.mxu1 %v5831_v10  ;;  %v5906_v9 = vld [vmem:[%s6601_s2 + $0x514] ss:$36 sps:$4 sm:$0xff]   ;;  %v5908_v10 = vld [vmem:[%s6601_s2 + $0x2dc] ss:$36 sps:$4 sm:$0xff]  }
  0xd8   : > { %2998 = vmatpush2.bf16.msra.mxu1 %v5832_v11  ;;  %2776 = vmatprep.mubr.bf16.mxu0 %v5835_v12  ;;  %v5910_v11 = vld [vmem:[%s6601_s2 + $0x510] ss:$36 sps:$4 sm:$0xff]   ;;  %v5911_v12 = vld [vmem:[%s6601_s2 + $0x2d8] ss:$36 sps:$4 sm:$0xff]  }
  0xd9   : > { %2999 = vmatprep.subr.bf16.mxu1 %v6441_v0  ;;  %3001 = vmatprep.mubr.bf16.mxu1 %v5839_v13  ;;  %v5914_v13 = vld [vmem:[%s6601_s2 + $0x55c] ss:$36 sps:$4 sm:$0xff]  }
  0xda   : > { %3281 = vmatpush2.bf16.msra.mxu0 %v5899_v14  ;;  %v5916_v14 = vld [vmem:[%s6601_s2 + $0x324] ss:$36 sps:$4 sm:$0xff]  }
  0xdb   : > { %3282 = vmatprep.subr.bf16.mxu0 %v6441_v0 }
  0xdc   : > { %3000 = vmatpush2.bf16.msra.mxu1 %v5833_v15  ;;  %v6023_v15 = vld [vmem:[#allocation5 + $0x1d0] sm:$0xff]  }
  0xdd   : > { %3547 = vmatprep.subr.bf16.mxu1 %v6441_v0 }
  0xde   : > { %3283 = vmatpush2.bf16.msra.mxu0 %v5912_v16  ;;  %v5918_v16 = vld [vmem:[%s6601_s2 + $0x558] ss:$36 sps:$4 sm:$0xff]  }
  0xdf   : > { %2777 = vmatmul.mubr.bf16.gmra.mxu0 %v5840_v18  ;;  %3002 = vmatmul.mubr.bf16.vlgmr.msra.gmra.mxu1 %v5837_v17  ;;  %v5919_v17 = vld [vmem:[%s6601_s2 + $0x320] ss:$36 sps:$4 sm:$0xff]  }
  0xe0   : > { %3548 = vmatpush1.bf16.msra.mxu1 %v5841_v19  ;;  %2784 = vmatprep.mubr.bf16.mxu0 %v5842_v20  ;;  %v5921_v18 = vld [vmem:[%s6601_s2 + $0x5a4] ss:$36 sps:$4 sm:$0xff]   ;;  %v5923_v19 = vld [vmem:[%s6601_s2 + $0x36c] ss:$36 sps:$4 sm:$0xff]  }
  0xe1   : > { %3009 = vmatprep.mubr.bf16.mxu1 %v5844_v21  ;;  %3549 = vmatprep.subr.bf16.mxu1 %v6441_v0  ;;  %v5925_v20 = vld [vmem:[%s6601_s2 + $0x5a0] ss:$36 sps:$4 sm:$0xff]   ;;  %v5926_v21 = vld [vmem:[%s6601_s2 + $0x368] ss:$36 sps:$4 sm:$0xff]  }
  0xe2   : > { %3284 = vmatprep.subr.bf16.mxu0 %v6441_v0 }
  0xe3   : > { %3285 = vmatpush2.bf16.msra.mxu0 %v5920_v23  ;;  %v5930_v23 = vld [vmem:[%s6601_s2 + $0x3b4] ss:$36 sps:$4 sm:$0xff]  }
  0xe4   : > { %3550 = vmatpush1.bf16.msra.mxu1 %v5855_v22  ;;  %3286 = vmatprep.subr.bf16.mxu0 %v6441_v0  ;;  %v5928_v22 = vld [vmem:[%s6601_s2 + $0x5ec] ss:$36 sps:$4 sm:$0xff]  }
  0xe5   : > { %3551 = vmatprep.subr.bf16.mxu1 %v6441_v0 }
  0xe7   : > { %2785 = vmatmul.mubr.bf16.gmra.mxu0 %v5846_v24  ;;  %3010 = vmatmul.mubr.bf16.gmra.mxu1 %v5847_v25  ;;  %v6037_v24 = vld [vmem:[#allocation5 + $0x1c8] sm:$0xff]  }
  0xe8   : > { %2792 = vmatprep.mubr.bf16.mxu0 %v5849_v26  ;;  %3017 = vmatprep.mubr.bf16.mxu1 %v5851_v27  ;;  %v5932_v25 = vld [vmem:[%s6601_s2 + $0x5e8] ss:$36 sps:$4 sm:$0xff]   ;;  %v5933_v26 = vld [vmem:[%s6601_s2 + $0x3b0] ss:$36 sps:$4 sm:$0xff]  }
  0xe9   : > { %3552 = vmatpush1.bf16.msra.mxu1 %v5870_v28  ;;  %3287 = vmatpush2.bf16.msra.mxu0 %v5934_v29  ;;  %v5935_v27 = vld [vmem:[%s6601_s2 + $0x634] ss:$36 sps:$4 sm:$0xff]   ;;  %v5937_v28 = vld [vmem:[%s6601_s2 + $0x3fc] ss:$36 sps:$4 sm:$0xff]  }
  0xea   : > { %3553 = vmatprep.subr.bf16.mxu1 %v6441_v0  ;;  %3288 = vmatprep.subr.bf16.mxu0 %v6441_v0  ;;  %v5939_v29 = vld [vmem:[%s6601_s2 + $0x630] ss:$36 sps:$4 sm:$0xff]  }
  0xed   : > { %3554 = vmatpush1.bf16.msra.mxu1 %v5884_v30  ;;  %3289 = vmatpush2.bf16.msra.mxu0 %v5942_v31  ;;  %v5940_v30 = vld [vmem:[%s6601_s2 + $0x3f8] ss:$36 sps:$4 sm:$0xff]  }
  0xee   : > { %3555 = vmatprep.subr.bf16.mxu1 %v6441_v0  ;;  %5534 = vmatprep.subr.bf16.mxu0 %v6723_v32  ;;  %v5943_v31 = vld [vmem:[%s6601_s2 + $0x67c] ss:$36 sps:$4 sm:$0xff]  }
  0xef   : > { %2793 = vmatmul.mubr.bf16.gmra.mxu0 %v5853_v33  ;;  %3018 = vmatmul.mubr.bf16.gmra.mxu1 %v5854_v34  ;;  %v5945_v33 = vld [vmem:[%s6601_s2 + $0x444] ss:$36 sps:$4 sm:$0xff]   ;;  %v5947_v34 = vld [vmem:[%s6601_s2 + $0x678] ss:$36 sps:$4 sm:$0xff]  }
  0xf0   : > { %2800 = vmatprep.mubr.bf16.mxu0 %v5857_v35  ;;  %3025 = vmatprep.mubr.bf16.mxu1 %v5859_v36  ;;  %v5948_v35 = vld [vmem:[%s6601_s2 + $0x440] ss:$36 sps:$4 sm:$0xff]   ;;  %v5949_v36 = vld [vmem:[%s6601_s2 + $0x48c] ss:$36 sps:$4 sm:$0xff]  }
  0xf1   : > { %3556 = vmatpush1.bf16.msra.mxu1 %v5898_v37  ;;  %v5953_v37 = vld [vmem:[%s6601_s2 + $0x14] ss:$36 sps:$4 sm:$0xff]  }
  0xf2   : > { %3557 = vmatprep.subr.bf16.mxu1 %v6441_v0 }
  0xf5   : > { %3558 = vmatpush1.bf16.msra.mxu1 %v5913_v38  ;;  %v5951_v38 = vld [vmem:[%s6601_s2 + $0x10] ss:$36 sps:$4 sm:$0xff]  }
  0xf6   : > { %3559 = vmatprep.subr.bf16.mxu1 %v6441_v0 }
  0xf7   : > { %2801 = vmatmul.mubr.bf16.gmra.mxu0 %v5861_v39  ;;  %3026 = vmatmul.mubr.bf16.gmra.mxu1 %v5862_v40  ;;  %v5954_v39 = vld [vmem:[%s6601_s2 + $0x488] ss:$36 sps:$4 sm:$0xff]   ;;  %v5957_v40 = vld [vmem:[%s6601_s2 + $0x4d4] ss:$36 sps:$4 sm:$0xff]  }
  0xf8   : > { %2808 = vmatprep.mubr.bf16.mxu0 %v5863_v41  ;;  %3033 = vmatprep.mubr.bf16.mxu1 %v5865_v42  ;;  %v5959_v41 = vld [vmem:[%s6601_s2 + $0x5c] ss:$36 sps:$4 sm:$0xff]   ;;  %v5982_v42 = vld [vmem:[#allocation5 + $0x230] sm:$0xff]  }
  0xf9   : > { %3560 = vmatpush1.bf16.msra.mxu1 %v5927_v43 }
  0xfa   : > { %3561 = vmatprep.subr.bf16.mxu1 %v6441_v0 }
  0xfd   : > { %3562 = vmatpush1.bf16.msra.mxu1 %v5941_v44 }
  0xfe   : > { %3563 = vmatprep.subr.bf16.mxu1 %v6441_v0 }
  0xff   : > { %2809 = vmatmul.mubr.bf16.gmra.mxu0 %v5867_v45  ;;  %3034 = vmatmul.mubr.bf16.gmra.mxu1 %v5868_v46 }
 0x100   : > { %2816 = vmatprep.mubr.bf16.mxu0 %v5871_v47  ;;  %3041 = vmatprep.mubr.bf16.mxu1 %v5873_v48  ;;  %v6009_v47 = vld [vmem:[#allocation5 + $0x228] sm:$0xff]  }
 0x101   : > { %3564 = vmatpush2.bf16.msra.mxu1 %v5956_v49 }
 0x102   : > { %3565 = vmatprep.subr.bf16.mxu1 %v6441_v0 }
 0x105   : > { %3566 = vmatpush2.bf16.msra.mxu1 %v5969_v50  ;;  %v5961_v50 = vld [vmem:[%s6601_s2 + $0x4d0] ss:$36 sps:$4 sm:$0xff]  }
 0x106   : > { %3567 = vmatprep.subr.bf16.mxu1 %v6441_v0 }
 0x107   : > { %2817 = vmatmul.mubr.bf16.gmra.mxu0 %v5875_v51  ;;  %3042 = vmatmul.mubr.bf16.gmra.mxu1 %v5876_v52  ;;  %v5962_v51 = vld [vmem:[%s6601_s2 + $0x58] ss:$36 sps:$4 sm:$0xff]  }
 0x108   : > { %2824 = vmatprep.mubr.bf16.mxu0 %v5878_v53  ;;  %3049 = vmatprep.mubr.bf16.mxu1 %v5880_v54  ;;  %v5963_v52 = vld [vmem:[%s6601_s2 + $0x51c] ss:$36 sps:$4 sm:$0xff]   ;;  %v5965_v53 = vld [vmem:[%s6601_s2 + $0xa4] ss:$36 sps:$4 sm:$0xff]  }
 0x109   : > { %3568 = vmatpush2.bf16.msra.mxu1 %v5983_v55 }
 0x10a   : > { %3569 = vmatprep.subr.bf16.mxu1 %v6441_v0 }
 0x10d   : > { %3570 = vmatpush2.bf16.msra.mxu1 %v5996_v60  ;;  %v6063_v60 = vld [vmem:[#allocation5 + $0x218] sm:$0xff]  }
 0x10e   : > { %3571 = vmatprep.subr.bf16.mxu1 %v6441_v0 }
 0x10f   : > { %2825 = vmatmul.mubr.bf16.gmra.mxu0 %v5882_v56  ;;  %3050 = vmatmul.mubr.bf16.gmra.mxu1 %v5883_v57 }
 0x110   : > { %2832 = vmatprep.mubr.bf16.mxu0 %v5885_v58  ;;  %3057 = vmatprep.mubr.bf16.mxu1 %v5887_v59 }
 0x111   : > { %3572 = vmatpush2.bf16.msra.mxu1 %v6010_v6 }
 0x112   : > { %3573 = vmatprep.subr.bf16.mxu1 %v6441_v0 }
 0x115   : > { %3574 = vmatpush2.bf16.msra.mxu1 %v6023_v15  ;;  %v5981_v15 = vld [vmem:[%s6601_s2 + $0x134] ss:$36 sps:$4 sm:$0xff]  }
 0x116   : > { %3575 = vmatprep.subr.bf16.mxu1 %v6441_v0 }
 0x117   : > { %2833 = vmatmul.mubr.bf16.gmra.mxu0 %v5889_v61  ;;  %3058 = vmatmul.mubr.bf16.gmra.mxu1 %v5890_v62 }
 0x118   : > { %2840 = vmatprep.mubr.bf16.mxu0 %v5892_v63  ;;  %3065 = vmatprep.mubr.bf16.mxu1 %v5894_v1  ;;  %v5967_v63 = vld [vmem:[%s6601_s2 + $0x518] ss:$36 sps:$4 sm:$0xff]   ;;  %v5968_v1 = vld [vmem:[%s6601_s2 + $0xa0] ss:$36 sps:$4 sm:$0xff]  }
 0x119   : > { %3576 = vmatpush2.bf16.msra.mxu1 %v6037_v24  ;;  %v5976_v24 = vld [vmem:[%s6601_s2 + $0x5a8] ss:$36 sps:$4 sm:$0xff]  }
 0x11a   : > { %3577 = vmatprep.subr.bf16.mxu1 %v6441_v0  ;;  %v6050_v0 = vld [vmem:[#allocation5 + $0x1c0] sm:$0xff]  }
 0x11d   : > { %3578 = vmatpush2.bf16.msra.mxu1 %v6050_v0 }
 0x11f   : > { %2841 = vmatmul.mubr.bf16.gmra.mxu0 %v5896_v2  ;;  %3066 = vmatmul.mubr.bf16.gmra.mxu1 %v5897_v3  ;;  %v5970_v2 = vld [vmem:[%s6601_s2 + $0x564] ss:$36 sps:$4 sm:$0xff]   ;;  %v5972_v3 = vld [vmem:[%s6601_s2 + $0xec] ss:$36 sps:$4 sm:$0xff]  }
 0x120   : > { %2848 = vmatprep.mubr.bf16.mxu0 %v5900_v4  ;;  %3073 = vmatprep.mubr.bf16.mxu1 %v5902_v5 }
 0x127   : > { %2849 = vmatmul.mubr.bf16.gmra.mxu0 %v5904_v7  ;;  %3074 = vmatmul.mubr.bf16.gmra.mxu1 %v5905_v8 }
 0x128   : > { %2856 = vmatprep.mubr.bf16.mxu0 %v5906_v9  ;;  %3081 = vmatprep.mubr.bf16.mxu1 %v5908_v10 }
 0x12f   : > { %2857 = vmatmul.mubr.bf16.gmra.mxu0 %v5910_v11  ;;  %3082 = vmatmul.mubr.bf16.gmra.mxu1 %v5911_v12  ;;  %v5974_v12 = vld [vmem:[%s6601_s2 + $0x560] ss:$36 sps:$4 sm:$0xff]  }
 0x130   : > { %2864 = vmatprep.mubr.bf16.mxu0 %v5914_v13  ;;  %3089 = vmatprep.mubr.bf16.mxu1 %v5916_v14  ;;  %v5975_v13 = vld [vmem:[%s6601_s2 + $0xe8] ss:$36 sps:$4 sm:$0xff]  }
 0x131   : > { %v5978_v14 = vld [vmem:[%s6601_s2 + $0x5ac] ss:$36 sps:$4 sm:$0xff]  }
 0x137   : > { %2865 = vmatmul.mubr.bf16.gmra.mxu0 %v5918_v16  ;;  %3090 = vmatmul.mubr.bf16.gmra.mxu1 %v5919_v17 }
 0x138   : > { %2872 = vmatprep.mubr.bf16.mxu0 %v5921_v18  ;;  %3097 = vmatprep.mubr.bf16.mxu1 %v5923_v19 }
 0x13f   : > { %2873 = vmatmul.mubr.bf16.gmra.mxu0 %v5925_v20  ;;  %3098 = vmatmul.mubr.bf16.gmra.mxu1 %v5926_v21 }
 0x140   : > { %2880 = vmatprep.mubr.bf16.mxu0 %v5928_v22  ;;  %3105 = vmatprep.mubr.bf16.mxu1 %v5930_v23 }
 0x147   : > { %2881 = vmatmul.mubr.bf16.gmra.mxu0 %v5932_v25  ;;  %3106 = vmatmul.mubr.bf16.gmra.mxu1 %v5933_v26  ;;  %v5979_v25 = vld [vmem:[%s6601_s2 + $0x130] ss:$36 sps:$4 sm:$0xff]  }
 0x148   : > { %2888 = vmatprep.mubr.bf16.mxu0 %v5935_v27  ;;  %3113 = vmatprep.mubr.bf16.mxu1 %v5937_v28  ;;  %v5986_v26 = vld [vmem:[%s6601_s2 + $0x5f4] ss:$36 sps:$4 sm:$0xff]   ;;  %v5989_v27 = vld [vmem:[%s6601_s2 + $0x17c] ss:$36 sps:$4 sm:$0xff]  }
 0x14f   : > { %2889 = vmatmul.mubr.bf16.gmra.mxu0 %v5939_v29  ;;  %3114 = vmatmul.mubr.bf16.gmra.mxu1 %v5940_v30 }
 0x150   : > { %2896 = vmatprep.mubr.bf16.mxu0 %v5943_v31  ;;  %3121 = vmatprep.mubr.bf16.mxu1 %v5945_v33  ;;  %v6088_v33 = vld [vmem:[#allocation5 + $0x210] sm:$0xff]  }
 0x157   : > { %2897 = vmatmul.mubr.bf16.gmra.mxu0 %v5947_v34  ;;  %3122 = vmatmul.mubr.bf16.gmra.mxu1 %v5948_v35 }
 0x158   : > { %3129 = vmatprep.mubr.bf16.mxu1 %v5949_v36  ;;  %3290 = vmatprep.mubr.bf16.mxu0 %v5953_v37  ;;  %v5984_v37 = vld [vmem:[%s6601_s2 + $0x5f0] ss:$36 sps:$4 sm:$0xff]  }
 0x15f   : > { %v6800_v43 = vpop.f32.mrf.mxu0  ;;  %v6802_v44 = vpop.f32.mrf.mxu1  ;;  %3130 = vmatmul.mubr.bf16.gmra.mxu1 %v5954_v39  ;;  %3291 = vmatmul.mubr.bf16.vlgmr.msra.gmra.mxu0 %v5951_v38  ;;  %v5987_v38 = vld [vmem:[%s6601_s2 + $0x178] ss:$36 sps:$4 sm:$0xff]  }
 0x160   : > { %5535 = vmatpush3.bf16.msra.mxu0 %v6723_v32  ;;  %3137 = vmatprep.mubr.bf16.mxu1 %v5957_v40  ;;  %v6036_v32 = vld [vmem:[#allocation5 + $0x220] sm:$0xff]  }
 0x161   : > { %v2716_v45 = vpop.f32.mrf.mxu0  ;;  %v2908_v46 = vpop.f32.mrf.mxu1  ;;  %3298 = vmatprep.mubr.bf16.mxu0 %v5959_v41  ;;  %5536 = vmatprep.subr.bf16.mxu0 %v5982_v42  ;;  %v5992_v39 = vld [vmem:[%s6601_s2 + $0x63c] ss:$36 sps:$4 sm:$0xff]   ;;  %v5995_v40 = vld [vmem:[%s6601_s2 + $0x1c4] ss:$36 sps:$4 sm:$0xff]  }
 0x163   : > { %v6805_v48 = vpop.f32.mrf.mxu0  ;;  %v6807_v49 = vpop.f32.mrf.mxu1 }
 0x164   : > { %7974 = vst [vmem:[#allocation15_spill] sm:$0xff] %v6807_v49  ;;  %5537 = vmatpush3.bf16.msra.mxu0 %v5982_v42 }
 0x165   : > { %v2719_v54 = vpop.f32.mrf.mxu0  ;;  %v2911_v55 = vpop.f32.mrf.mxu1  ;;  %5538 = vmatprep.subr.bf16.mxu0 %v6009_v47 }
 0x166   : > { %v5993_v54 = vld [vmem:[%s6601_s2 + $0x1c0] ss:$36 sps:$4 sm:$0xff]  }
 0x167   : > { %v6813_v56 = vpop.f32.mrf.mxu0  ;;  %v6815_v57 = vpop.f32.mrf.mxu1  ;;  %3138 = vmatmul.mubr.bf16.gmra.mxu1 %v5961_v50  ;;  %3299 = vmatmul.mubr.bf16.gmra.mxu0 %v5962_v51  ;;  %v5999_v55 = vld [vmem:[%s6601_s2 + $0x684] ss:$36 sps:$4 sm:$0xff]  }
 0x168   : > { %7975 = vst [vmem:[#allocation16_spill] sm:$0xff] %v6815_v57  ;;  %3145 = vmatprep.mubr.bf16.mxu1 %v5963_v52  ;;  %3306 = vmatprep.mubr.bf16.mxu0 %v5965_v53  ;;  %v5990_v53 = vld [vmem:[%s6601_s2 + $0x638] ss:$36 sps:$4 sm:$0xff]   ;;  %v6119_v57 = vld [vmem:[%s6601_s2 + $0x2a4] ss:$36 sps:$4 sm:$0xff]  }
 0x169   : > { %v2724_v58 = vpop.f32.mrf.mxu0  ;;  %v2916_v59 = vpop.f32.mrf.mxu1  ;;  %5539 = vmatpush3.bf16.msra.mxu0 %v6009_v47 }
 0x16a   : > { %5540 = vmatprep.subr.bf16.mxu0 %v6036_v32 }
 0x16b   : > { %v6817_v61 = vpop.f32.mrf.mxu0  ;;  %v6819_v62 = vpop.f32.mrf.mxu1 }
 0x16c   : > { %7976 = vst [vmem:[#allocation17_spill] sm:$0xff] %v6819_v62  ;;  %v6116_v62 = vld [vmem:[%s6601_s2 + $0x71c] ss:$36 sps:$4 sm:$0xff]  }
 0x16d   : > { %v2727_v4 = vpop.f32.mrf.mxu0  ;;  %v2919_v5 = vpop.f32.mrf.mxu1  ;;  %5541 = vmatpush3.bf16.msra.mxu0 %v6036_v32  ;;  %v6002_v32 = vld [vmem:[%s6601_s2 + $0x20c] ss:$36 sps:$4 sm:$0xff]  }
 0x16e   : > { %5542 = vmatprep.subr.bf16.mxu0 %v6063_v60  ;;  %v5997_v5 = vld [vmem:[%s6601_s2 + $0x680] ss:$36 sps:$4 sm:$0xff]  }
 0x16f   : > { %v6825_v6 = vpop.f32.mrf.mxu0  ;;  %v6827_v7 = vpop.f32.mrf.mxu1  ;;  %3146 = vmatmul.mubr.bf16.gmra.mxu1 %v5967_v63  ;;  %3307 = vmatmul.mubr.bf16.gmra.mxu0 %v5968_v1 }
 0x170   : > { %7977 = vst [vmem:[#allocation18_spill] sm:$0xff] %v6827_v7  ;;  %3153 = vmatprep.mubr.bf16.mxu1 %v5970_v2  ;;  %3314 = vmatprep.mubr.bf16.mxu0 %v5972_v3  ;;  %v6107_v7 = vld [vmem:[%s6601_s2 + $0x6d0] ss:$36 sps:$4 sm:$0xff]  }
 0x171   : > { %v2732_v8 = vpop.f32.mrf.mxu0  ;;  %v2924_v9 = vpop.f32.mrf.mxu1  ;;  %5543 = vmatpush3.bf16.msra.mxu0 %v6063_v60 }
 0x172   : > { %5544 = vmatprep.subr.bf16.mxu0 %v6088_v33  ;;  %v6000_v8 = vld [vmem:[%s6601_s2 + $0x208] ss:$36 sps:$4 sm:$0xff]  }
 0x173   : > { %v6829_v10 = vpop.f32.mrf.mxu0  ;;  %v6831_v11 = vpop.f32.mrf.mxu1  ;;  %v6005_v9 = vld [vmem:[%s6601_s2 + $0x6cc] ss:$36 sps:$4 sm:$0xff]  }
 0x174   : > { %7978 = vst [vmem:[#allocation19_spill] sm:$0xff] %v6831_v11  ;;  %v6109_v11 = vld [vmem:[%s6601_s2 + $0x6d4] ss:$36 sps:$4 sm:$0xff]  }
 0x175   : > { %v2735_v16 = vpop.f32.mrf.mxu0  ;;  %v2927_v17 = vpop.f32.mrf.mxu1  ;;  %5545 = vmatpush3.bf16.msra.mxu0 %v6088_v33 }
 0x177   : > { %v6837_v18 = vpop.f32.mrf.mxu0  ;;  %v6839_v19 = vpop.f32.mrf.mxu1  ;;  %3154 = vmatmul.mubr.bf16.gmra.mxu1 %v5974_v12  ;;  %3315 = vmatmul.mubr.bf16.gmra.mxu0 %v5975_v13  ;;  %v6008_v12 = vld [vmem:[%s6601_s2 + $0x254] ss:$36 sps:$4 sm:$0xff]  }
 0x178   : > { %7979 = vst [vmem:[#allocation20_spill] sm:$0xff] %v6839_v19  ;;  %3161 = vmatprep.mubr.bf16.mxu1 %v5978_v14  ;;  %3322 = vmatprep.mubr.bf16.mxu0 %v5981_v15  ;;  %v6101_v19 = vld [vmem:[%s6601_s2 + $0x688] ss:$36 sps:$4 sm:$0xff]  }
 0x179   : > { %v2740_v20 = vpop.f32.mrf.mxu0  ;;  %v2932_v21 = vpop.f32.mrf.mxu1 }
 0x17b   : > { %v6841_v22 = vpop.f32.mrf.mxu0  ;;  %v6843_v23 = vpop.f32.mrf.mxu1 }
 0x17c   : > { %7980 = vst [vmem:[#allocation21_spill] sm:$0xff] %v6843_v23  ;;  %v6103_v23 = vld [vmem:[%s6601_s2 + $0x68c] ss:$36 sps:$4 sm:$0xff]  }
 0x17d   : > { %v2743_v28 = vpop.f32.mrf.mxu0  ;;  %v2935_v29 = vpop.f32.mrf.mxu1 }
 0x17e   : > { %v6016_v28 = vld [vmem:[%s6601_s2 + $0x29c] ss:$36 sps:$4 sm:$0xff]  }
 0x17f   : > { %v6849_v30 = vpop.f32.mrf.mxu0  ;;  %v6851_v31 = vpop.f32.mrf.mxu1  ;;  %3162 = vmatmul.mubr.bf16.gmra.mxu1 %v5976_v24  ;;  %3323 = vmatmul.mubr.bf16.gmra.mxu0 %v5979_v25  ;;  %v6003_v25 = vld [vmem:[%s6601_s2 + $0x6c8] ss:$36 sps:$4 sm:$0xff]  }
 0x180   : > { %7981 = vst [vmem:[#allocation22_spill] sm:$0xff] %v6851_v31  ;;  %3169 = vmatprep.mubr.bf16.mxu1 %v5986_v26  ;;  %3330 = vmatprep.mubr.bf16.mxu0 %v5989_v27  ;;  %v6006_v26 = vld [vmem:[%s6601_s2 + $0x250] ss:$36 sps:$4 sm:$0xff]   ;;  %v6095_v31 = vld [vmem:[%s6601_s2 + $0x640] ss:$36 sps:$4 sm:$0xff]  }
 0x181   : > { %v2748_v0 = vpop.f32.mrf.mxu0  ;;  %v2940_v34 = vpop.f32.mrf.mxu1  ;;  %v6013_v27 = vld [vmem:[%s6601_s2 + $0x714] ss:$36 sps:$4 sm:$0xff]  }
 0x183   : > { %v6853_v35 = vpop.f32.mrf.mxu0  ;;  %v6855_v36 = vpop.f32.mrf.mxu1 }
 0x184   : > { %7982 = vst [vmem:[#allocation23_spill] sm:$0xff] %v6855_v36  ;;  %v6097_v36 = vld [vmem:[%s6601_s2 + $0x644] ss:$36 sps:$4 sm:$0xff]  }
 0x185   : > { %v2751_v41 = vpop.f32.mrf.mxu0  ;;  %v2943_v42 = vpop.f32.mrf.mxu1 }
 0x187   : > { %v6861_v45 = vpop.f32.mrf.mxu0  ;;  %v6863_v46 = vpop.f32.mrf.mxu1  ;;  %3170 = vmatmul.mubr.bf16.gmra.mxu1 %v5984_v37  ;;  %3331 = vmatmul.mubr.bf16.gmra.mxu0 %v5987_v38  ;;  %v6113_v38 = vld [vmem:[#allocation5 + $0x208] sm:$0xff]  }
 0x188   : > { %7983 = vst [vmem:[#allocation24_spill] sm:$0xff] %v6863_v46  ;;  %3177 = vmatprep.mubr.bf16.mxu1 %v5992_v39  ;;  %3338 = vmatprep.mubr.bf16.mxu0 %v5995_v40  ;;  %v6089_v46 = vld [vmem:[%s6601_s2 + $0x5f8] ss:$36 sps:$4 sm:$0xff]  }
 0x189   : > { %v2756_v47 = vpop.f32.mrf.mxu0  ;;  %v2948_v50 = vpop.f32.mrf.mxu1  ;;  %5546 = vmatprep.subr.bf16.mxu0 %v6113_v38 }
 0x18a   : > { %v6011_v47 = vld [vmem:[%s6601_s2 + $0x710] ss:$36 sps:$4 sm:$0xff]   ;;  %v6014_v50 = vld [vmem:[%s6601_s2 + $0x298] ss:$36 sps:$4 sm:$0xff]   ;;  %5547 = vmatpush3.bf16.msra.mxu0 %v6113_v38  ;;  %v6027_v38 = vld [vmem:[%s6601_s2 + $0x328] ss:$36 sps:$4 sm:$0xff]  }
 0x18b   : > { %v6865_v51 = vpop.f32.mrf.mxu0  ;;  %v6867_v52 = vpop.f32.mrf.mxu1 }
 0x18c   : > { %7984 = vst [vmem:[#allocation25_spill] sm:$0xff] %v6867_v52  ;;  %v6091_v52 = vld [vmem:[%s6601_s2 + $0x5fc] ss:$36 sps:$4 sm:$0xff]  }
 0x18d   : > { %v2759_v58 = vpop.f32.mrf.mxu0  ;;  %v2951_v59 = vpop.f32.mrf.mxu1 }
 0x18f   : > { %v6873_v60 = vpop.f32.mrf.mxu0  ;;  %v6875_v63 = vpop.f32.mrf.mxu1  ;;  %3178 = vmatmul.mubr.bf16.gmra.mxu1 %v5990_v53  ;;  %3339 = vmatmul.mubr.bf16.gmra.mxu0 %v5993_v54  ;;  %v6019_v54 = vld [vmem:[%s6601_s2 + $0x75c] ss:$36 sps:$4 sm:$0xff]  }
 0x190   : > { %7985 = vst [vmem:[#allocation26_spill] sm:$0xff] %v6875_v63  ;;  %3185 = vmatprep.mubr.bf16.mxu1 %v5999_v55  ;;  %3346 = vmatprep.mubr.bf16.mxu0 %v6002_v32  ;;  %v6082_v63 = vld [vmem:[%s6601_s2 + $0x5b0] ss:$36 sps:$4 sm:$0xff]  }
 0x191   : > { %v2764_v1 = vpop.f32.mrf.mxu0  ;;  %v2956_v2 = vpop.f32.mrf.mxu1 }
 0x193   : > { %v6877_v3 = vpop.f32.mrf.mxu0  ;;  %v6879_v4 = vpop.f32.mrf.mxu1 }
 0x194   : > { %7986 = vst [vmem:[#allocation27_spill] sm:$0xff] %v6879_v4  ;;  %v6084_v4 = vld [vmem:[%s6601_s2 + $0x5b4] ss:$36 sps:$4 sm:$0xff]  }
 0x195   : > { %v2767_v13 = vpop.f32.mrf.mxu0  ;;  %v2959_v14 = vpop.f32.mrf.mxu1 }
 0x196   : > { %v6026_v14 = vld [vmem:[%s6601_s2 + $0x7a4] ss:$36 sps:$4 sm:$0xff]  }
 0x197   : > { %v6885_v15 = vpop.f32.mrf.mxu0  ;;  %v6887_v16 = vpop.f32.mrf.mxu1  ;;  %3186 = vmatmul.mubr.bf16.gmra.mxu1 %v5997_v5  ;;  %3347 = vmatmul.mubr.bf16.gmra.mxu0 %v6000_v8 }
 0x198   : > { %7987 = vst [vmem:[#allocation28_spill] sm:$0xff] %v6887_v16  ;;  %3193 = vmatprep.mubr.bf16.mxu1 %v6005_v9  ;;  %3354 = vmatprep.mubr.bf16.mxu0 %v6008_v12  ;;  %v6017_v9 = vld [vmem:[%s6601_s2 + $0x758] ss:$36 sps:$4 sm:$0xff]   ;;  %v6020_v12 = vld [vmem:[%s6601_s2 + $0x2e0] ss:$36 sps:$4 sm:$0xff]  }
 0x199   : > { %v2772_v17 = vpop.f32.mrf.mxu0  ;;  %v2964_v20 = vpop.f32.mrf.mxu1  ;;  %v6076_v16 = vld [vmem:[%s6601_s2 + $0x568] ss:$36 sps:$4 sm:$0xff]  }
 0x19a   : > { %v6029_v17 = vld [vmem:[%s6601_s2 + $0x32c] ss:$36 sps:$4 sm:$0xff]  }
 0x19b   : > { %v6889_v21 = vpop.f32.mrf.mxu0  ;;  %v6891_v24 = vpop.f32.mrf.mxu1 }
 0x19c   : > { %7988 = vst [vmem:[#allocation29_spill] sm:$0xff] %v6891_v24  ;;  %v6078_v24 = vld [vmem:[%s6601_s2 + $0x56c] ss:$36 sps:$4 sm:$0xff]  }
 0x19d   : > { %v2775_v29 = vpop.f32.mrf.mxu0  ;;  %v2967_v33 = vpop.f32.mrf.mxu1 }
 0x19f   : > { %v6897_v0 = vpop.f32.mrf.mxu0  ;;  %v3003_v34 = vpop.f32.mrf.mxu1  ;;  %3194 = vmatmul.mubr.bf16.gmra.mxu1 %v6003_v25  ;;  %3355 = vmatmul.mubr.bf16.gmra.mxu0 %v6006_v26 }
 0x1a0   : > { %v6900_v37 = vadd.f32 %v3003_v34, %v6800_v43  ;;  %3201 = vmatprep.mubr.bf16.mxu1 %v6013_v27  ;;  %3362 = vmatprep.mubr.bf16.mxu0 %v6016_v28  ;;  %v6022_v43 = vld [vmem:[%s6601_s2 + $0x2e4] ss:$36 sps:$4 sm:$0xff]  }
 0x1a1   : > { %v2780_v39 = vpop.f32.mrf.mxu0  ;;  %v3005_v40 = vpop.f32.mrf.mxu1  ;;  %v6024_v34 = vld [vmem:[%s6601_s2 + $0x7a0] ss:$36 sps:$4 sm:$0xff]  }
 0x1a2   : > { %v6032_v40 = vld [vmem:[%s6601_s2 + $0x7ec] ss:$36 sps:$4 sm:$0xff]  }
 0x1a3   : > { %v6902_v41 = vpop.f32.mrf.mxu0  ;;  %v3006_v42 = vpop.f32.mrf.mxu1 }
 0x1a4   : > { %v6907_v53 = vadd.f32 %v3006_v42, %v6805_v48  ;;  %v6035_v42 = vld [vmem:[%s6601_s2 + $0x374] ss:$36 sps:$4 sm:$0xff]  }
 0x1a5   : > { %v2783_v55 = vpop.f32.mrf.mxu0  ;;  %v3008_v32 = vpop.f32.mrf.mxu1 }
 0x1a7   : > { %v6911_v58 = vpop.f32.mrf.mxu0  ;;  %v3011_v59 = vpop.f32.mrf.mxu1  ;;  %3202 = vmatmul.mubr.bf16.gmra.mxu1 %v6011_v47  ;;  %3363 = vmatmul.mubr.bf16.gmra.mxu0 %v6014_v50 }
 0x1a8   : > { %v6914_v1 = vadd.f32 %v3011_v59, %v6813_v56  ;;  %3209 = vmatprep.mubr.bf16.mxu1 %v6019_v54  ;;  %3370 = vmatprep.mubr.bf16.mxu0 %v6022_v43 }
 0x1a9   : > { %v2788_v48 = vpop.f32.mrf.mxu0  ;;  %v3013_v2 = vpop.f32.mrf.mxu1 }
 0x1aa   : > { %v6030_v48 = vld [vmem:[%s6601_s2 + $0x7e8] ss:$36 sps:$4 sm:$0xff]   ;;  %v6033_v2 = vld [vmem:[%s6601_s2 + $0x370] ss:$36 sps:$4 sm:$0xff]  }
 0x1ab   : > { %v6916_v5 = vpop.f32.mrf.mxu0  ;;  %v3014_v8 = vpop.f32.mrf.mxu1 }
 0x1ac   : > { %v6921_v13 = vadd.f32 %v3014_v8, %v6817_v61 }
 0x1ad   : > { %v2791_v20 = vpop.f32.mrf.mxu0  ;;  %v3016_v56 = vpop.f32.mrf.mxu1 }
 0x1af   : > { %v6925_v25 = vpop.f32.mrf.mxu0  ;;  %v3019_v26 = vpop.f32.mrf.mxu1  ;;  %3210 = vmatmul.mubr.bf16.gmra.mxu1 %v6017_v9  ;;  %3371 = vmatmul.mubr.bf16.gmra.mxu0 %v6020_v12  ;;  %v6040_v9 = vld [vmem:[%s6601_s2 + $0x834] ss:$36 sps:$4 sm:$0xff]   ;;  %v6043_v12 = vld [vmem:[%s6601_s2 + $0x3bc] ss:$36 sps:$4 sm:$0xff]  }
 0x1b0   : > { %v6928_v27 = vadd.f32 %v3019_v26, %v6825_v6  ;;  %3217 = vmatprep.mubr.bf16.mxu1 %v6026_v14  ;;  %3378 = vmatprep.mubr.bf16.mxu0 %v6029_v17 }
 0x1b1   : > { %v2796_v61 = vpop.f32.mrf.mxu0  ;;  %v3021_v28 = vpop.f32.mrf.mxu1 }
 0x1b3   : > { %v6930_v29 = vpop.f32.mrf.mxu0  ;;  %v3022_v33 = vpop.f32.mrf.mxu1 }
 0x1b4   : > { %v6935_v39 = vadd.f32 %v3022_v33, %v6829_v10 }
 0x1b5   : > { %v2799_v47 = vpop.f32.mrf.mxu0  ;;  %v3024_v6 = vpop.f32.mrf.mxu1 }
 0x1b7   : > { %v6939_v50 = vpop.f32.mrf.mxu0  ;;  %v3027_v54 = vpop.f32.mrf.mxu1  ;;  %3218 = vmatmul.mubr.bf16.gmra.mxu1 %v6024_v34  ;;  %3379 = vmatmul.mubr.bf16.gmra.mxu0 %v6027_v38  ;;  %v6038_v34 = vld [vmem:[%s6601_s2 + $0x830] ss:$36 sps:$4 sm:$0xff]   ;;  %v6041_v38 = vld [vmem:[%s6601_s2 + $0x3b8] ss:$36 sps:$4 sm:$0xff]  }
 0x1b8   : > { %v6942_v43 = vadd.f32 %v3027_v54, %v6837_v18  ;;  %3225 = vmatprep.mubr.bf16.mxu1 %v6032_v40  ;;  %3386 = vmatprep.mubr.bf16.mxu0 %v6035_v42  ;;  %v6046_v42 = vld [vmem:[%s6601_s2 + $0x87c] ss:$36 sps:$4 sm:$0xff]  }
 0x1b9   : > { %v2804_v10 = vpop.f32.mrf.mxu0  ;;  %v3029_v55 = vpop.f32.mrf.mxu1 }
 0x1bb   : > { %v6944_v32 = vpop.f32.mrf.mxu0  ;;  %v3030_v59 = vpop.f32.mrf.mxu1 }
 0x1bc   : > { %v6949_v8 = vadd.f32 %v3030_v59, %v6841_v22  ;;  %v6138_v22 = vld [vmem:[#allocation5 + $0x200] sm:$0xff]  }
 0x1bd   : > { %v2807_v14 = vpop.f32.mrf.mxu0  ;;  %v3032_v17 = vpop.f32.mrf.mxu1  ;;  %5548 = vmatprep.subr.bf16.mxu0 %v6138_v22 }
 0x1be   : > { %5549 = vmatpush3.bf16.msra.mxu0 %v6138_v22  ;;  %v6053_v17 = vld [vmem:[%s6601_s2 + $0x8c4] ss:$36 sps:$4 sm:$0xff]  }
 0x1bf   : > { %v6953_v18 = vpop.f32.mrf.mxu0  ;;  %v3035_v20 = vpop.f32.mrf.mxu1  ;;  %3226 = vmatmul.mubr.bf16.gmra.mxu1 %v6030_v48  ;;  %3387 = vmatmul.mubr.bf16.gmra.mxu0 %v6033_v2 }
 0x1c0   : > { %v6956_v56 = vadd.f32 %v3035_v20, %v6849_v30  ;;  %3233 = vmatprep.mubr.bf16.mxu1 %v6040_v9  ;;  %3394 = vmatprep.mubr.bf16.mxu0 %v6043_v12  ;;  %v6049_v30 = vld [vmem:[%s6601_s2 + $0x404] ss:$36 sps:$4 sm:$0xff]   ;;  %v6044_v9 = vld [vmem:[%s6601_s2 + $0x878] ss:$36 sps:$4 sm:$0xff]   ;;  %v6056_v20 = vld [vmem:[%s6601_s2 + $0x44c] ss:$36 sps:$4 sm:$0xff]  }
 0x1c1   : > { %v2812_v26 = vpop.f32.mrf.mxu0  ;;  %v3037_v61 = vpop.f32.mrf.mxu1  ;;  %v6047_v12 = vld [vmem:[%s6601_s2 + $0x400] ss:$36 sps:$4 sm:$0xff]  }
 0x1c3   : > { %v6958_v28 = vpop.f32.mrf.mxu0  ;;  %v3038_v33 = vpop.f32.mrf.mxu1 }
 0x1c4   : > { %v6963_v40 = vadd.f32 %v3038_v33, %v6853_v35 }
 0x1c5   : > { %v2815_v47 = vpop.f32.mrf.mxu0  ;;  %v3040_v6 = vpop.f32.mrf.mxu1 }
 0x1c6   : > { %v6054_v47 = vld [vmem:[%s6601_s2 + $0x448] ss:$36 sps:$4 sm:$0xff]  }
 0x1c7   : > { %v6967_v54 = vpop.f32.mrf.mxu0  ;;  %v3043_v10 = vpop.f32.mrf.mxu1  ;;  %3234 = vmatmul.mubr.bf16.gmra.mxu1 %v6038_v34  ;;  %3395 = vmatmul.mubr.bf16.gmra.mxu0 %v6041_v38 }
 0x1c8   : > { %v6970_v55 = vadd.f32 %v3043_v10, %v6861_v45  ;;  %3241 = vmatprep.mubr.bf16.mxu1 %v6046_v42  ;;  %3402 = vmatprep.mubr.bf16.mxu0 %v6049_v30  ;;  %v6051_v30 = vld [vmem:[%s6601_s2 + $0x8c0] ss:$36 sps:$4 sm:$0xff]   ;;  %v6059_v10 = vld [vmem:[%s6601_s2 + $0x494] ss:$36 sps:$4 sm:$0xff]  }
 0x1c9   : > { %v2820_v35 = vpop.f32.mrf.mxu0  ;;  %v3045_v59 = vpop.f32.mrf.mxu1 }
 0x1ca   : > { %v6062_v35 = vld [vmem:[%s6601_s2 + $0x1c] ss:$36 sps:$4 sm:$0xff]  }
 0x1cb   : > { %v6972_v48 = vpop.f32.mrf.mxu0  ;;  %v3046_v2 = vpop.f32.mrf.mxu1 }
 0x1cc   : > { %v6977_v14 = vadd.f32 %v3046_v2, %v6865_v51 }
 0x1cd   : > { %v2823_v22 = vpop.f32.mrf.mxu0  ;;  %v3048_v45 = vpop.f32.mrf.mxu1 }
 0x1ce   : > { %v6057_v45 = vld [vmem:[%s6601_s2 + $0x490] ss:$36 sps:$4 sm:$0xff]  }
 0x1cf   : > { %v6981_v26 = vpop.f32.mrf.mxu0  ;;  %v3051_v61 = vpop.f32.mrf.mxu1  ;;  %3242 = vmatmul.mubr.bf16.gmra.mxu1 %v6044_v9  ;;  %3403 = vmatmul.mubr.bf16.gmra.mxu0 %v6047_v12 }
 0x1d0   : > { %v6984_v33 = vadd.f32 %v3051_v61, %v6873_v60  ;;  %3249 = vmatprep.mubr.bf16.mxu1 %v6053_v17  ;;  %3410 = vmatprep.mubr.bf16.mxu0 %v6056_v20  ;;  %v6060_v61 = vld [vmem:[%s6601_s2 + $0x18] ss:$36 sps:$4 sm:$0xff]  }
 0x1d1   : > { %v2828_v51 = vpop.f32.mrf.mxu0  ;;  %v3053_v34 = vpop.f32.mrf.mxu1 }
 0x1d2   : > { %v6066_v34 = vld [vmem:[%s6601_s2 + $0x4dc] ss:$36 sps:$4 sm:$0xff]  }
 0x1d3   : > { %v6986_v38 = vpop.f32.mrf.mxu0  ;;  %v3054_v42 = vpop.f32.mrf.mxu1 }
 0x1d4   : > { %v6991_v6 = vadd.f32 %v3054_v42, %v6877_v3  ;;  %v6069_v42 = vld [vmem:[%s6601_s2 + $0x64] ss:$36 sps:$4 sm:$0xff]  }
 0x1d5   : > { %v2831_v59 = vpop.f32.mrf.mxu0  ;;  %v3056_v60 = vpop.f32.mrf.mxu1 }
 0x1d7   : > { %v6995_v2 = vpop.f32.mrf.mxu0  ;;  %v3059_v9 = vpop.f32.mrf.mxu1  ;;  %3250 = vmatmul.mubr.bf16.gmra.mxu1 %v6051_v30  ;;  %3411 = vmatmul.mubr.bf16.gmra.mxu0 %v6054_v47 }
 0x1d8   : > { %v6998_v12 = vadd.f32 %v3059_v9, %v6885_v15  ;;  %3418 = vmatprep.mubr.bf16.mxu0 %v6059_v10  ;;  %3579 = vmatprep.mubr.bf16.mxu1 %v6062_v35 }
 0x1d9   : > { %v2836_v3 = vpop.f32.mrf.mxu0  ;;  %v3061_v17 = vpop.f32.mrf.mxu1 }
 0x1da   : > { %v6064_v3 = vld [vmem:[%s6601_s2 + $0x4d8] ss:$36 sps:$4 sm:$0xff]   ;;  %v6067_v17 = vld [vmem:[%s6601_s2 + $0x60] ss:$36 sps:$4 sm:$0xff]  }
 0x1db   : > { %v7000_v20 = vpop.f32.mrf.mxu0  ;;  %v3062_v22 = vpop.f32.mrf.mxu1 }
 0x1dc   : > { %v7005_v51 = vadd.f32 %v3062_v22, %v6889_v21 }
 0x1dd   : > { %v2839_v30 = vpop.f32.mrf.mxu0  ;;  %v3064_v15 = vpop.f32.mrf.mxu1 }
 0x1de   : > { %v6072_v30 = vld [vmem:[%s6601_s2 + $0x524] ss:$36 sps:$4 sm:$0xff]  }
 0x1df   : > { %v7009_v47 = vpop.f32.mrf.mxu0  ;;  %v3067_v10 = vpop.f32.mrf.mxu1  ;;  %3419 = vmatmul.mubr.bf16.gmra.mxu0 %v6057_v45  ;;  %3580 = vmatmul.mubr.bf16.vlgmr.msra.gmra.mxu1 %v6060_v61  ;;  %v6075_v45 = vld [vmem:[%s6601_s2 + $0xac] ss:$36 sps:$4 sm:$0xff]  }
 0x1e0   : > { %v7012_v35 = vadd.f32 %v3067_v10, %v6897_v0  ;;  %3426 = vmatprep.mubr.bf16.mxu0 %v6066_v34  ;;  %3587 = vmatprep.mubr.bf16.mxu1 %v6069_v42 }
 0x1e1   : > { %v2844_v21 = vpop.f32.mrf.mxu0  ;;  %v3069_v59 = vpop.f32.mrf.mxu1 }
 0x1e3   : > { %v7014_v60 = vpop.f32.mrf.mxu0  ;;  %v3070_v9 = vpop.f32.mrf.mxu1 }
 0x1e4   : > { %v7019_v22 = vadd.f32 %v3070_v9, %v6902_v41  ;;  %v6070_v9 = vld [vmem:[%s6601_s2 + $0x520] ss:$36 sps:$4 sm:$0xff]  }
 0x1e5   : > { %v2847_v61 = vpop.f32.mrf.mxu0  ;;  %v3072_v0 = vpop.f32.mrf.mxu1 }
 0x1e6   : > { %v6073_v61 = vld [vmem:[%s6601_s2 + $0xa8] ss:$36 sps:$4 sm:$0xff]  }
 0x1e7   : > { %v7023_v34 = vpop.f32.mrf.mxu0  ;;  %v3075_v42 = vpop.f32.mrf.mxu1  ;;  %3427 = vmatmul.mubr.bf16.gmra.mxu0 %v6064_v3  ;;  %3588 = vmatmul.mubr.bf16.gmra.mxu1 %v6067_v17  ;;  %v6081_v3 = vld [vmem:[%s6601_s2 + $0xf4] ss:$36 sps:$4 sm:$0xff]  }
 0x1e8   : > { %v7026_v15 = vadd.f32 %v3075_v42, %v6911_v58  ;;  %3434 = vmatprep.mubr.bf16.mxu0 %v6072_v30  ;;  %3595 = vmatprep.mubr.bf16.mxu1 %v6075_v45 }
 0x1e9   : > { %v2852_v41 = vpop.f32.mrf.mxu0  ;;  %v3077_v10 = vpop.f32.mrf.mxu1 }
 0x1eb   : > { %v7028_v21 = vpop.f32.mrf.mxu0  ;;  %v3078_v59 = vpop.f32.mrf.mxu1 }
 0x1ec   : > { %v7033_v0 = vadd.f32 %v3078_v59, %v6916_v5 }
 0x1ed   : > { %v2855_v17 = vpop.f32.mrf.mxu0  ;;  %v3080_v58 = vpop.f32.mrf.mxu1 }
 0x1ee   : > { %v6079_v17 = vld [vmem:[%s6601_s2 + $0xf0] ss:$36 sps:$4 sm:$0xff]  }
 0x1ef   : > { %v7037_v30 = vpop.f32.mrf.mxu0  ;;  %v3083_v45 = vpop.f32.mrf.mxu1  ;;  %3435 = vmatmul.mubr.bf16.gmra.mxu0 %v6070_v9  ;;  %3596 = vmatmul.mubr.bf16.gmra.mxu1 %v6073_v61  ;;  %v6087_v9 = vld [vmem:[%s6601_s2 + $0x13c] ss:$36 sps:$4 sm:$0xff]  }
 0x1f0   : > { %v7040_v42 = vadd.f32 %v3083_v45, %v6925_v25  ;;  %3442 = vmatprep.mubr.bf16.mxu0 %v6078_v24  ;;  %3603 = vmatprep.mubr.bf16.mxu1 %v6081_v3 }
 0x1f1   : > { %v2860_v5 = vpop.f32.mrf.mxu0  ;;  %v3085_v41 = vpop.f32.mrf.mxu1 }
 0x1f3   : > { %v7042_v10 = vpop.f32.mrf.mxu0  ;;  %v3086_v59 = vpop.f32.mrf.mxu1 }
 0x1f4   : > { %v7047_v58 = vadd.f32 %v3086_v59, %v6930_v29 }
 0x1f5   : > { %v2863_v61 = vpop.f32.mrf.mxu0  ;;  %v3088_v25 = vpop.f32.mrf.mxu1 }
 0x1f6   : > { %v6085_v61 = vld [vmem:[%s6601_s2 + $0x138] ss:$36 sps:$4 sm:$0xff]  }
 0x1f7   : > { %v7051_v24 = vpop.f32.mrf.mxu0  ;;  %v3091_v3 = vpop.f32.mrf.mxu1  ;;  %3443 = vmatmul.mubr.bf16.gmra.mxu0 %v6076_v16  ;;  %3604 = vmatmul.mubr.bf16.gmra.mxu1 %v6079_v17  ;;  %v6094_v16 = vld [vmem:[%s6601_s2 + $0x184] ss:$36 sps:$4 sm:$0xff]  }
 0x1f8   : > { %v7054_v45 = vadd.f32 %v3091_v3, %v6939_v50  ;;  %3450 = vmatprep.mubr.bf16.mxu0 %v6084_v4  ;;  %3611 = vmatprep.mubr.bf16.mxu1 %v6087_v9 }
 0x1f9   : > { %v2868_v29 = vpop.f32.mrf.mxu0  ;;  %v3093_v5 = vpop.f32.mrf.mxu1 }
 0x1fb   : > { %v7056_v41 = vpop.f32.mrf.mxu0  ;;  %v3094_v59 = vpop.f32.mrf.mxu1 }
 0x1fc   : > { %v7061_v25 = vadd.f32 %v3094_v59, %v6944_v32 }
 0x1fd   : > { %v2871_v17 = vpop.f32.mrf.mxu0  ;;  %v3096_v50 = vpop.f32.mrf.mxu1 }
 0x1fe   : > { %v6092_v17 = vld [vmem:[%s6601_s2 + $0x180] ss:$36 sps:$4 sm:$0xff]  }
 0x1ff   : > { %v7065_v4 = vpop.f32.mrf.mxu0  ;;  %v3099_v9 = vpop.f32.mrf.mxu1  ;;  %3451 = vmatmul.mubr.bf16.gmra.mxu0 %v6082_v63  ;;  %3612 = vmatmul.mubr.bf16.gmra.mxu1 %v6085_v61  ;;  %v6100_v63 = vld [vmem:[%s6601_s2 + $0x1cc] ss:$36 sps:$4 sm:$0xff]  }
 0x200   : > { %v7068_v3 = vadd.f32 %v3099_v9, %v6953_v18  ;;  %3458 = vmatprep.mubr.bf16.mxu0 %v6091_v52  ;;  %3619 = vmatprep.mubr.bf16.mxu1 %v6094_v16 }
 0x201   : > { %v2876_v32 = vpop.f32.mrf.mxu0  ;;  %v3101_v29 = vpop.f32.mrf.mxu1 }
 0x203   : > { %v7070_v5 = vpop.f32.mrf.mxu0  ;;  %v3102_v59 = vpop.f32.mrf.mxu1 }
 0x204   : > { %v7075_v50 = vadd.f32 %v3102_v59, %v6958_v28 }
 0x205   : > { %v2879_v61 = vpop.f32.mrf.mxu0  ;;  %v3104_v18 = vpop.f32.mrf.mxu1 }
 0x206   : > { %v6098_v61 = vld [vmem:[%s6601_s2 + $0x1c8] ss:$36 sps:$4 sm:$0xff]  }
 0x207   : > { %v7079_v52 = vpop.f32.mrf.mxu0  ;;  %v3107_v16 = vpop.f32.mrf.mxu1  ;;  %3459 = vmatmul.mubr.bf16.gmra.mxu0 %v6089_v46  ;;  %3620 = vmatmul.mubr.bf16.gmra.mxu1 %v6092_v17  ;;  %v6106_v46 = vld [vmem:[%s6601_s2 + $0x214] ss:$36 sps:$4 sm:$0xff]  }
 0x208   : > { %v7082_v9 = vadd.f32 %v3107_v16, %v6967_v54  ;;  %3466 = vmatprep.mubr.bf16.mxu0 %v6097_v36  ;;  %3627 = vmatprep.mubr.bf16.mxu1 %v6100_v63 }
 0x209   : > { %v2884_v28 = vpop.f32.mrf.mxu0  ;;  %v3109_v32 = vpop.f32.mrf.mxu1 }
 0x20b   : > { %v7084_v29 = vpop.f32.mrf.mxu0  ;;  %v3110_v59 = vpop.f32.mrf.mxu1 }
 0x20c   : > { %v7089_v18 = vadd.f32 %v3110_v59, %v6972_v48 }
 0x20d   : > { %v2887_v17 = vpop.f32.mrf.mxu0  ;;  %v3112_v54 = vpop.f32.mrf.mxu1 }
 0x20e   : > { %v6104_v17 = vld [vmem:[%s6601_s2 + $0x210] ss:$36 sps:$4 sm:$0xff]  }
 0x20f   : > { %v7093_v36 = vpop.f32.mrf.mxu0  ;;  %v3115_v63 = vpop.f32.mrf.mxu1  ;;  %3467 = vmatmul.mubr.bf16.gmra.mxu0 %v6095_v31  ;;  %3628 = vmatmul.mubr.bf16.gmra.mxu1 %v6098_v61  ;;  %v6112_v31 = vld [vmem:[%s6601_s2 + $0x25c] ss:$36 sps:$4 sm:$0xff]  }
 0x210   : > { %v7096_v16 = vadd.f32 %v3115_v63, %v6981_v26  ;;  %3474 = vmatprep.mubr.bf16.mxu0 %v6103_v23  ;;  %3635 = vmatprep.mubr.bf16.mxu1 %v6106_v46 }
 0x211   : > { %v2892_v48 = vpop.f32.mrf.mxu0  ;;  %v3117_v28 = vpop.f32.mrf.mxu1 }
 0x213   : > { %v7098_v32 = vpop.f32.mrf.mxu0  ;;  %v3118_v59 = vpop.f32.mrf.mxu1 }
 0x214   : > { %v7103_v54 = vadd.f32 %v3118_v59, %v6986_v38 }
 0x215   : > { %v2895_v61 = vpop.f32.mrf.mxu0  ;;  %v3120_v26 = vpop.f32.mrf.mxu1 }
 0x216   : > { %v6110_v61 = vld [vmem:[%s6601_s2 + $0x258] ss:$36 sps:$4 sm:$0xff]  }
 0x217   : > { %v7107_v23 = vpop.f32.mrf.mxu0  ;;  %v3123_v46 = vpop.f32.mrf.mxu1  ;;  %3475 = vmatmul.mubr.bf16.gmra.mxu0 %v6101_v19  ;;  %3636 = vmatmul.mubr.bf16.gmra.mxu1 %v6104_v17 }
 0x218   : > { %v7110_v63 = vadd.f32 %v3123_v46, %v6995_v2  ;;  %3482 = vmatprep.mubr.bf16.mxu0 %v6109_v11  ;;  %3643 = vmatprep.mubr.bf16.mxu1 %v6112_v31 }
 0x219   : > { %v2900_v38 = vpop.f32.mrf.mxu0  ;;  %v3125_v48 = vpop.f32.mrf.mxu1 }
 0x21b   : > { %v7112_v28 = vpop.f32.mrf.mxu0  ;;  %v3126_v59 = vpop.f32.mrf.mxu1 }
 0x21c   : > { %v7117_v26 = vadd.f32 %v3126_v59, %v7000_v20 }
 0x21d   : > { %v2903_v19 = vpop.f32.mrf.mxu0  ;;  %v3128_v17 = vpop.f32.mrf.mxu1 }
 0x21e   : > { %v6114_v19 = vld [vmem:[%s6601_s2 + $0x718] ss:$36 sps:$4 sm:$0xff]   ;;  %v6117_v17 = vld [vmem:[%s6601_s2 + $0x2a0] ss:$36 sps:$4 sm:$0xff]  }
 0x21f   : > { %v3131_v2 = vpop.f32.mrf.mxu1  ;;  %v3292_v11 = vpop.f32.mrf.mxu0  ;;  %3483 = vmatmul.mubr.bf16.gmra.mxu0 %v6107_v7  ;;  %3644 = vmatmul.mubr.bf16.gmra.mxu1 %v6110_v61  ;;  %v6122_v61 = vld [vmem:[%s6601_s2 + $0x764] ss:$36 sps:$4 sm:$0xff]  }
 0x220   : > { %v7122_v31 = vadd.f32 %v3131_v2, %v7009_v47  ;;  %v7125_v46 = vadd.f32 %v3292_v11, %v6900_v37  ;;  %3490 = vmatprep.mubr.bf16.mxu0 %v6116_v62  ;;  %3651 = vmatprep.mubr.bf16.mxu1 %v6119_v57  ;;  %v6125_v47 = vld [vmem:[%s6601_s2 + $0x2ec] ss:$36 sps:$4 sm:$0xff]  }
 0x221   : > { %v3133_v20 = vpop.f32.mrf.mxu1  ;;  %v3294_v38 = vpop.f32.mrf.mxu0 }
 0x223   : > { %v3134_v48 = vpop.f32.mrf.mxu1  ;;  %v3295_v59 = vpop.f32.mrf.mxu0 }
 0x224   : > { %v7130_v49 = vadd.f32 %v3134_v48, %v7014_v60  ;;  %v7133_v7 = vadd.f32 %v3295_v59, %v6907_v53  ;;  %v6120_v59 = vld [vmem:[%s6601_s2 + $0x760] ss:$36 sps:$4 sm:$0xff]  }
 0x225   : > { %v3136_v37 = vpop.f32.mrf.mxu1  ;;  %v3297_v2 = vpop.f32.mrf.mxu0 }
 0x226   : > { %v6123_v37 = vld [vmem:[%s6601_s2 + $0x2e8] ss:$36 sps:$4 sm:$0xff]  }
 0x227   : > { %v3139_v62 = vpop.f32.mrf.mxu1  ;;  %v3300_v57 = vpop.f32.mrf.mxu0  ;;  %3491 = vmatmul.mubr.bf16.gmra.mxu0 %v6114_v19  ;;  %3652 = vmatmul.mubr.bf16.gmra.mxu1 %v6117_v17  ;;  %v6128_v17 = vld [vmem:[%s6601_s2 + $0x7ac] ss:$36 sps:$4 sm:$0xff]  }
 0x228   : > { %v7138_v11 = vadd.f32 %v3139_v62, %v7023_v34  ;;  %v7141_v60 = vadd.f32 %v3300_v57, %v6914_v1  ;;  %3498 = vmatprep.mubr.bf16.mxu0 %v6122_v61  ;;  %3659 = vmatprep.mubr.bf16.mxu1 %v6125_v47  ;;  %v6131_v34 = vld [vmem:[%s6601_s2 + $0x334] ss:$36 sps:$4 sm:$0xff]  }
 0x229   : > { %v3141_v53 = vpop.f32.mrf.mxu1  ;;  %v3302_v20 = vpop.f32.mrf.mxu0 }
 0x22b   : > { %v3142_v38 = vpop.f32.mrf.mxu1  ;;  %v3303_v48 = vpop.f32.mrf.mxu0 }
 0x22c   : > { %v7146_v2 = vadd.f32 %v3142_v38, %v7028_v21  ;;  %v7149_v19 = vadd.f32 %v3303_v48, %v6921_v13  ;;  %v6126_v48 = vld [vmem:[%s6601_s2 + $0x7a8] ss:$36 sps:$4 sm:$0xff]  }
 0x22d   : > { %v3144_v1 = vpop.f32.mrf.mxu1  ;;  %v3305_v62 = vpop.f32.mrf.mxu0 }
 0x22e   : > { %v6129_v1 = vld [vmem:[%s6601_s2 + $0x330] ss:$36 sps:$4 sm:$0xff]  }
 0x22f   : > { %v3147_v61 = vpop.f32.mrf.mxu1  ;;  %v3308_v47 = vpop.f32.mrf.mxu0  ;;  %3499 = vmatmul.mubr.bf16.gmra.mxu0 %v6120_v59  ;;  %3660 = vmatmul.mubr.bf16.gmra.mxu1 %v6123_v37  ;;  %v6134_v37 = vld [vmem:[%s6601_s2 + $0x7f4] ss:$36 sps:$4 sm:$0xff]  }
 0x230   : > { %v7154_v57 = vadd.f32 %v3147_v61, %v7037_v30  ;;  %v7157_v21 = vadd.f32 %v3308_v47, %v6928_v27  ;;  %3506 = vmatprep.mubr.bf16.mxu0 %v6128_v17  ;;  %3667 = vmatprep.mubr.bf16.mxu1 %v6131_v34  ;;  %v6137_v30 = vld [vmem:[%s6601_s2 + $0x37c] ss:$36 sps:$4 sm:$0xff]  }
 0x231   : > { %v3149_v13 = vpop.f32.mrf.mxu1  ;;  %v3310_v53 = vpop.f32.mrf.mxu0 }
 0x233   : > { %v3150_v20 = vpop.f32.mrf.mxu1  ;;  %v3311_v38 = vpop.f32.mrf.mxu0 }
 0x234   : > { %v7162_v62 = vadd.f32 %v3150_v20, %v7042_v10  ;;  %v7165_v59 = vadd.f32 %v3311_v38, %v6935_v39  ;;  %v6132_v38 = vld [vmem:[%s6601_s2 + $0x7f0] ss:$36 sps:$4 sm:$0xff]  }
 0x235   : > { %v3152_v27 = vpop.f32.mrf.mxu1  ;;  %v3313_v61 = vpop.f32.mrf.mxu0 }
 0x236   : > { %v6135_v27 = vld [vmem:[%s6601_s2 + $0x378] ss:$36 sps:$4 sm:$0xff]  }
 0x237   : > { %v3155_v17 = vpop.f32.mrf.mxu1  ;;  %v3316_v34 = vpop.f32.mrf.mxu0  ;;  %3507 = vmatmul.mubr.bf16.gmra.mxu0 %v6126_v48  ;;  %3668 = vmatmul.mubr.bf16.gmra.mxu1 %v6129_v1  ;;  %v6141_v1 = vld [vmem:[%s6601_s2 + $0x83c] ss:$36 sps:$4 sm:$0xff]  }
 0x238   : > { %v7170_v47 = vadd.f32 %v3155_v17, %v7051_v24  ;;  %v7173_v10 = vadd.f32 %v3316_v34, %v6942_v43  ;;  %3514 = vmatprep.mubr.bf16.mxu0 %v6134_v37  ;;  %3675 = vmatprep.mubr.bf16.mxu1 %v6137_v30  ;;  %v6144_v24 = vld [vmem:[%s6601_s2 + $0x3c4] ss:$36 sps:$4 sm:$0xff]  }
 0x239   : > { %v3157_v39 = vpop.f32.mrf.mxu1  ;;  %v3318_v13 = vpop.f32.mrf.mxu0 }
 0x23b   : > { %v3158_v53 = vpop.f32.mrf.mxu1  ;;  %v3319_v20 = vpop.f32.mrf.mxu0 }
 0x23c   : > { %v7178_v61 = vadd.f32 %v3158_v53, %v7056_v41  ;;  %v7181_v48 = vadd.f32 %v3319_v20, %v6949_v8  ;;  %v6139_v20 = vld [vmem:[%s6601_s2 + $0x838] ss:$36 sps:$4 sm:$0xff]  }
 0x23d   : > { %v3160_v43 = vpop.f32.mrf.mxu1  ;;  %v3321_v17 = vpop.f32.mrf.mxu0 }
 0x23e   : > { %v6142_v43 = vld [vmem:[%s6601_s2 + $0x3c0] ss:$36 sps:$4 sm:$0xff]  }
 0x23f   : > { %v3163_v37 = vpop.f32.mrf.mxu1  ;;  %v3324_v30 = vpop.f32.mrf.mxu0  ;;  %3515 = vmatmul.mubr.bf16.gmra.mxu0 %v6132_v38  ;;  %3676 = vmatmul.mubr.bf16.gmra.mxu1 %v6135_v27  ;;  %v6147_v27 = vld [vmem:[%s6601_s2 + $0x884] ss:$36 sps:$4 sm:$0xff]  }
 0x240   : > { %v7186_v34 = vadd.f32 %v3163_v37, %v7065_v4  ;;  %v7189_v41 = vadd.f32 %v3324_v30, %v6956_v56  ;;  %3522 = vmatprep.mubr.bf16.mxu0 %v6141_v1  ;;  %3683 = vmatprep.mubr.bf16.mxu1 %v6144_v24  ;;  %v6150_v4 = vld [vmem:[%s6601_s2 + $0x40c] ss:$36 sps:$4 sm:$0xff]  }
 0x241   : > { %v3165_v8 = vpop.f32.mrf.mxu1  ;;  %v3326_v39 = vpop.f32.mrf.mxu0 }
 0x243   : > { %v3166_v13 = vpop.f32.mrf.mxu1  ;;  %v3327_v53 = vpop.f32.mrf.mxu0 }
 0x244   : > { %v7194_v17 = vadd.f32 %v3166_v13, %v7070_v5  ;;  %v7197_v38 = vadd.f32 %v3327_v53, %v6963_v40  ;;  %v6145_v53 = vld [vmem:[%s6601_s2 + $0x880] ss:$36 sps:$4 sm:$0xff]  }
 0x245   : > { %v3168_v56 = vpop.f32.mrf.mxu1  ;;  %v3329_v37 = vpop.f32.mrf.mxu0 }
 0x246   : > { %v6148_v56 = vld [vmem:[%s6601_s2 + $0x408] ss:$36 sps:$4 sm:$0xff]  }
 0x247   : > { %v3171_v1 = vpop.f32.mrf.mxu1  ;;  %v3332_v24 = vpop.f32.mrf.mxu0  ;;  %3523 = vmatmul.mubr.bf16.gmra.mxu0 %v6139_v20  ;;  %3684 = vmatmul.mubr.bf16.gmra.mxu1 %v6142_v43  ;;  %v6153_v43 = vld [vmem:[%s6601_s2 + $0x8cc] ss:$36 sps:$4 sm:$0xff]  }
 0x248   : > { %v7202_v30 = vadd.f32 %v3171_v1, %v7079_v52  ;;  %v7205_v5 = vadd.f32 %v3332_v24, %v6970_v55  ;;  %3530 = vmatprep.mubr.bf16.mxu0 %v6147_v27  ;;  %3691 = vmatprep.mubr.bf16.mxu1 %v6150_v4  ;;  %v6156_v52 = vld [vmem:[%s6601_s2 + $0x454] ss:$36 sps:$4 sm:$0xff]  }
 0x249   : > { %v3173_v40 = vpop.f32.mrf.mxu1  ;;  %v3334_v8 = vpop.f32.mrf.mxu0 }
 0x24b   : > { %v3174_v39 = vpop.f32.mrf.mxu1  ;;  %v3335_v13 = vpop.f32.mrf.mxu0 }
 0x24c   : > { %v7210_v37 = vadd.f32 %v3174_v39, %v7084_v29  ;;  %v7213_v20 = vadd.f32 %v3335_v13, %v6977_v14  ;;  %v6151_v13 = vld [vmem:[%s6601_s2 + $0x8c8] ss:$36 sps:$4 sm:$0xff]  }
 0x24d   : > { %v3176_v55 = vpop.f32.mrf.mxu1  ;;  %v3337_v1 = vpop.f32.mrf.mxu0 }
 0x24e   : > { %v6154_v55 = vld [vmem:[%s6601_s2 + $0x450] ss:$36 sps:$4 sm:$0xff]  }
 0x24f   : > { %v3179_v27 = vpop.f32.mrf.mxu1  ;;  %v3340_v4 = vpop.f32.mrf.mxu0  ;;  %3531 = vmatmul.mubr.bf16.gmra.mxu0 %v6145_v53  ;;  %3692 = vmatmul.mubr.bf16.gmra.mxu1 %v6148_v56  ;;  %v6159_v56 = vld [vmem:[%s6601_s2 + $0x49c] ss:$36 sps:$4 sm:$0xff]  }
 0x250   : > { %v7218_v24 = vadd.f32 %v3179_v27, %v7093_v36  ;;  %v7221_v29 = vadd.f32 %v3340_v4, %v6984_v33  ;;  %3538 = vmatprep.mubr.bf16.mxu0 %v6153_v43  ;;  %3699 = vmatprep.mubr.bf16.mxu1 %v6156_v52  ;;  %v6160_v36 = vld [vmem:[%s6601_s2 + $0x20] ss:$36 sps:$4 sm:$0xff]  }
 0x251   : > { %v3181_v14 = vpop.f32.mrf.mxu1  ;;  %v3342_v40 = vpop.f32.mrf.mxu0 }
 0x253   : > { %v3182_v8 = vpop.f32.mrf.mxu1  ;;  %v3343_v39 = vpop.f32.mrf.mxu0 }
 0x254   : > { %v7226_v1 = vadd.f32 %v3182_v8, %v7098_v32  ;;  %v7229_v53 = vadd.f32 %v3343_v39, %v6991_v6  ;;  %v6157_v39 = vld [vmem:[%s6601_s2 + $0x498] ss:$36 sps:$4 sm:$0xff]  }
 0x255   : > { %v3184_v33 = vpop.f32.mrf.mxu1  ;;  %v3345_v27 = vpop.f32.mrf.mxu0 }
 0x256   : > { %v6161_v33 = vld [vmem:[%s6601_s2 + $0x68] ss:$36 sps:$4 sm:$0xff]  }
 0x257   : > { %v3187_v43 = vpop.f32.mrf.mxu1  ;;  %v3348_v52 = vpop.f32.mrf.mxu0  ;;  %3539 = vmatmul.mubr.bf16.gmra.mxu0 %v6151_v13  ;;  %3700 = vmatmul.mubr.bf16.gmra.mxu1 %v6154_v55  ;;  %v6165_v55 = vld [vmem:[%s6601_s2 + $0xb0] ss:$36 sps:$4 sm:$0xff]  }
 0x258   : > { %v7234_v4 = vadd.f32 %v3187_v43, %v7107_v23  ;;  %v7237_v32 = vadd.f32 %v3348_v52, %v6998_v12  ;;  %3707 = vmatprep.mubr.bf16.mxu1 %v6159_v56  ;;  %5550 = vmatprep.mubr.bf16.mxu0 %v6160_v36  ;;  %v6164_v23 = vld [vmem:[%s6601_s2 + $0x4e4] ss:$36 sps:$4 sm:$0xff]  }
 0x259   : > { %v3189_v6 = vpop.f32.mrf.mxu1  ;;  %v3350_v14 = vpop.f32.mrf.mxu0 }
 0x25b   : > { %v3190_v40 = vpop.f32.mrf.mxu1  ;;  %v3351_v8 = vpop.f32.mrf.mxu0 }
 0x25c   : > { %v7242_v27 = vadd.f32 %v3190_v40, %v7112_v28  ;;  %v7245_v13 = vadd.f32 %v3351_v8, %v7005_v51  ;;  %v6162_v40 = vld [vmem:[%s6601_s2 + $0x4e0] ss:$36 sps:$4 sm:$0xff]   ;;  %v6166_v8 = vld [vmem:[%s6601_s2 + $0xf8] ss:$36 sps:$4 sm:$0xff]  }
 0x25d   : > { %v3192_v12 = vpop.f32.mrf.mxu1  ;;  %v3353_v56 = vpop.f32.mrf.mxu0 }
 0x25e   : > { %v6169_v56 = vld [vmem:[%s6601_s2 + $0x52c] ss:$36 sps:$4 sm:$0xff]  }
 0x25f   : > { %v7249_v36 = vpop.f32.mrf.mxu1  ;;  %v3356_v43 = vpop.f32.mrf.mxu0  ;;  %3708 = vmatmul.mubr.bf16.gmra.mxu1 %v6157_v39  ;;  %5551 = vmatmul.mubr.bf16.vlgmr.msra.gmra.mxu0 %v6161_v33  ;;  %v6170_v39 = vld [vmem:[%s6601_s2 + $0x140] ss:$36 sps:$4 sm:$0xff]  }
 0x260   : > { %v7252_v52 = vadd.f32 %v3356_v43, %v7012_v35  ;;  %3715 = vmatprep.mubr.bf16.mxu1 %v6164_v23  ;;  %5554 = vmatprep.mubr.bf16.mxu0 %v6165_v55 }
 0x261   : > { %v3197_v51 = vpop.f32.mrf.mxu1  ;;  %v3358_v28 = vpop.f32.mrf.mxu0 }
 0x263   : > { %v7254_v6 = vpop.f32.mrf.mxu1  ;;  %v3359_v14 = vpop.f32.mrf.mxu0 }
 0x264   : > { %v7259_v12 = vadd.f32 %v3359_v14, %v7019_v22 }
 0x265   : > { %v3200_v33 = vpop.f32.mrf.mxu1  ;;  %v3361_v35 = vpop.f32.mrf.mxu0 }
 0x266   : > { %7989 = vst [vmem:[#allocation30_spill] sm:$0xff] %v7259_v12  ;;  %v6167_v12 = vld [vmem:[%s6601_s2 + $0x528] ss:$36 sps:$4 sm:$0xff]  }
 0x267   : > { %v7263_v23 = vpop.f32.mrf.mxu1  ;;  %v3364_v55 = vpop.f32.mrf.mxu0  ;;  %3716 = vmatmul.mubr.bf16.gmra.mxu1 %v6162_v40  ;;  %5555 = vmatmul.mubr.bf16.gmra.mxu0 %v6166_v8  ;;  %v6171_v33 = vld [vmem:[%s6601_s2 + $0x188] ss:$36 sps:$4 sm:$0xff]   ;;  %v6175_v40 = vld [vmem:[%s6601_s2 + $0x1d0] ss:$36 sps:$4 sm:$0xff]  }
 0x268   : > { %7990 = vst [vmem:[#allocation31_spill] sm:$0xff] %v7263_v23  ;;  %v7266_v43 = vadd.f32 %v3364_v55, %v7026_v15  ;;  %3723 = vmatprep.mubr.bf16.mxu1 %v6169_v56  ;;  %5558 = vmatprep.mubr.bf16.mxu0 %v6170_v39  ;;  %v6174_v23 = vld [vmem:[%s6601_s2 + $0x574] ss:$36 sps:$4 sm:$0xff]  }
 0x269   : > { %v3205_v22 = vpop.f32.mrf.mxu1  ;;  %v3366_v51 = vpop.f32.mrf.mxu0 }
 0x26b   : > { %v7268_v28 = vpop.f32.mrf.mxu1  ;;  %v3367_v14 = vpop.f32.mrf.mxu0 }
 0x26c   : > { %v7273_v35 = vadd.f32 %v3367_v14, %v7033_v0 }
 0x26d   : > { %v3208_v8 = vpop.f32.mrf.mxu1  ;;  %v3369_v15 = vpop.f32.mrf.mxu0 }
 0x26e   : > { %7991 = vst [vmem:[#allocation32_spill] sm:$0xff] %v7273_v35  ;;  %v6172_v35 = vld [vmem:[%s6601_s2 + $0x570] ss:$36 sps:$4 sm:$0xff]   ;;  %v6176_v8 = vld [vmem:[%s6601_s2 + $0x218] ss:$36 sps:$4 sm:$0xff]  }
 0x26f   : > { %v7277_v56 = vpop.f32.mrf.mxu1  ;;  %v3372_v39 = vpop.f32.mrf.mxu0  ;;  %3724 = vmatmul.mubr.bf16.gmra.mxu1 %v6167_v12  ;;  %5559 = vmatmul.mubr.bf16.gmra.mxu0 %v6171_v33  ;;  %v6180_v12 = vld [vmem:[%s6601_s2 + $0x260] ss:$36 sps:$4 sm:$0xff]  }
 0x270   : > { %7992 = vst [vmem:[#allocation33_spill] sm:$0xff] %v7277_v56  ;;  %v7280_v55 = vadd.f32 %v3372_v39, %v7040_v42  ;;  %3731 = vmatprep.mubr.bf16.mxu1 %v6174_v23  ;;  %5562 = vmatprep.mubr.bf16.mxu0 %v6175_v40  ;;  %v6179_v56 = vld [vmem:[%s6601_s2 + $0x5bc] ss:$36 sps:$4 sm:$0xff]  }
 0x271   : > { %v3213_v0 = vpop.f32.mrf.mxu1  ;;  %v3374_v22 = vpop.f32.mrf.mxu0 }
 0x273   : > { %v7282_v51 = vpop.f32.mrf.mxu1  ;;  %v3375_v14 = vpop.f32.mrf.mxu0 }
 0x274   : > { %v7287_v15 = vadd.f32 %v3375_v14, %v7047_v58 }
 0x275   : > { %v3216_v33 = vpop.f32.mrf.mxu1  ;;  %v3377_v42 = vpop.f32.mrf.mxu0 }
 0x276   : > { %7993 = vst [vmem:[#allocation34_spill] sm:$0xff] %v7287_v15  ;;  %v6177_v15 = vld [vmem:[%s6601_s2 + $0x5b8] ss:$36 sps:$4 sm:$0xff]   ;;  %v6181_v33 = vld [vmem:[%s6601_s2 + $0x2a8] ss:$36 sps:$4 sm:$0xff]  }
 0x277   : > { %v7291_v23 = vpop.f32.mrf.mxu1  ;;  %v3380_v40 = vpop.f32.mrf.mxu0  ;;  %3732 = vmatmul.mubr.bf16.gmra.mxu1 %v6172_v35  ;;  %5563 = vmatmul.mubr.bf16.gmra.mxu0 %v6176_v8  ;;  %v6185_v35 = vld [vmem:[%s6601_s2 + $0x2f0] ss:$36 sps:$4 sm:$0xff]  }
 0x278   : > { %7994 = vst [vmem:[#allocation35_spill] sm:$0xff] %v7291_v23  ;;  %v7294_v39 = vadd.f32 %v3380_v40, %v7054_v45  ;;  %3739 = vmatprep.mubr.bf16.mxu1 %v6179_v56  ;;  %5566 = vmatprep.mubr.bf16.mxu0 %v6180_v12  ;;  %v6184_v23 = vld [vmem:[%s6601_s2 + $0x604] ss:$36 sps:$4 sm:$0xff]  }
 0x279   : > { %v3221_v58 = vpop.f32.mrf.mxu1  ;;  %v3382_v0 = vpop.f32.mrf.mxu0 }
 0x27b   : > { %v7296_v22 = vpop.f32.mrf.mxu1  ;;  %v3383_v14 = vpop.f32.mrf.mxu0 }
 0x27c   : > { %v7301_v42 = vadd.f32 %v3383_v14, %v7061_v25 }
 0x27d   : > { %v3224_v8 = vpop.f32.mrf.mxu1  ;;  %v3385_v45 = vpop.f32.mrf.mxu0 }
 0x27e   : > { %7995 = vst [vmem:[#allocation36_spill] sm:$0xff] %v7301_v42  ;;  %v6182_v42 = vld [vmem:[%s6601_s2 + $0x600] ss:$36 sps:$4 sm:$0xff]   ;;  %v6186_v8 = vld [vmem:[%s6601_s2 + $0x338] ss:$36 sps:$4 sm:$0xff]  }
 0x27f   : > { %v7305_v56 = vpop.f32.mrf.mxu1  ;;  %v3388_v12 = vpop.f32.mrf.mxu0  ;;  %3740 = vmatmul.mubr.bf16.gmra.mxu1 %v6177_v15  ;;  %5567 = vmatmul.mubr.bf16.gmra.mxu0 %v6181_v33  ;;  %v6190_v15 = vld [vmem:[%s6601_s2 + $0x380] ss:$36 sps:$4 sm:$0xff]  }
 0x280   : > { %7996 = vst [vmem:[#allocation37_spill] sm:$0xff] %v7305_v56  ;;  %v7308_v40 = vadd.f32 %v3388_v12, %v7068_v3  ;;  %3747 = vmatprep.mubr.bf16.mxu1 %v6184_v23  ;;  %5570 = vmatprep.mubr.bf16.mxu0 %v6185_v35  ;;  %v6189_v56 = vld [vmem:[%s6601_s2 + $0x64c] ss:$36 sps:$4 sm:$0xff]  }
 0x281   : > { %v3229_v25 = vpop.f32.mrf.mxu1  ;;  %v3390_v58 = vpop.f32.mrf.mxu0 }
 0x283   : > { %v7310_v0 = vpop.f32.mrf.mxu1  ;;  %v3391_v14 = vpop.f32.mrf.mxu0 }
 0x284   : > { %v7315_v45 = vadd.f32 %v3391_v14, %v7075_v50 }
 0x285   : > { %v3232_v33 = vpop.f32.mrf.mxu1  ;;  %v3393_v3 = vpop.f32.mrf.mxu0 }
 0x286   : > { %7997 = vst [vmem:[#allocation38_spill] sm:$0xff] %v7315_v45  ;;  %v6187_v45 = vld [vmem:[%s6601_s2 + $0x648] ss:$36 sps:$4 sm:$0xff]  }
 0x287   : > { %v7319_v23 = vpop.f32.mrf.mxu1  ;;  %v3396_v35 = vpop.f32.mrf.mxu0  ;;  %3748 = vmatmul.mubr.bf16.gmra.mxu1 %v6182_v42  ;;  %5571 = vmatmul.mubr.bf16.gmra.mxu0 %v6186_v8  ;;  %v6191_v33 = vld [vmem:[%s6601_s2 + $0x3c8] ss:$36 sps:$4 sm:$0xff]   ;;  %v6195_v42 = vld [vmem:[%s6601_s2 + $0x410] ss:$36 sps:$4 sm:$0xff]  }
 0x288   : > { %7998 = vst [vmem:[#allocation39_spill] sm:$0xff] %v7319_v23  ;;  %v7322_v12 = vadd.f32 %v3396_v35, %v7082_v9  ;;  %3755 = vmatprep.mubr.bf16.mxu1 %v6189_v56  ;;  %5574 = vmatprep.mubr.bf16.mxu0 %v6190_v15  ;;  %v6194_v23 = vld [vmem:[%s6601_s2 + $0x694] ss:$36 sps:$4 sm:$0xff]  }
 0x289   : > { %v3237_v50 = vpop.f32.mrf.mxu1  ;;  %v3398_v25 = vpop.f32.mrf.mxu0 }
 0x28b   : > { %v7324_v58 = vpop.f32.mrf.mxu1  ;;  %v3399_v14 = vpop.f32.mrf.mxu0 }
 0x28c   : > { %v7329_v3 = vadd.f32 %v3399_v14, %v7089_v18 }
 0x28d   : > { %v3240_v8 = vpop.f32.mrf.mxu1  ;;  %v3401_v9 = vpop.f32.mrf.mxu0 }
 0x28e   : > { %7999 = vst [vmem:[#allocation40_spill] sm:$0xff] %v7329_v3  ;;  %v6192_v3 = vld [vmem:[%s6601_s2 + $0x690] ss:$36 sps:$4 sm:$0xff]   ;;  %v6196_v8 = vld [vmem:[%s6601_s2 + $0x458] ss:$36 sps:$4 sm:$0xff]  }
 0x28f   : > { %v7333_v56 = vpop.f32.mrf.mxu1  ;;  %v3404_v15 = vpop.f32.mrf.mxu0  ;;  %3756 = vmatmul.mubr.bf16.gmra.mxu1 %v6187_v45  ;;  %5575 = vmatmul.mubr.bf16.gmra.mxu0 %v6191_v33  ;;  %v6200_v45 = vld [vmem:[%s6601_s2 + $0x4a0] ss:$36 sps:$4 sm:$0xff]  }
 0x290   : > { %8000 = vst [vmem:[#allocation41_spill] sm:$0xff] %v7333_v56  ;;  %v7336_v35 = vadd.f32 %v3404_v15, %v7096_v16  ;;  %3763 = vmatprep.mubr.bf16.mxu1 %v6194_v23  ;;  %5578 = vmatprep.mubr.bf16.mxu0 %v6195_v42  ;;  %v6199_v56 = vld [vmem:[%s6601_s2 + $0x6dc] ss:$36 sps:$4 sm:$0xff]  }
 0x291   : > { %v3245_v18 = vpop.f32.mrf.mxu1  ;;  %v3406_v50 = vpop.f32.mrf.mxu0 }
 0x293   : > { %v7338_v25 = vpop.f32.mrf.mxu1  ;;  %v3407_v14 = vpop.f32.mrf.mxu0 }
 0x294   : > { %8001 = vst [vmem:[#allocation42_spill] sm:$0xff] %v7338_v25  ;;  %v7343_v9 = vadd.f32 %v3407_v14, %v7103_v54  ;;  %v6204_v25 = vld [vmem:[%s6601_s2 + $0x724] ss:$36 sps:$4 sm:$0xff]  }
 0x295   : > { %v3248_v33 = vpop.f32.mrf.mxu1  ;;  %v3409_v16 = vpop.f32.mrf.mxu0 }
 0x296   : > { %8002 = vst [vmem:[#allocation43_spill] sm:$0xff] %v7343_v9  ;;  %v6197_v9 = vld [vmem:[%s6601_s2 + $0x6d8] ss:$36 sps:$4 sm:$0xff]   ;;  %v6201_v33 = vld [vmem:[%s6601_s2 + $0x4e8] ss:$36 sps:$4 sm:$0xff]  }
 0x297   : > { %v7347_v23 = vpop.f32.mrf.mxu1  ;;  %v3412_v42 = vpop.f32.mrf.mxu0  ;;  %3764 = vmatmul.mubr.bf16.gmra.mxu1 %v6192_v3  ;;  %5579 = vmatmul.mubr.bf16.gmra.mxu0 %v6196_v8 }
 0x298   : > { %8003 = vst [vmem:[#allocation44_spill] sm:$0xff] %v7347_v23  ;;  %v7350_v15 = vadd.f32 %v3412_v42, %v7110_v63  ;;  %3771 = vmatprep.mubr.bf16.mxu1 %v6199_v56  ;;  %5582 = vmatprep.mubr.bf16.mxu0 %v6200_v45  ;;  %v6205_v23 = vld [vmem:[%s6601_s2 + $0x530] ss:$36 sps:$4 sm:$0xff]  }
 0x299   : > { %v3253_v54 = vpop.f32.mrf.mxu1  ;;  %v3414_v18 = vpop.f32.mrf.mxu0 }
 0x29b   : > { %v7352_v50 = vpop.f32.mrf.mxu1  ;;  %v3415_v14 = vpop.f32.mrf.mxu0 }
 0x29c   : > { %v7357_v16 = vadd.f32 %v3415_v14, %v7117_v26 }
 0x29d   : > { %v3256_v3 = vpop.f32.mrf.mxu1  ;;  %v3417_v8 = vpop.f32.mrf.mxu0 }
 0x29e   : > { %8004 = vst [vmem:[#allocation45_spill] sm:$0xff] %v7357_v16  ;;  %v6202_v3 = vld [vmem:[%s6601_s2 + $0x720] ss:$36 sps:$4 sm:$0xff]   ;;  %v6206_v8 = vld [vmem:[%s6601_s2 + $0x578] ss:$36 sps:$4 sm:$0xff]  }
 0x29f   : > { %v3420_v63 = vpop.f32.mrf.mxu0  ;;  %v3581_v56 = vpop.f32.mrf.mxu1  ;;  %3772 = vmatmul.mubr.bf16.gmra.mxu1 %v6197_v9  ;;  %5583 = vmatmul.mubr.bf16.gmra.mxu0 %v6201_v33  ;;  %v6209_v33 = vld [vmem:[%s6601_s2 + $0x76c] ss:$36 sps:$4 sm:$0xff]  }
 0x2a0   : > { %v7362_v45 = vadd.f32 %v3420_v63, %v7122_v31  ;;  %v7365_v42 = vadd.f32 %v3581_v56, %v7125_v46  ;;  %3779 = vmatprep.mubr.bf16.mxu1 %v6204_v25  ;;  %5586 = vmatprep.mubr.bf16.mxu0 %v6205_v23  ;;  %v6210_v31 = vld [vmem:[%s6601_s2 + $0x5c0] ss:$36 sps:$4 sm:$0xff]  }
 0x2a1   : > { %v3422_v26 = vpop.f32.mrf.mxu0  ;;  %v3583_v54 = vpop.f32.mrf.mxu1 }
 0x2a3   : > { %v3423_v18 = vpop.f32.mrf.mxu0  ;;  %v3584_v14 = vpop.f32.mrf.mxu1 }
 0x2a4   : > { %v7370_v16 = vadd.f32 %v3423_v18, %v7130_v49  ;;  %v7373_v9 = vadd.f32 %v3584_v14, %v7133_v7  ;;  %v6207_v14 = vld [vmem:[%s6601_s2 + $0x768] ss:$36 sps:$4 sm:$0xff]  }
 0x2a5   : > { %v3425_v46 = vpop.f32.mrf.mxu0  ;;  %v3586_v63 = vpop.f32.mrf.mxu1 }
 0x2a6   : > { %v6211_v46 = vld [vmem:[%s6601_s2 + $0x608] ss:$36 sps:$4 sm:$0xff]  }
 0x2a7   : > { %v3428_v25 = vpop.f32.mrf.mxu0  ;;  %v3589_v23 = vpop.f32.mrf.mxu1  ;;  %3780 = vmatmul.mubr.bf16.gmra.mxu1 %v6202_v3  ;;  %5587 = vmatmul.mubr.bf16.gmra.mxu0 %v6206_v8  ;;  %v6214_v8 = vld [vmem:[%s6601_s2 + $0x7b4] ss:$36 sps:$4 sm:$0xff]  }
 0x2a8   : > { %v7378_v56 = vadd.f32 %v3428_v25, %v7138_v11  ;;  %v7381_v49 = vadd.f32 %v3589_v23, %v7141_v60  ;;  %3787 = vmatprep.mubr.bf16.mxu1 %v6209_v33  ;;  %5590 = vmatprep.mubr.bf16.mxu0 %v6210_v31  ;;  %v6215_v11 = vld [vmem:[%s6601_s2 + $0x650] ss:$36 sps:$4 sm:$0xff]  }
 0x2a9   : > { %v3430_v7 = vpop.f32.mrf.mxu0  ;;  %v3591_v26 = vpop.f32.mrf.mxu1 }
 0x2ab   : > { %v3431_v54 = vpop.f32.mrf.mxu0  ;;  %v3592_v18 = vpop.f32.mrf.mxu1 }
 0x2ac   : > { %v7386_v63 = vadd.f32 %v3431_v54, %v7146_v2  ;;  %v7389_v3 = vadd.f32 %v3592_v18, %v7149_v19  ;;  %v6212_v18 = vld [vmem:[%s6601_s2 + $0x7b0] ss:$36 sps:$4 sm:$0xff]  }
 0x2ad   : > { %v3433_v60 = vpop.f32.mrf.mxu0  ;;  %v3594_v25 = vpop.f32.mrf.mxu1 }
 0x2ae   : > { %v6216_v60 = vld [vmem:[%s6601_s2 + $0x698] ss:$36 sps:$4 sm:$0xff]  }
 0x2af   : > { %v3436_v33 = vpop.f32.mrf.mxu0  ;;  %v3597_v31 = vpop.f32.mrf.mxu1  ;;  %3788 = vmatmul.mubr.bf16.gmra.mxu1 %v6207_v14  ;;  %5591 = vmatmul.mubr.bf16.gmra.mxu0 %v6211_v46  ;;  %v6219_v46 = vld [vmem:[%s6601_s2 + $0x7fc] ss:$36 sps:$4 sm:$0xff]  }
 0x2b0   : > { %v7394_v23 = vadd.f32 %v3436_v33, %v7154_v57  ;;  %v7397_v2 = vadd.f32 %v3597_v31, %v7157_v21  ;;  %3795 = vmatprep.mubr.bf16.mxu1 %v6214_v8  ;;  %5594 = vmatprep.mubr.bf16.mxu0 %v6215_v11  ;;  %v6220_v57 = vld [vmem:[%s6601_s2 + $0x6e0] ss:$36 sps:$4 sm:$0xff]  }
 0x2b1   : > { %v3438_v19 = vpop.f32.mrf.mxu0  ;;  %v3599_v7 = vpop.f32.mrf.mxu1 }
 0x2b3   : > { %v3439_v26 = vpop.f32.mrf.mxu0  ;;  %v3600_v54 = vpop.f32.mrf.mxu1 }
 0x2b4   : > { %v7402_v25 = vadd.f32 %v3439_v26, %v7162_v62  ;;  %v7405_v14 = vadd.f32 %v3600_v54, %v7165_v59  ;;  %v6217_v54 = vld [vmem:[%s6601_s2 + $0x7f8] ss:$36 sps:$4 sm:$0xff]  }
 0x2b5   : > { %v3441_v21 = vpop.f32.mrf.mxu0  ;;  %v3602_v33 = vpop.f32.mrf.mxu1 }
 0x2b6   : > { %v6221_v21 = vld [vmem:[%s6601_s2 + $0x728] ss:$36 sps:$4 sm:$0xff]  }
 0x2b7   : > { %v3444_v8 = vpop.f32.mrf.mxu0  ;;  %v3605_v11 = vpop.f32.mrf.mxu1  ;;  %3796 = vmatmul.mubr.bf16.gmra.mxu1 %v6212_v18  ;;  %5595 = vmatmul.mubr.bf16.gmra.mxu0 %v6216_v60  ;;  %v6224_v60 = vld [vmem:[%s6601_s2 + $0x844] ss:$36 sps:$4 sm:$0xff]  }
 0x2b8   : > { %v7410_v31 = vadd.f32 %v3444_v8, %v7170_v47  ;;  %v7413_v62 = vadd.f32 %v3605_v11, %v7173_v10  ;;  %3803 = vmatprep.mubr.bf16.mxu1 %v6219_v46  ;;  %5598 = vmatprep.mubr.bf16.mxu0 %v6220_v57  ;;  %v6225_v47 = vld [vmem:[%s6601_s2 + $0x770] ss:$36 sps:$4 sm:$0xff]  }
 0x2b9   : > { %v3446_v59 = vpop.f32.mrf.mxu0  ;;  %v3607_v19 = vpop.f32.mrf.mxu1 }
 0x2bb   : > { %v3447_v7 = vpop.f32.mrf.mxu0  ;;  %v3608_v26 = vpop.f32.mrf.mxu1 }
 0x2bc   : > { %v7418_v33 = vadd.f32 %v3447_v7, %v7178_v61  ;;  %v7421_v18 = vadd.f32 %v3608_v26, %v7181_v48  ;;  %v6222_v26 = vld [vmem:[%s6601_s2 + $0x840] ss:$36 sps:$4 sm:$0xff]  }
 0x2bd   : > { %v3449_v10 = vpop.f32.mrf.mxu0  ;;  %v3610_v8 = vpop.f32.mrf.mxu1 }
 0x2be   : > { %v6226_v10 = vld [vmem:[%s6601_s2 + $0x7b8] ss:$36 sps:$4 sm:$0xff]  }
 0x2bf   : > { %v3452_v46 = vpop.f32.mrf.mxu0  ;;  %v3613_v57 = vpop.f32.mrf.mxu1  ;;  %3804 = vmatmul.mubr.bf16.gmra.mxu1 %v6217_v54  ;;  %5599 = vmatmul.mubr.bf16.gmra.mxu0 %v6221_v21  ;;  %v6229_v21 = vld [vmem:[%s6601_s2 + $0x88c] ss:$36 sps:$4 sm:$0xff]  }
 0x2c0   : > { %v7426_v11 = vadd.f32 %v3452_v46, %v7186_v34  ;;  %v7429_v61 = vadd.f32 %v3613_v57, %v7189_v41  ;;  %3811 = vmatprep.mubr.bf16.mxu1 %v6224_v60  ;;  %5602 = vmatprep.mubr.bf16.mxu0 %v6225_v47  ;;  %v6230_v34 = vld [vmem:[%s6601_s2 + $0x800] ss:$36 sps:$4 sm:$0xff]  }
 0x2c1   : > { %v3454_v48 = vpop.f32.mrf.mxu0  ;;  %v3615_v59 = vpop.f32.mrf.mxu1 }
 0x2c3   : > { %v3455_v19 = vpop.f32.mrf.mxu0  ;;  %v3616_v7 = vpop.f32.mrf.mxu1 }
 0x2c4   : > { %v7434_v8 = vadd.f32 %v3455_v19, %v7194_v17  ;;  %v7437_v54 = vadd.f32 %v3616_v7, %v7197_v38  ;;  %v6227_v7 = vld [vmem:[%s6601_s2 + $0x888] ss:$36 sps:$4 sm:$0xff]  }
 0x2c5   : > { %v3457_v41 = vpop.f32.mrf.mxu0  ;;  %v3618_v46 = vpop.f32.mrf.mxu1 }
 0x2c6   : > { %8005 = vst [vmem:[#allocation46_spill] sm:$0xff] %v7434_v8  ;;  %v6231_v41 = vld [vmem:[%s6601_s2 + $0x848] ss:$36 sps:$4 sm:$0xff]   ;;  %v6236_v8 = vld [vmem:[%s6601_s2 + $0x8d8] ss:$36 sps:$4 sm:$0xff]  }
 0x2c7   : > { %v3460_v60 = vpop.f32.mrf.mxu0  ;;  %v3621_v47 = vpop.f32.mrf.mxu1  ;;  %3812 = vmatmul.mubr.bf16.gmra.mxu1 %v6222_v26  ;;  %5603 = vmatmul.mubr.bf16.gmra.mxu0 %v6226_v10  ;;  %v6234_v10 = vld [vmem:[%s6601_s2 + $0x8d4] ss:$36 sps:$4 sm:$0xff]  }
 0x2c8   : > { %v7442_v57 = vadd.f32 %v3460_v60, %v7202_v30  ;;  %v7445_v17 = vadd.f32 %v3621_v47, %v7205_v5  ;;  %3819 = vmatprep.mubr.bf16.mxu1 %v6229_v21  ;;  %5606 = vmatprep.mubr.bf16.mxu0 %v6230_v34  ;;  %v6235_v30 = vld [vmem:[%s6601_s2 + $0x890] ss:$36 sps:$4 sm:$0xff]  }
 0x2c9   : > { %v3462_v38 = vpop.f32.mrf.mxu0  ;;  %v3623_v48 = vpop.f32.mrf.mxu1 }
 0x2cb   : > { %v3463_v59 = vpop.f32.mrf.mxu0  ;;  %v3624_v19 = vpop.f32.mrf.mxu1 }
 0x2cc   : > { %v7450_v46 = vadd.f32 %v3463_v59, %v7210_v37  ;;  %v7453_v26 = vadd.f32 %v3624_v19, %v7213_v20  ;;  %v6232_v19 = vld [vmem:[%s6601_s2 + $0x8d0] ss:$36 sps:$4 sm:$0xff]  }
 0x2cd   : > { %v3465_v5 = vpop.f32.mrf.mxu0  ;;  %v3626_v60 = vpop.f32.mrf.mxu1 }
 0x2cf   : > { %v3468_v21 = vpop.f32.mrf.mxu0  ;;  %v3629_v34 = vpop.f32.mrf.mxu1  ;;  %3820 = vmatmul.mubr.bf16.gmra.mxu1 %v6227_v7  ;;  %5607 = vmatmul.mubr.bf16.gmra.mxu0 %v6231_v41 }
 0x2d0   : > { %v7458_v47 = vadd.f32 %v3468_v21, %v7218_v24  ;;  %v7461_v38 = vadd.f32 %v3629_v34, %v7221_v29  ;;  %3827 = vmatprep.mubr.bf16.mxu1 %v6234_v10  ;;  %5610 = vmatprep.mubr.bf16.mxu0 %v6235_v30 }
 0x2d1   : > { %v3470_v37 = vpop.f32.mrf.mxu0  ;;  %v3631_v20 = vpop.f32.mrf.mxu1 }
 0x2d3   : > { %v3471_v48 = vpop.f32.mrf.mxu0  ;;  %v3632_v59 = vpop.f32.mrf.mxu1 }
 0x2d4   : > { %v7466_v5 = vadd.f32 %v3471_v48, %v7226_v1  ;;  %v7469_v7 = vadd.f32 %v3632_v59, %v7229_v53 }
 0x2d5   : > { %v3473_v41 = vpop.f32.mrf.mxu0  ;;  %v3634_v24 = vpop.f32.mrf.mxu1 }
 0x2d6   : > { %8006 = vst [vmem:[#allocation47_spill] sm:$0xff] %v7466_v5 }
 0x2d7   : > { %v3476_v60 = vpop.f32.mrf.mxu0  ;;  %v3637_v21 = vpop.f32.mrf.mxu1  ;;  %3828 = vmatmul.mubr.bf16.gmra.mxu1 %v6232_v19  ;;  %5611 = vmatmul.mubr.bf16.gmra.mxu0 %v6236_v8  ;;  %v3196_v8 = vadd.f32 %v7249_v36, %v6802_v44 }
 0x2d8   : > { %v7472_v29 = vadd.f32 %v3476_v60, %v7234_v4  ;;  %v7475_v10 = vadd.f32 %v3637_v21, %v7237_v32  ;;  %v8008_v21 = vld [vmem:[#allocation15_spill] sm:$0xff] }
 0x2d9   : > { %v3478_v30 = vpop.f32.mrf.mxu0  ;;  %v3639_v34 = vpop.f32.mrf.mxu1 }
 0x2db   : > { %v3479_v37 = vpop.f32.mrf.mxu0  ;;  %v3640_v1 = vpop.f32.mrf.mxu1 }
 0x2dc   : > { %v7478_v20 = vadd.f32 %v3479_v37, %v7242_v27  ;;  %v7481_v53 = vadd.f32 %v3640_v1, %v7245_v13  ;;  %v3199_v27 = vadd.f32 %v7254_v6, %v8008_v21  ;;  %v8010_v37 = vld [vmem:[#allocation30_spill] sm:$0xff]  ;;  %v8014_v21 = vld [vmem:[#allocation17_spill] sm:$0xff] }
 0x2dd   : > { %v3481_v48 = vpop.f32.mrf.mxu0  ;;  %v3642_v59 = vpop.f32.mrf.mxu1 }
 0x2de   : > { %v8011_v48 = vld [vmem:[#allocation16_spill] sm:$0xff]  ;;  %v8012_v59 = vld [vmem:[#allocation31_spill] sm:$0xff] }
 0x2df   : > { %v3484_v4 = vpop.f32.mrf.mxu0  ;;  %v3645_v19 = vpop.f32.mrf.mxu1 }
 0x2e0   : > { %v7485_v41 = vadd.f32 %v3484_v4, %v3196_v8  ;;  %v7488_v32 = vadd.f32 %v3645_v19, %v7252_v52  ;;  %v3204_v8 = vadd.f32 %v8012_v59, %v8011_v48 }
 0x2e1   : > { %v3486_v24 = vpop.f32.mrf.mxu0  ;;  %v3647_v60 = vpop.f32.mrf.mxu1 }
 0x2e2   : > { %8007 = vst [vmem:[#allocation48_spill] sm:$0xff] %v7485_v41 }
 0x2e3   : > { %v3487_v30 = vpop.f32.mrf.mxu0  ;;  %v3648_v13 = vpop.f32.mrf.mxu1 }
 0x2e4   : > { %v7492_v34 = vadd.f32 %v3487_v30, %v3199_v27  ;;  %v7495_v1 = vadd.f32 %v3648_v13, %v8010_v37  ;;  %v3207_v27 = vadd.f32 %v7268_v28, %v8014_v21  ;;  %v8020_v21 = vld [vmem:[#allocation19_spill] sm:$0xff] }
 0x2e5   : > { %v3489_v44 = vpop.f32.mrf.mxu0  ;;  %v3650_v36 = vpop.f32.mrf.mxu1 }
 0x2e6   : > { %8009 = vst [vmem:[#allocation15_spill] sm:$0xff] %v7492_v34  ;;  %v8016_v44 = vld [vmem:[#allocation32_spill] sm:$0xff]  ;;  %v8017_v34 = vld [vmem:[#allocation18_spill] sm:$0xff] }
 0x2e7   : > { %v3492_v4 = vpop.f32.mrf.mxu0  ;;  %v3653_v52 = vpop.f32.mrf.mxu1 }
 0x2e8   : > { %v7499_v19 = vadd.f32 %v3492_v4, %v3204_v8  ;;  %v7502_v24 = vadd.f32 %v3653_v52, %v7266_v43  ;;  %v8018_v8 = vld [vmem:[#allocation33_spill] sm:$0xff] }
 0x2e9   : > { %v3494_v6 = vpop.f32.mrf.mxu0  ;;  %v3655_v60 = vpop.f32.mrf.mxu1  ;;  %v3212_v4 = vadd.f32 %v8018_v8, %v8017_v34 }
 0x2ea   : > { %8013 = vst [vmem:[#allocation30_spill] sm:$0xff] %v7499_v19  ;;  %v8048_v19 = vld [vmem:[#allocation28_spill] sm:$0xff] }
 0x2eb   : > { %v3495_v30 = vpop.f32.mrf.mxu0  ;;  %v3656_v13 = vpop.f32.mrf.mxu1 }
 0x2ec   : > { %v7506_v37 = vadd.f32 %v3495_v30, %v3207_v27  ;;  %v7509_v36 = vadd.f32 %v3656_v13, %v8016_v44  ;;  %v3215_v27 = vadd.f32 %v7282_v51, %v8020_v21  ;;  %v8026_v21 = vld [vmem:[#allocation21_spill] sm:$0xff] }
 0x2ed   : > { %v3497_v48 = vpop.f32.mrf.mxu0  ;;  %v3658_v59 = vpop.f32.mrf.mxu1 }
 0x2ee   : > { %8015 = vst [vmem:[#allocation16_spill] sm:$0xff] %v7506_v37  ;;  %v8022_v48 = vld [vmem:[#allocation34_spill] sm:$0xff]  ;;  %v8023_v37 = vld [vmem:[#allocation20_spill] sm:$0xff] }
 0x2ef   : > { %v3500_v41 = vpop.f32.mrf.mxu0  ;;  %v3661_v43 = vpop.f32.mrf.mxu1 }
 0x2f0   : > { %v7513_v52 = vadd.f32 %v3500_v41, %v3212_v4  ;;  %v7516_v6 = vadd.f32 %v3661_v43, %v7280_v55  ;;  %v8024_v41 = vld [vmem:[#allocation35_spill] sm:$0xff] }
 0x2f1   : > { %v3502_v28 = vpop.f32.mrf.mxu0  ;;  %v3663_v60 = vpop.f32.mrf.mxu1  ;;  %v3220_v4 = vadd.f32 %v8024_v41, %v8023_v37 }
 0x2f2   : > { %8019 = vst [vmem:[#allocation31_spill] sm:$0xff] %v7513_v52 }
 0x2f3   : > { %v3503_v30 = vpop.f32.mrf.mxu0  ;;  %v3664_v13 = vpop.f32.mrf.mxu1 }
 0x2f4   : > { %v7520_v44 = vadd.f32 %v3503_v30, %v3215_v27  ;;  %v7523_v59 = vadd.f32 %v3664_v13, %v8022_v48  ;;  %v3223_v27 = vadd.f32 %v7296_v22, %v8026_v21  ;;  %v8032_v21 = vld [vmem:[#allocation23_spill] sm:$0xff] }
 0x2f5   : > { %v3505_v34 = vpop.f32.mrf.mxu0  ;;  %v3666_v8 = vpop.f32.mrf.mxu1 }
 0x2f6   : > { %8021 = vst [vmem:[#allocation17_spill] sm:$0xff] %v7520_v44  ;;  %v8028_v34 = vld [vmem:[#allocation36_spill] sm:$0xff]  ;;  %v8029_v44 = vld [vmem:[#allocation22_spill] sm:$0xff] }
 0x2f7   : > { %v3508_v52 = vpop.f32.mrf.mxu0  ;;  %v3669_v55 = vpop.f32.mrf.mxu1 }
 0x2f8   : > { %v7527_v43 = vadd.f32 %v3508_v52, %v3220_v4  ;;  %v7530_v28 = vadd.f32 %v3669_v55, %v7294_v39  ;;  %v8030_v52 = vld [vmem:[#allocation37_spill] sm:$0xff] }
 0x2f9   : > { %v3510_v51 = vpop.f32.mrf.mxu0  ;;  %v3671_v60 = vpop.f32.mrf.mxu1  ;;  %v3228_v4 = vadd.f32 %v8030_v52, %v8029_v44 }
 0x2fa   : > { %8025 = vst [vmem:[#allocation32_spill] sm:$0xff] %v7527_v43 }
 0x2fb   : > { %v3511_v30 = vpop.f32.mrf.mxu0  ;;  %v3672_v13 = vpop.f32.mrf.mxu1 }
 0x2fc   : > { %v7534_v48 = vadd.f32 %v3511_v30, %v3223_v27  ;;  %v7537_v8 = vadd.f32 %v3672_v13, %v8028_v34  ;;  %v3231_v27 = vadd.f32 %v7310_v0, %v8032_v21  ;;  %v8038_v21 = vld [vmem:[#allocation25_spill] sm:$0xff] }
 0x2fd   : > { %v3513_v37 = vpop.f32.mrf.mxu0  ;;  %v3674_v41 = vpop.f32.mrf.mxu1 }
 0x2fe   : > { %8027 = vst [vmem:[#allocation18_spill] sm:$0xff] %v7534_v48  ;;  %v8034_v37 = vld [vmem:[#allocation38_spill] sm:$0xff]  ;;  %v8035_v48 = vld [vmem:[#allocation24_spill] sm:$0xff] }
 0x2ff   : > { %v3516_v43 = vpop.f32.mrf.mxu0  ;;  %v3677_v39 = vpop.f32.mrf.mxu1 }
 0x300   : > { %v7541_v55 = vadd.f32 %v3516_v43, %v3228_v4  ;;  %v7544_v51 = vadd.f32 %v3677_v39, %v7308_v40  ;;  %v8036_v43 = vld [vmem:[#allocation39_spill] sm:$0xff] }
 0x301   : > { %v3518_v22 = vpop.f32.mrf.mxu0  ;;  %v3679_v60 = vpop.f32.mrf.mxu1  ;;  %v3236_v4 = vadd.f32 %v8036_v43, %v8035_v48 }
 0x302   : > { %8031 = vst [vmem:[#allocation33_spill] sm:$0xff] %v7541_v55 }
 0x303   : > { %v3519_v30 = vpop.f32.mrf.mxu0  ;;  %v3680_v13 = vpop.f32.mrf.mxu1 }
 0x304   : > { %v7548_v34 = vadd.f32 %v3519_v30, %v3231_v27  ;;  %v7551_v41 = vadd.f32 %v3680_v13, %v8034_v37  ;;  %v3239_v27 = vadd.f32 %v7324_v58, %v8038_v21  ;;  %v8044_v21 = vld [vmem:[#allocation27_spill] sm:$0xff] }
 0x305   : > { %v3521_v44 = vpop.f32.mrf.mxu0  ;;  %v3682_v52 = vpop.f32.mrf.mxu1 }
 0x306   : > { %8033 = vst [vmem:[#allocation19_spill] sm:$0xff] %v7548_v34  ;;  %v8040_v44 = vld [vmem:[#allocation40_spill] sm:$0xff]  ;;  %v8041_v34 = vld [vmem:[#allocation26_spill] sm:$0xff] }
 0x307   : > { %v3524_v55 = vpop.f32.mrf.mxu0  ;;  %v3685_v40 = vpop.f32.mrf.mxu1 }
 0x308   : > { %v7555_v39 = vadd.f32 %v3524_v55, %v3236_v4  ;;  %v7558_v22 = vadd.f32 %v3685_v40, %v7322_v12  ;;  %v8042_v55 = vld [vmem:[#allocation41_spill] sm:$0xff] }
 0x309   : > { %v3526_v0 = vpop.f32.mrf.mxu0  ;;  %v3687_v60 = vpop.f32.mrf.mxu1  ;;  %v3244_v4 = vadd.f32 %v8042_v55, %v8041_v34 }
 0x30a   : > { %8037 = vst [vmem:[#allocation34_spill] sm:$0xff] %v7555_v39 }
 0x30b   : > { %v3527_v30 = vpop.f32.mrf.mxu0  ;;  %v3688_v13 = vpop.f32.mrf.mxu1 }
 0x30c   : > { %v7562_v37 = vadd.f32 %v3527_v30, %v3239_v27  ;;  %v7565_v52 = vadd.f32 %v3688_v13, %v8040_v44  ;;  %v8045_v27 = vld [vmem:[#allocation42_spill] sm:$0xff] }
 0x30d   : > { %v3529_v48 = vpop.f32.mrf.mxu0  ;;  %v3690_v43 = vpop.f32.mrf.mxu1  ;;  %v3247_v30 = vadd.f32 %v8045_v27, %v8044_v21  ;;  %v8051_v27 = vld [vmem:[#allocation29_spill] sm:$0xff] }
 0x30e   : > { %8039 = vst [vmem:[#allocation20_spill] sm:$0xff] %v7562_v37  ;;  %v8047_v48 = vld [vmem:[#allocation43_spill] sm:$0xff] }
 0x30f   : > { %v3532_v39 = vpop.f32.mrf.mxu0  ;;  %v3693_v12 = vpop.f32.mrf.mxu1 }
 0x310   : > { %v7569_v40 = vadd.f32 %v3532_v39, %v3244_v4  ;;  %v7572_v0 = vadd.f32 %v3693_v12, %v7336_v35  ;;  %v8049_v39 = vld [vmem:[#allocation44_spill] sm:$0xff] }
 0x311   : > { %v3534_v58 = vpop.f32.mrf.mxu0  ;;  %v3695_v60 = vpop.f32.mrf.mxu1  ;;  %v3252_v4 = vadd.f32 %v8049_v39, %v8048_v19 }
 0x312   : > { %8043 = vst [vmem:[#allocation35_spill] sm:$0xff] %v7569_v40 }
 0x313   : > { %v3535_v37 = vpop.f32.mrf.mxu0  ;;  %v3696_v13 = vpop.f32.mrf.mxu1 }
 0x314   : > { %v7576_v44 = vadd.f32 %v3535_v37, %v3247_v30  ;;  %v7579_v43 = vadd.f32 %v3696_v13, %v8047_v48  ;;  %v3255_v37 = vadd.f32 %v7352_v50, %v8051_v27 }
 0x315   : > { %v3537_v34 = vpop.f32.mrf.mxu0  ;;  %v3698_v55 = vpop.f32.mrf.mxu1 }
 0x316   : > { %8046 = vst [vmem:[#allocation21_spill] sm:$0xff] %v7576_v44  ;;  %v7594_v44 = vld [vmem:[#allocation7] ss:$0 sm:$0xff] }
 0x317   : > { %v3540_v40 = vpop.f32.mrf.mxu0  ;;  %v3701_v35 = vpop.f32.mrf.mxu1 }
 0x318   : > { %v7583_v12 = vadd.f32 %v3540_v40, %v3252_v4  ;;  %v7586_v58 = vadd.f32 %v3701_v35, %v7350_v15 }
 0x319   : > { %v3542_v60 = vpop.f32.mrf.mxu0  ;;  %v3703_v21 = vpop.f32.mrf.mxu1 }
 0x31a   : > { %8050 = vst [vmem:[#allocation36_spill] sm:$0xff] %v7583_v12  ;;  %v7602_v21 = vld [vmem:[#allocation8] ss:$0 sm:$0xff] }
 0x31b   : > { %v3543_v30 = vpop.f32.mrf.mxu0  ;;  %v7590_v13 = vpop.f32.mrf.mxu1 }
 0x31c   : > { %v7592_v48 = vadd.f32 %v3543_v30, %v3255_v37 }
 0x31d   : > { %v3545_v34 = vpop.f32.mrf.mxu0  ;;  %v3706_v55 = vpop.f32.mrf.mxu1 }
 0x31e   : > { %8052 = vst [vmem:[#allocation22_spill] sm:$0xff] %v7592_v48 }
 0x31f   : > { %v3709_v19 = vpop.f32.mrf.mxu1  ;;  %v5552_v39 = vpop.f32.mrf.mxu0 }
 0x320   : > { %v7597_v40 = vadd.f32 %v3709_v19, %v7362_v45  ;;  %v3879_v15 = vadd.f32 %v5552_v39, %v7381_v49 }
 0x321   : > { %v3711_v4 = vpop.f32.mrf.mxu1  ;;  %v3870_v35 = vpop.f32.mrf.mxu0 }
 0x322   : > { %v4134_v50 = vmul.f32 %v7594_v44, %v3879_v15  ;;  %v3871_v60 = vadd.f32 %v3870_v35, %v7365_v42 }
 0x323   : > { %v3712_v27 = vpop.f32.mrf.mxu1  ;;  %v5553_v37 = vpop.f32.mrf.mxu0 }
 0x324   : > { %v4132_v30 = vmul.f32 %v7594_v44, %v3871_v60  ;;  %v7606_v34 = vadd.f32 %v3712_v27, %v7370_v16  ;;  %v3882_v45 = vadd.f32 %v5553_v37, %v7389_v3  ;;  %v4205_v19 = vadd.f32 %v7602_v21, %v4134_v50 }
 0x325   : > { %v3714_v55 = vpop.f32.mrf.mxu1  ;;  %v3873_v49 = vpop.f32.mrf.mxu0 }
 0x326   : > { %v4135_v39 = vmul.f32 %v7594_v44, %v3882_v45  ;;  %v3874_v15 = vadd.f32 %v3873_v49, %v7373_v9  ;;  %v4203_v35 = vadd.f32 %v7602_v21, %v4132_v30  ;;  %v4269_v55 = vmax.f32 %v4205_v19, 0.0 }
 0x327   : > { %v7612_v42 = vpop.f32.mrf.mxu1  ;;  %v5556_v4 = vpop.f32.mrf.mxu0 }
 0x328   : > { %v4206_v60 = vadd.f32 %v7602_v21, %v4135_v39  ;;  %v4133_v16 = vmul.f32 %v7594_v44, %v3874_v15  ;;  %v3895_v3 = vadd.f32 %v5556_v4, %v7413_v62  ;;  %v4267_v12 = vmax.f32 %v4203_v35, 0.0 }
 0x329   : > { %v3719_v27 = vpop.f32.mrf.mxu1  ;;  %v3886_v37 = vpop.f32.mrf.mxu0 }
 0x32a   : > { %v4270_v50 = vmax.f32 %v4206_v60, 0.0  ;;  %v4204_v45 = vadd.f32 %v7602_v21, %v4133_v16  ;;  %v3887_v9 = vadd.f32 %v3886_v37, %v7397_v2  ;;  %v4138_v49 = vmul.f32 %v7594_v44, %v3895_v3 }
 0x32b   : > { %v7622_v48 = vpop.f32.mrf.mxu1  ;;  %v5557_v30 = vpop.f32.mrf.mxu0 }
 0x32c   : > { %v5311_v5 = vpack.c.bf16 %v4270_v50, %v4269_v55  ;;  %v4268_v39 = vmax.f32 %v4204_v45, 0.0  ;;  %v4136_v15 = vmul.f32 %v7594_v44, %v3887_v9  ;;  %v3898_v62 = vadd.f32 %v5557_v30, %v7421_v18 }
 0x32d   : > { %v3722_v4 = vpop.f32.mrf.mxu1  ;;  %v3889_v27 = vpop.f32.mrf.mxu0  ;;  %v4209_v60 = vadd.f32 %v7602_v21, %v4138_v49 }
 0x32e   : > { %5463 = vst [vmem:[%s7626_s25 + $0x8] sm:$0xff] %v5311_v5   ;;  %v5306_v2 = vpack.c.bf16 %v4268_v39, %v4267_v12  ;;  %v3890_v19 = vadd.f32 %v3889_v27, %v7405_v14  ;;  %v4139_v35 = vmul.f32 %v7594_v44, %v3898_v62  ;;  %v4207_v18 = vadd.f32 %v7602_v21, %v4136_v15 }
 0x32f   : > { %v7632_v16 = vpop.f32.mrf.mxu1  ;;  %v5560_v3 = vpop.f32.mrf.mxu0  ;;  %v4273_v9 = vmax.f32 %v4209_v60, 0.0 }
 0x330   : > { %5307 = vst [vmem:[%s7626_s25] sm:$0xff] %v5306_v2   ;;  %v4137_v37 = vmul.f32 %v7594_v44, %v3890_v19  ;;  %v3911_v55 = vadd.f32 %v5560_v3, %v7445_v17  ;;  %v4210_v50 = vadd.f32 %v7602_v21, %v4139_v35  ;;  %v4271_v62 = vmax.f32 %v4207_v18, 0.0 }
 0x331   : > { %v3727_v5 = vpop.f32.mrf.mxu1  ;;  %v3902_v12 = vpop.f32.mrf.mxu0 }
 0x332   : > { %v4208_v14 = vadd.f32 %v7602_v21, %v4137_v37  ;;  %v3903_v45 = vadd.f32 %v3902_v12, %v7429_v61  ;;  %v4274_v49 = vmax.f32 %v4210_v50, 0.0  ;;  %v4142_v30 = vmul.f32 %v7594_v44, %v3911_v55 }
 0x333   : > { %v7642_v39 = vpop.f32.mrf.mxu1  ;;  %v5561_v15 = vpop.f32.mrf.mxu0 }
 0x334   : > { %v4272_v4 = vmax.f32 %v4208_v14, 0.0  ;;  %v4140_v17 = vmul.f32 %v7594_v44, %v3903_v45  ;;  %v5321_v27 = vpack.c.bf16 %v4274_v49, %v4273_v9  ;;  %v3914_v2 = vadd.f32 %v5561_v15, %v7453_v26 }
 0x335   : > { %v3730_v19 = vpop.f32.mrf.mxu1  ;;  %v3905_v35 = vpop.f32.mrf.mxu0  ;;  %v4213_v60 = vadd.f32 %v7602_v21, %v4142_v30 }
 0x336   : > { %v5316_v3 = vpack.c.bf16 %v4272_v4, %v4271_v62  ;;  %v3906_v61 = vadd.f32 %v3905_v35, %v7437_v54  ;;  %5465 = vst [vmem:[%s7626_s25 + $0x18] sm:$0xff] %v5321_v27   ;;  %v4143_v37 = vmul.f32 %v7594_v44, %v3914_v2  ;;  %v4211_v18 = vadd.f32 %v7602_v21, %v4140_v17 }
 0x337   : > { %v7650_v55 = vpop.f32.mrf.mxu1  ;;  %v5564_v50 = vpop.f32.mrf.mxu0  ;;  %v4277_v49 = vmax.f32 %v4213_v60, 0.0 }
 0x338   : > { %5464 = vst [vmem:[%s7626_s25 + $0x10] sm:$0xff] %v5316_v3   ;;  %v4141_v5 = vmul.f32 %v7594_v44, %v3906_v61  ;;  %v3927_v26 = vadd.f32 %v5564_v50, %v7475_v10  ;;  %v4214_v12 = vadd.f32 %v7602_v21, %v4143_v37  ;;  %v4275_v17 = vmax.f32 %v4211_v18, 0.0 }
 0x339   : > { %v3735_v14 = vpop.f32.mrf.mxu1  ;;  %v3918_v45 = vpop.f32.mrf.mxu0 }
 0x33a   : > { %v4212_v54 = vadd.f32 %v7602_v21, %v4141_v5  ;;  %v3919_v9 = vadd.f32 %v3918_v45, %v7461_v38  ;;  %v4278_v30 = vmax.f32 %v4214_v12, 0.0  ;;  %v4146_v15 = vmul.f32 %v7594_v44, %v3927_v26 }
 0x33b   : > { %v7660_v62 = vpop.f32.mrf.mxu1  ;;  %v5565_v4 = vpop.f32.mrf.mxu0 }
 0x33c   : > { %v4276_v27 = vmax.f32 %v4212_v54, 0.0  ;;  %v4144_v10 = vmul.f32 %v7594_v44, %v3919_v9  ;;  %v5331_v2 = vpack.c.bf16 %v4278_v30, %v4277_v49  ;;  %v3930_v19 = vadd.f32 %v5565_v4, %v7481_v53 }
 0x33d   : > { %v3738_v35 = vpop.f32.mrf.mxu1  ;;  %v3921_v3 = vpop.f32.mrf.mxu0  ;;  %v4217_v60 = vadd.f32 %v7602_v21, %v4146_v15 }
 0x33e   : > { %v5326_v61 = vpack.c.bf16 %v4276_v27, %v4275_v17  ;;  %v3922_v38 = vadd.f32 %v3921_v3, %v7469_v7  ;;  %5467 = vst [vmem:[%s7626_s25 + $0x28] sm:$0xff] %v5331_v2   ;;  %v4147_v37 = vmul.f32 %v7594_v44, %v3930_v19  ;;  %v4215_v18 = vadd.f32 %v7602_v21, %v4144_v10 }
 0x33f   : > { %v7668_v50 = vpop.f32.mrf.mxu1  ;;  %v5568_v5 = vpop.f32.mrf.mxu0  ;;  %v4281_v9 = vmax.f32 %v4217_v60, 0.0 }
 0x340   : > { %5466 = vst [vmem:[%s7626_s25 + $0x20] sm:$0xff] %v5326_v61   ;;  %v4145_v26 = vmul.f32 %v7594_v44, %v3922_v38  ;;  %v3943_v53 = vadd.f32 %v5568_v5, %v7502_v24  ;;  %v4218_v12 = vadd.f32 %v7602_v21, %v4147_v37  ;;  %v4279_v17 = vmax.f32 %v4215_v18, 0.0 }
 0x341   : > { %v3743_v14 = vpop.f32.mrf.mxu1  ;;  %v3934_v45 = vpop.f32.mrf.mxu0 }
 0x342   : > { %v4216_v7 = vadd.f32 %v7602_v21, %v4145_v26  ;;  %v3935_v54 = vadd.f32 %v3934_v45, %v7488_v32  ;;  %v4282_v49 = vmax.f32 %v4218_v12, 0.0  ;;  %v4150_v30 = vmul.f32 %v7594_v44, %v3943_v53 }
 0x343   : > { %v7678_v15 = vpop.f32.mrf.mxu1  ;;  %v5569_v4 = vpop.f32.mrf.mxu0 }
 0x344   : > { %v4280_v27 = vmax.f32 %v4216_v7, 0.0  ;;  %v4148_v24 = vmul.f32 %v7594_v44, %v3935_v54  ;;  %v5341_v10 = vpack.c.bf16 %v4282_v49, %v4281_v9  ;;  %v3946_v2 = vadd.f32 %v5569_v4, %v7509_v36 }
 0x345   : > { %v3746_v19 = vpop.f32.mrf.mxu1  ;;  %v3937_v35 = vpop.f32.mrf.mxu0  ;;  %v4221_v61 = vadd.f32 %v7602_v21, %v4150_v30 }
 0x346   : > { %v5336_v3 = vpack.c.bf16 %v4280_v27, %v4279_v17  ;;  %v3938_v32 = vadd.f32 %v3937_v35, %v7495_v1  ;;  %5469 = vst [vmem:[%s7626_s25 + $0x38] sm:$0xff] %v5341_v10   ;;  %v4151_v38 = vmul.f32 %v7594_v44, %v3946_v2  ;;  %v4219_v5 = vadd.f32 %v7602_v21, %v4148_v24 }
 0x347   : > { %v7686_v60 = vpop.f32.mrf.mxu1  ;;  %v5572_v37 = vpop.f32.mrf.mxu0  ;;  %v4285_v45 = vmax.f32 %v4221_v61, 0.0 }
 0x348   : > { %5468 = vst [vmem:[%s7626_s25 + $0x30] sm:$0xff] %v5336_v3   ;;  %v4149_v18 = vmul.f32 %v7594_v44, %v3938_v32  ;;  %v3959_v36 = vadd.f32 %v5572_v37, %v7530_v28  ;;  %v4222_v26 = vadd.f32 %v7602_v21, %v4151_v38  ;;  %v4283_v30 = vmax.f32 %v4219_v5, 0.0 }
 0x349   : > { %v3751_v53 = vpop.f32.mrf.mxu1  ;;  %v3950_v12 = vpop.f32.mrf.mxu0 }
 0x34a   : > { %v4220_v1 = vadd.f32 %v7602_v21, %v4149_v18  ;;  %v3951_v14 = vadd.f32 %v3950_v12, %v7516_v6  ;;  %v4286_v7 = vmax.f32 %v4222_v26, 0.0  ;;  %v4154_v54 = vmul.f32 %v7594_v44, %v3959_v36 }
 0x34b   : > { %v7696_v9 = vpop.f32.mrf.mxu1  ;;  %v5573_v49 = vpop.f32.mrf.mxu0 }
 0x34c   : > { %v4284_v4 = vmax.f32 %v4220_v1, 0.0  ;;  %v4152_v28 = vmul.f32 %v7594_v44, %v3951_v14  ;;  %v5351_v17 = vpack.c.bf16 %v4286_v7, %v4285_v45  ;;  %v3962_v27 = vadd.f32 %v5573_v49, %v7537_v8 }
 0x34d   : > { %v3754_v24 = vpop.f32.mrf.mxu1  ;;  %v3953_v10 = vpop.f32.mrf.mxu0  ;;  %v4225_v19 = vadd.f32 %v7602_v21, %v4154_v54 }
 0x34e   : > { %v5346_v2 = vpack.c.bf16 %v4284_v4, %v4283_v30  ;;  %v3954_v6 = vadd.f32 %v3953_v10, %v7523_v59  ;;  %5471 = vst [vmem:[%s7626_s25 + $0x48] sm:$0xff] %v5351_v17   ;;  %v4155_v35 = vmul.f32 %v7594_v44, %v3962_v27  ;;  %v4223_v61 = vadd.f32 %v7602_v21, %v4152_v28 }
 0x34f   : > { %v7704_v3 = vpop.f32.mrf.mxu1  ;;  %v5576_v32 = vpop.f32.mrf.mxu0  ;;  %v4289_v26 = vmax.f32 %v4225_v19, 0.0 }
 0x350   : > { %5470 = vst [vmem:[%s7626_s25 + $0x40] sm:$0xff] %v5346_v2   ;;  %v4153_v38 = vmul.f32 %v7594_v44, %v3954_v6  ;;  %v3975_v8 = vadd.f32 %v5576_v32, %v7558_v22  ;;  %v4226_v37 = vadd.f32 %v7602_v21, %v4155_v35  ;;  %v4287_v45 = vmax.f32 %v4223_v61, 0.0 }
 0x351   : > { %v3759_v5 = vpop.f32.mrf.mxu1  ;;  %v3966_v18 = vpop.f32.mrf.mxu0 }
 0x352   : > { %v4224_v59 = vadd.f32 %v7602_v21, %v4153_v38  ;;  %v3967_v36 = vadd.f32 %v3966_v18, %v7544_v51  ;;  %v4290_v53 = vmax.f32 %v4226_v37, 0.0  ;;  %v4158_v12 = vmul.f32 %v7594_v44, %v3975_v8  ;;  %v8053_v38 = vld [vmem:[#allocation45_spill] sm:$0xff] }
 0x353   : > { %v7714_v1 = vpop.f32.mrf.mxu1  ;;  %v5577_v14 = vpop.f32.mrf.mxu0  ;;  %v3705_v8 = vadd.f32 %v7590_v13, %v8053_v38  ;;  %v3718_v13 = vadd.f32 %v7612_v42, %v7378_v56 }
 0x354   : > { %v4288_v7 = vmax.f32 %v4224_v59, 0.0  ;;  %v4156_v22 = vmul.f32 %v7594_v44, %v3967_v36  ;;  %v5361_v54 = vpack.c.bf16 %v4290_v53, %v4289_v26  ;;  %v3978_v49 = vadd.f32 %v5577_v14, %v7565_v52 }
 0x355   : > { %v3762_v30 = vpop.f32.mrf.mxu1  ;;  %v3969_v4 = vpop.f32.mrf.mxu0  ;;  %v4229_v17 = vadd.f32 %v7602_v21, %v4158_v12 }
 0x356   : > { %v5356_v28 = vpack.c.bf16 %v4288_v7, %v4287_v45  ;;  %v3970_v51 = vadd.f32 %v3969_v4, %v7551_v41  ;;  %5473 = vst [vmem:[%s7626_s25 + $0x58] sm:$0xff] %v5361_v54   ;;  %v4159_v27 = vmul.f32 %v7594_v44, %v3978_v49  ;;  %v4227_v2 = vadd.f32 %v7602_v21, %v4156_v22 }
 0x357   : > { %v7722_v24 = vpop.f32.mrf.mxu1  ;;  %v5580_v10 = vpop.f32.mrf.mxu0  ;;  %v4293_v37 = vmax.f32 %v4229_v17, 0.0 }
 0x358   : > { %5472 = vst [vmem:[%s7626_s25 + $0x50] sm:$0xff] %v5356_v28   ;;  %v4157_v6 = vmul.f32 %v7594_v44, %v3970_v51  ;;  %v3991_v52 = vadd.f32 %v5580_v10, %v7586_v58  ;;  %v4230_v19 = vadd.f32 %v7602_v21, %v4159_v27  ;;  %v4291_v58 = vmax.f32 %v4227_v2, 0.0 }
 0x359   : > { %v3767_v35 = vpop.f32.mrf.mxu1  ;;  %v3982_v32 = vpop.f32.mrf.mxu0  ;;  %v3721_v2 = vadd.f32 %v7622_v48, %v7386_v63  ;;  %v3734_v63 = vadd.f32 %v7650_v55, %v7410_v31 }
 0x35a   : > { %v4228_v41 = vadd.f32 %v7602_v21, %v4157_v6  ;;  %v3983_v61 = vadd.f32 %v3982_v32, %v7572_v0  ;;  %v4294_v5 = vmax.f32 %v4230_v19, 0.0  ;;  %v4162_v18 = vmul.f32 %v7594_v44, %v3991_v52 }
 0x35b   : > { %v7734_v59 = vpop.f32.mrf.mxu1  ;;  %v5581_v36 = vpop.f32.mrf.mxu0 }
 0x35c   : > { %v4292_v26 = vmax.f32 %v4228_v41, 0.0  ;;  %v4160_v53 = vmul.f32 %v7594_v44, %v3983_v61  ;;  %v5371_v12 = vpack.c.bf16 %v4294_v5, %v4293_v37  ;;  %v3994_v14 = vadd.f32 %v5581_v36, %v3705_v8 }
 0x35d   : > { %v3770_v45 = vpop.f32.mrf.mxu1  ;;  %v3985_v0 = vpop.f32.mrf.mxu0  ;;  %v4233_v54 = vadd.f32 %v7602_v21, %v4162_v18 }
 0x35e   : > { %v5366_v7 = vpack.c.bf16 %v4292_v26, %v4291_v58  ;;  %v3986_v22 = vadd.f32 %v3985_v0, %v7579_v43  ;;  %5475 = vst [vmem:[%s7626_s25 + $0x68] sm:$0xff] %v5371_v12   ;;  %v4163_v49 = vmul.f32 %v7594_v44, %v3994_v14  ;;  %v4231_v28 = vadd.f32 %v7602_v21, %v4160_v53 }
 0x35f   : > { %v7743_v30 = vpop.f32.mrf.mxu1  ;;  %v5584_v4 = vpop.f32.mrf.mxu0  ;;  %v4297_v6 = vmax.f32 %v4233_v54, 0.0  ;;  %v3726_v12 = vadd.f32 %v7632_v16, %v7394_v23 }
 0x360   : > { %5474 = vst [vmem:[%s7626_s25 + $0x60] sm:$0xff] %v5366_v7   ;;  %v4161_v51 = vmul.f32 %v7594_v44, %v3986_v22  ;;  %v4007_v17 = vadd.f32 %v5584_v4, %v3718_v13  ;;  %v4234_v27 = vadd.f32 %v7602_v21, %v4163_v49  ;;  %v4295_v41 = vmax.f32 %v4231_v28, 0.0 }
 0x361   : > { %v3775_v56 = vpop.f32.mrf.mxu1  ;;  %v3998_v42 = vpop.f32.mrf.mxu0  ;;  %v3737_v22 = vadd.f32 %v7660_v62, %v7418_v33  ;;  %v3729_v28 = vadd.f32 %v7642_v39, %v7402_v25  ;;  %v3750_v62 = vadd.f32 %v7686_v60, %v7442_v57 }
 0x362   : > { %v4232_v43 = vadd.f32 %v7602_v21, %v4161_v51  ;;  %v3999_v10 = vadd.f32 %v3998_v42, %v7597_v40  ;;  %v4298_v52 = vmax.f32 %v4234_v27, 0.0  ;;  %v4166_v19 = vmul.f32 %v7594_v44, %v4007_v17 }
 0x363   : > { %v7754_v35 = vpop.f32.mrf.mxu1  ;;  %v5585_v32 = vpop.f32.mrf.mxu0 }
 0x364   : > { %v4296_v61 = vmax.f32 %v4232_v43, 0.0  ;;  %v4164_v38 = vmul.f32 %v7594_v44, %v3999_v10  ;;  %v5381_v8 = vpack.c.bf16 %v4298_v52, %v4297_v6  ;;  %v4010_v37 = vadd.f32 %v5585_v32, %v3721_v2 }
 0x365   : > { %v3778_v5 = vpop.f32.mrf.mxu1  ;;  %v4001_v40 = vpop.f32.mrf.mxu0  ;;  %v4237_v36 = vadd.f32 %v7602_v21, %v4166_v19  ;;  %v3742_v19 = vadd.f32 %v7668_v50, %v7426_v11 }
 0x366   : > { %v5376_v48 = vpack.c.bf16 %v4296_v61, %v4295_v41  ;;  %v4002_v18 = vadd.f32 %v4001_v40, %v7606_v34  ;;  %5477 = vst [vmem:[%s7626_s25 + $0x78] sm:$0xff] %v5381_v8   ;;  %v4167_v58 = vmul.f32 %v7594_v44, %v4010_v37  ;;  %v4235_v14 = vadd.f32 %v7602_v21, %v4164_v38 }
 0x367   : > { %v7763_v26 = vpop.f32.mrf.mxu1  ;;  %v5588_v53 = vpop.f32.mrf.mxu0  ;;  %v4301_v54 = vmax.f32 %v4237_v36, 0.0  ;;  %v3753_v5 = vadd.f32 %v7696_v9, %v7450_v46  ;;  %v3766_v9 = vadd.f32 %v7722_v24, %v7472_v29 }
 0x368   : > { %5476 = vst [vmem:[%s7626_s25 + $0x70] sm:$0xff] %v5376_v48   ;;  %v4165_v45 = vmul.f32 %v7594_v44, %v4002_v18  ;;  %v4023_v31 = vadd.f32 %v5588_v53, %v3734_v63  ;;  %v4238_v55 = vadd.f32 %v7602_v21, %v4167_v58  ;;  %v4299_v51 = vmax.f32 %v4235_v14, 0.0  ;;  %v8054_v18 = vld [vmem:[#allocation46_spill] sm:$0xff] }
 0x369   : > { %v3783_v34 = vpop.f32.mrf.mxu1  ;;  %v4014_v0 = vpop.f32.mrf.mxu0  ;;  %v3745_v36 = vadd.f32 %v7678_v15, %v8054_v18 }
 0x36a   : > { %v4236_v13 = vadd.f32 %v7602_v21, %v4165_v45  ;;  %v4015_v7 = vadd.f32 %v4014_v0, %v3726_v12  ;;  %v4302_v49 = vmax.f32 %v4238_v55, 0.0  ;;  %v4170_v23 = vmul.f32 %v7594_v44, %v4023_v31 }
 0x36b   : > { %v7775_v16 = vpop.f32.mrf.mxu1  ;;  %v5589_v4 = vpop.f32.mrf.mxu0 }
 0x36c   : > { %v4300_v17 = vmax.f32 %v4236_v13, 0.0  ;;  %v4168_v27 = vmul.f32 %v7594_v44, %v4015_v7  ;;  %v5391_v56 = vpack.c.bf16 %v4302_v49, %v4301_v54  ;;  %v4026_v42 = vadd.f32 %v5589_v4, %v3737_v22 }
 0x36d   : > { %v3786_v43 = vpop.f32.mrf.mxu1  ;;  %v4017_v33 = vpop.f32.mrf.mxu0  ;;  %v4241_v6 = vadd.f32 %v7602_v21, %v4170_v23  ;;  %v3758_v22 = vadd.f32 %v7704_v3, %v7458_v47 }
 0x36e   : > { %v5386_v10 = vpack.c.bf16 %v4300_v17, %v4299_v51  ;;  %v4018_v2 = vadd.f32 %v4017_v33, %v3729_v28  ;;  %5479 = vst [vmem:[%s7626_s25 + $0x88] sm:$0xff] %v5391_v56   ;;  %v4171_v52 = vmul.f32 %v7594_v44, %v4026_v42  ;;  %v4239_v32 = vadd.f32 %v7602_v21, %v4168_v27  ;;  %v8055_v43 = vld [vmem:[#allocation47_spill] sm:$0xff] }
 0x36f   : > { %v7785_v25 = vpop.f32.mrf.mxu1  ;;  %v5592_v39 = vpop.f32.mrf.mxu0  ;;  %v4305_v40 = vmax.f32 %v4241_v6, 0.0  ;;  %v3769_v17 = vadd.f32 %v7734_v59, %v7478_v20  ;;  %v3761_v33 = vadd.f32 %v7714_v1, %v8055_v43  ;;  %v8056_v20 = vld [vmem:[#allocation30_spill] sm:$0xff] }
 0x370   : > { %5478 = vst [vmem:[%s7626_s25 + $0x80] sm:$0xff] %v5386_v10   ;;  %v4169_v41 = vmul.f32 %v7594_v44, %v4018_v2  ;;  %v4039_v61 = vadd.f32 %v5592_v39, %v3750_v62  ;;  %v4242_v57 = vadd.f32 %v7602_v21, %v4171_v52  ;;  %v4303_v58 = vmax.f32 %v4239_v32, 0.0 }
 0x371   : > { %v3791_v60 = vpop.f32.mrf.mxu1  ;;  %v4030_v38 = vpop.f32.mrf.mxu0  ;;  %v3782_v59 = vadd.f32 %v7763_v26, %v8056_v20 }
 0x372   : > { %v4240_v8 = vadd.f32 %v7602_v21, %v4169_v41  ;;  %v4031_v37 = vadd.f32 %v4030_v38, %v3742_v19  ;;  %v4306_v63 = vmax.f32 %v4242_v57, 0.0  ;;  %v4174_v11 = vmul.f32 %v7594_v44, %v4039_v61  ;;  %v8057_v38 = vld [vmem:[#allocation48_spill] sm:$0xff] }
 0x373   : > { %v7797_v50 = vpop.f32.mrf.mxu1  ;;  %v5593_v48 = vpop.f32.mrf.mxu0 }
 0x374   : > { %v4304_v53 = vmax.f32 %v4240_v8, 0.0  ;;  %v4172_v12 = vmul.f32 %v7594_v44, %v4031_v37  ;;  %v5401_v14 = vpack.c.bf16 %v4306_v63, %v4305_v40  ;;  %v4042_v45 = vadd.f32 %v5593_v48, %v3753_v5 }
 0x375   : > { %v3794_v31 = vpop.f32.mrf.mxu1  ;;  %v4033_v46 = vpop.f32.mrf.mxu0  ;;  %v4245_v0 = vadd.f32 %v7602_v21, %v4174_v11  ;;  %v3774_v8 = vadd.f32 %v7743_v30, %v8057_v38 }
 0x376   : > { %v5396_v55 = vpack.c.bf16 %v4304_v53, %v4303_v58  ;;  %v4034_v34 = vadd.f32 %v4033_v46, %v3745_v36  ;;  %5481 = vst [vmem:[%s7626_s25 + $0x98] sm:$0xff] %v5401_v14   ;;  %v4175_v13 = vmul.f32 %v7594_v44, %v4042_v45  ;;  %v4243_v54 = vadd.f32 %v7602_v21, %v4172_v12  ;;  %v8058_v36 = vld [vmem:[#allocation16_spill] sm:$0xff]  ;;  %v8059_v31 = vld [vmem:[#allocation15_spill] sm:$0xff] }
 0x377   : > { %v3797_v15 = vpop.f32.mrf.mxu1  ;;  %v5596_v7 = vpop.f32.mrf.mxu0  ;;  %v4309_v27 = vmax.f32 %v4245_v0, 0.0  ;;  %v3785_v58 = vadd.f32 %v7775_v16, %v8058_v36  ;;  %v3777_v46 = vadd.f32 %v7754_v35, %v8059_v31 }
 0x378   : > { %5480 = vst [vmem:[%s7626_s25 + $0x90] sm:$0xff] %v5396_v55   ;;  %v4173_v49 = vmul.f32 %v7594_v44, %v4034_v34  ;;  %v4055_v23 = vadd.f32 %v5596_v7, %v3766_v9  ;;  %v4246_v29 = vadd.f32 %v7602_v21, %v4175_v13  ;;  %v4307_v62 = vmax.f32 %v4243_v54, 0.0 }
 0x379   : > { %v3799_v24 = vpop.f32.mrf.mxu1  ;;  %v4046_v4 = vpop.f32.mrf.mxu0 }
 0x37a   : > { %v4244_v28 = vadd.f32 %v7602_v21, %v4173_v49  ;;  %v4047_v51 = vadd.f32 %v4046_v4, %v3758_v22  ;;  %v4310_v56 = vmax.f32 %v4246_v29, 0.0  ;;  %v4178_v47 = vmul.f32 %v7594_v44, %v4055_v23  ;;  %v8060_v22 = vld [vmem:[#allocation32_spill] sm:$0xff] }
 0x37b   : > { %v3800_v3 = vpop.f32.mrf.mxu1  ;;  %v5597_v42 = vpop.f32.mrf.mxu0  ;;  %v3798_v54 = vadd.f32 %v3797_v15, %v8060_v22 }
 0x37c   : > { %v4308_v10 = vmax.f32 %v4244_v28, 0.0  ;;  %v4176_v2 = vmul.f32 %v7594_v44, %v4047_v51  ;;  %v5411_v6 = vpack.c.bf16 %v4310_v56, %v4309_v27  ;;  %v4058_v52 = vadd.f32 %v5597_v42, %v3769_v17  ;;  %v8061_v28 = vld [vmem:[#allocation31_spill] sm:$0xff] }
 0x37d   : > { %v3802_v39 = vpop.f32.mrf.mxu1  ;;  %v4049_v19 = vpop.f32.mrf.mxu0  ;;  %v4249_v61 = vadd.f32 %v7602_v21, %v4178_v47  ;;  %v3790_v51 = vadd.f32 %v7785_v25, %v8061_v28 }
 0x37e   : > { %v5406_v32 = vpack.c.bf16 %v4308_v10, %v4307_v62  ;;  %v4050_v41 = vadd.f32 %v4049_v19, %v3761_v33  ;;  %5483 = vst [vmem:[%s7626_s25 + $0xa8] sm:$0xff] %v5411_v6   ;;  %v4179_v57 = vmul.f32 %v7594_v44, %v4058_v52  ;;  %v4247_v37 = vadd.f32 %v7602_v21, %v4176_v2  ;;  %v8062_v62 = vld [vmem:[#allocation18_spill] sm:$0xff]  ;;  %v8063_v19 = vld [vmem:[#allocation17_spill] sm:$0xff] }
 0x37f   : > { %v7825_v1 = vpop.f32.mrf.mxu1  ;;  %v5600_v60 = vpop.f32.mrf.mxu0  ;;  %v4313_v53 = vmax.f32 %v4249_v61, 0.0  ;;  %v3801_v10 = vadd.f32 %v3800_v3, %v8062_v62  ;;  %v3793_v20 = vadd.f32 %v7797_v50, %v8063_v19 }
 0x380   : > { %5482 = vst [vmem:[%s7626_s25 + $0xa0] sm:$0xff] %v5406_v32   ;;  %v4177_v5 = vmul.f32 %v7594_v44, %v4050_v41  ;;  %v4071_v40 = vadd.f32 %v5600_v60, %v3782_v59  ;;  %v4250_v26 = vadd.f32 %v7602_v21, %v4179_v57  ;;  %v4311_v9 = vmax.f32 %v4247_v37, 0.0 }
 0x381   : > { %v3807_v63 = vpop.f32.mrf.mxu1  ;;  %v4062_v11 = vpop.f32.mrf.mxu0 }
 0x382   : > { %v4248_v48 = vadd.f32 %v7602_v21, %v4177_v5  ;;  %v4063_v18 = vadd.f32 %v4062_v11, %v3774_v8  ;;  %v4314_v12 = vmax.f32 %v4250_v26, 0.0  ;;  %v4182_v30 = vmul.f32 %v7594_v44, %v4071_v40  ;;  %v8064_v8 = vld [vmem:[#allocation34_spill] sm:$0xff]  ;;  %v8065_v11 = vld [vmem:[#allocation33_spill] sm:$0xff] }
 0x383   : > { %v7837_v14 = vpop.f32.mrf.mxu1  ;;  %v5601_v45 = vpop.f32.mrf.mxu0 }
 0x384   : > { %v4312_v55 = vmax.f32 %v4248_v48, 0.0  ;;  %v4180_v34 = vmul.f32 %v7594_v44, %v4063_v18  ;;  %v5421_v0 = vpack.c.bf16 %v4314_v12, %v4313_v53  ;;  %v4074_v13 = vadd.f32 %v5601_v45, %v3785_v58 }
 0x385   : > { %v3810_v7 = vpop.f32.mrf.mxu1  ;;  %v4065_v16 = vpop.f32.mrf.mxu0  ;;  %v4253_v29 = vadd.f32 %v7602_v21, %v4182_v30  ;;  %v3806_v48 = vadd.f32 %v7825_v1, %v8065_v11 }
 0x386   : > { %v5416_v49 = vpack.c.bf16 %v4312_v55, %v4311_v9  ;;  %v4066_v23 = vadd.f32 %v4065_v16, %v3777_v46  ;;  %5485 = vst [vmem:[%s7626_s25 + $0xb8] sm:$0xff] %v5421_v0   ;;  %v4183_v24 = vmul.f32 %v7594_v44, %v4074_v13  ;;  %v4251_v17 = vadd.f32 %v7602_v21, %v4180_v34  ;;  %v8066_v9 = vld [vmem:[#allocation20_spill] sm:$0xff]  ;;  %v8067_v7 = vld [vmem:[#allocation19_spill] sm:$0xff] }
 0x387   : > { %v3813_v4 = vpop.f32.mrf.mxu1  ;;  %v5604_v35 = vpop.f32.mrf.mxu0  ;;  %v4317_v2 = vmax.f32 %v4253_v29, 0.0  ;;  %v3809_v16 = vadd.f32 %v7837_v14, %v8067_v7 }
 0x388   : > { %5484 = vst [vmem:[%s7626_s25 + $0xb0] sm:$0xff] %v5416_v49   ;;  %v4181_v27 = vmul.f32 %v7594_v44, %v4066_v23  ;;  %v4087_v56 = vadd.f32 %v5604_v35, %v3798_v54  ;;  %v4254_v15 = vadd.f32 %v7602_v21, %v4183_v24  ;;  %v4315_v59 = vmax.f32 %v4251_v17, 0.0 }
 0x389   : > { %v3815_v47 = vpop.f32.mrf.mxu1  ;;  %v4078_v42 = vpop.f32.mrf.mxu0  ;;  %v3814_v37 = vadd.f32 %v3813_v4, %v8064_v8 }
 0x38a   : > { %v4252_v43 = vadd.f32 %v7602_v21, %v4181_v27  ;;  %v4079_v33 = vadd.f32 %v4078_v42, %v3790_v51  ;;  %v4318_v6 = vmax.f32 %v4254_v15, 0.0  ;;  %v4186_v25 = vmul.f32 %v7594_v44, %v4087_v56  ;;  %v8068_v15 = vld [vmem:[#allocation35_spill] sm:$0xff] }
 0x38b   : > { %v3816_v52 = vpop.f32.mrf.mxu1  ;;  %v5605_v39 = vpop.f32.mrf.mxu0 }
 0x38c   : > { %v4316_v32 = vmax.f32 %v4252_v43, 0.0  ;;  %v4184_v41 = vmul.f32 %v7594_v44, %v4079_v33  ;;  %v5431_v61 = vpack.c.bf16 %v4318_v6, %v4317_v2  ;;  %v4090_v57 = vadd.f32 %v5605_v39, %v3801_v10  ;;  %v8069_v43 = vld [vmem:[#allocation36_spill] sm:$0xff] }
 0x38d   : > { %v3818_v60 = vpop.f32.mrf.mxu1  ;;  %v4081_v38 = vpop.f32.mrf.mxu0  ;;  %v4257_v40 = vadd.f32 %v7602_v21, %v4186_v25  ;;  %v3817_v55 = vadd.f32 %v3816_v52, %v8066_v9 }
 0x38e   : > { %v5426_v3 = vpack.c.bf16 %v4316_v32, %v4315_v59  ;;  %v4082_v5 = vadd.f32 %v4081_v38, %v3793_v20  ;;  %5487 = vst [vmem:[%s7626_s25 + $0xc8] sm:$0xff] %v5431_v61   ;;  %v4187_v26 = vmul.f32 %v7594_v44, %v4090_v57  ;;  %v4255_v18 = vadd.f32 %v7602_v21, %v4184_v41  ;;  %v8070_v57 = vld [vmem:[#allocation22_spill] sm:$0xff]  ;;  %v8071_v38 = vld [vmem:[#allocation21_spill] sm:$0xff] }
 0x38f   : > { %v3821_v63 = vpop.f32.mrf.mxu1  ;;  %v5608_v50 = vpop.f32.mrf.mxu0  ;;  %v4321_v46 = vmax.f32 %v4257_v40, 0.0 }
 0x390   : > { %5486 = vst [vmem:[%s7626_s25 + $0xc0] sm:$0xff] %v5426_v3   ;;  %v4185_v36 = vmul.f32 %v7594_v44, %v4082_v5  ;;  %v4103_v58 = vadd.f32 %v5608_v50, %v3814_v37  ;;  %v4258_v53 = vadd.f32 %v7602_v21, %v4187_v26  ;;  %v4319_v22 = vmax.f32 %v4255_v18, 0.0 }
 0x391   : > { %v3823_v12 = vpop.f32.mrf.mxu1  ;;  %v4094_v30 = vpop.f32.mrf.mxu0  ;;  %v3822_v14 = vadd.f32 %v3821_v63, %v8068_v15 }
 0x392   : > { %v4256_v45 = vadd.f32 %v7602_v21, %v4185_v36  ;;  %v4095_v31 = vadd.f32 %v4094_v30, %v3806_v48  ;;  %v4322_v34 = vmax.f32 %v4258_v53, 0.0  ;;  %v4190_v1 = vmul.f32 %v7594_v44, %v4103_v58 }
 0x393   : > { %v3824_v0 = vpop.f32.mrf.mxu1  ;;  %v5609_v13 = vpop.f32.mrf.mxu0 }
 0x394   : > { %v4320_v54 = vmax.f32 %v4256_v45, 0.0  ;;  %v4188_v49 = vmul.f32 %v7594_v44, %v4095_v31  ;;  %v5441_v23 = vpack.c.bf16 %v4322_v34, %v4321_v46  ;;  %v4106_v29 = vadd.f32 %v5609_v13, %v3817_v55 }
 0x395   : > { %v3826_v24 = vpop.f32.mrf.mxu1  ;;  %v4097_v4 = vpop.f32.mrf.mxu0  ;;  %v4261_v51 = vadd.f32 %v7602_v21, %v4190_v1  ;;  %v3825_v3 = vadd.f32 %v3824_v0, %v8071_v38 }
 0x396   : > { %v5436_v35 = vpack.c.bf16 %v4320_v54, %v4319_v22  ;;  %v4098_v28 = vadd.f32 %v4097_v4, %v3809_v16  ;;  %5489 = vst [vmem:[%s7626_s25 + $0xd8] sm:$0xff] %v5441_v23   ;;  %v4191_v17 = vmul.f32 %v7594_v44, %v4106_v29  ;;  %v4259_v47 = vadd.f32 %v7602_v21, %v4188_v49 }
 0x397   : > { %v3829_v27 = vpop.f32.mrf.mxu1  ;;  %v5612_v56 = vpop.f32.mrf.mxu0  ;;  %v4325_v39 = vmax.f32 %v4261_v51, 0.0 }
 0x398   : > { %5488 = vst [vmem:[%s7626_s25 + $0xd0] sm:$0xff] %v5436_v35   ;;  %v4189_v42 = vmul.f32 %v7594_v44, %v4098_v28  ;;  %v3830_v33 = vadd.f32 %v3829_v27, %v8069_v43  ;;  %v4262_v62 = vadd.f32 %v7602_v21, %v4191_v17  ;;  %v4323_v32 = vmax.f32 %v4259_v47, 0.0 }
 0x399   : > { %v3831_v10 = vpop.f32.mrf.mxu1  ;;  %v4110_v2 = vpop.f32.mrf.mxu0 }
 0x39a   : > { %v4260_v6 = vadd.f32 %v7602_v21, %v4189_v42  ;;  %v4119_v25 = vadd.f32 %v5612_v56, %v3830_v33  ;;  %v4111_v52 = vadd.f32 %v4110_v2, %v3822_v14  ;;  %v4326_v19 = vmax.f32 %v4262_v62, 0.0 }
 0x39b   : > { %v3832_v20 = vpop.f32.mrf.mxu1  ;;  %v5613_v59 = vpop.f32.mrf.mxu0 }
 0x39c   : > { %v4324_v41 = vmax.f32 %v4260_v6, 0.0  ;;  %v4194_v61 = vmul.f32 %v7594_v44, %v4119_v25  ;;  %v3833_v60 = vadd.f32 %v3832_v20, %v8070_v57  ;;  %v5451_v8 = vpack.c.bf16 %v4326_v19, %v4325_v39 }
 0x39d   : > { %v4192_v37 = vmul.f32 %v7594_v44, %v4111_v52  ;;  %v3834_v5 = vpop.f32.mrf.mxu1  ;;  %v4113_v40 = vpop.f32.mrf.mxu0 }
 0x39e   : > { %v5446_v26 = vpack.c.bf16 %v4324_v41, %v4323_v32  ;;  %v4122_v63 = vadd.f32 %v5613_v59, %v3833_v60  ;;  %5491 = vst [vmem:[%s7626_s25 + $0xe8] sm:$0xff] %v5451_v8   ;;  %v4114_v50 = vadd.f32 %v4113_v40, %v3825_v3  ;;  %v4265_v11 = vadd.f32 %v7602_v21, %v4194_v61 }
 0x39f   : > { %v4263_v18 = vadd.f32 %v7602_v21, %v4192_v37 }
 0x3a0   : > { %5490 = vst [vmem:[%s7626_s25 + $0xe0] sm:$0xff] %v5446_v26   ;;  %v4195_v48 = vmul.f32 %v7594_v44, %v4122_v63  ;;  %v4193_v36 = vmul.f32 %v7594_v44, %v4114_v50  ;;  %v4329_v12 = vmax.f32 %v4265_v11, 0.0 }
 0x3a1   : > { %v4327_v45 = vmax.f32 %v4263_v18, 0.0 }
 0x3a2   : > { %v4266_v58 = vadd.f32 %v7602_v21, %v4195_v48  ;;  %v4264_v53 = vadd.f32 %v7602_v21, %v4193_v36 }
 0x3a4   : > { %v4330_v30 = vmax.f32 %v4266_v58, 0.0  ;;  %v4328_v31 = vmax.f32 %v4264_v53, 0.0 }
 0x3a6   : > { %v5461_v46 = vpack.c.bf16 %v4330_v30, %v4329_v12  ;;  %v5456_v44 = vpack.c.bf16 %v4328_v31, %v4327_v45 }
 0x3a8   : > { %5493 = vst [vmem:[%s7626_s25 + $0xf8] sm:$0xff] %v5461_v46   ;;  %5492 = vst [vmem:[%s7626_s25 + $0xf0] sm:$0xff] %v5456_v44  }
 0x3a9   : > { %6356 = shalt.err (!%p6353_p1)
}
 0x3aa   : > { %s6357_s12 = scalar_lea.hbm %s7901_s28, 4096  ;;  %s6361_s13 = scalar_lea.hbm %s7956_s4, 32768 }
 0x3ab   : > { %p6358_p13 = scmp.ne.s32.totalorder %s7901_s28, %s6357_s12  ;;  %p6362_p3 = scmp.lt.s32.totalorder %s7901_s28, %s7956_s4 }
 0x3ac   : > { %p6363_p5 = scmp.lt.s32.totalorder %s6361_s13, %s6357_s12 }
 0x3ad   : > { %p6359_p4 = pnand %p6358_p13, %p6569_p0 }
 0x3ae   : > { %p6364_p7 = por %p6363_p5, %p6362_p3 }
 0x3af   : > { %p6360_p11 = pneg %p6359_p4 }
 0x3b1   : > { %p6365_p8 = pnand %p6364_p7, %p6360_p11 }
 0x3b3   : > { %6368 = shalt.err (!%p6365_p8)
}
 0x3b4   : > { %s6443_s23 = smov 64   ;;  %s6444_s25 = smov 4  }
 0x3b5   : > { %5663 = dma.vmem_to_hbm [thread:$0]  (%p6569_p0), %s7903_s14, 4096, %s7901_s28, %s4652_s18, %s6443_s23, %s6443_s23, %s6444_s25  }
 0x3b6 PF: > { %p5690_p6 = scmp.ge.s32.totalorder %s6431_s20, 2  ;;  %s4681_s27 = sand.u32 1, %s6411_s15  }
 0x3b7   : > { %p8072_p10 = scmp.ne.s32.totalorder %s7965_s26, 0  ;;  %s4682_s21 = scalar_lea.sflag [#allocation4], %s4681_s27 }
 0x3b9   : > { %p5680_p2 = pnand %p5690_p6, %p8072_p10 }
 0x3bb   : > { %p5681_p9 = pneg %p5680_p2 }
 0x3bd   : > { %6406 = dma.done.wait (%p5681_p9), %s4682_s21, 4096  }
 0x3be   : > { %6408 = vsyncadd (%p5681_p9), %s4682_s21, 4294963200  ;;  %s22_s20 = sadd.s32 1, %s6431_s20   ;;  %s8073_s15 = smov %s6415_s16 }
 0x3bf   : > { %p19_p12 = scmp.ge.s32.totalorder %s22_s20, 10   ;;  %s8074_s16 = smov %s6419_s17 }
 0x3c0   : > { %s8075_s17 = smov %s6585_s24  ;;  %s8076_s18 = smov %s6427_s19 }
 0x3c1   : > { %s8077_s19 = smov %s8079_s10  ;;  %21 = sbr.rel (!%p19_p12) target bundleno = 11 (0xb), region = 96 }
 0x3c6   :  { %4687 = vsyncpa [#allocation3], 1 }
 0x3c7   :  { %4689 = vsyncpa [#allocation3 + $0x1], 1 }
 0x3c8   :  { %4690 = vsyncpa [#allocation6], 1 }
 0x3c9   :  { %4691 = vsyncpa [#allocation9], 1 }
 0x3ca   :  { %4692 = vsyncpa [#allocation4], 1 }
 0x3cb   :  { %4694 = vsyncpa [#allocation4 + $0x1], 1 }

</bundles_post_ra>
